<compile_context>
chip_gen: v6e
topology: v6e:2x2x1
jax: 0.10.0
libtpu: 0.0.40
codegen_flags: <defaults>
</compile_context>

<pallas_src>
import functools

import jax
import jax.numpy as jnp
from jax.experimental import pallas as pl
from jax.experimental.pallas import tpu as pltpu


_H1 = 512       # first hidden width
_H2 = 2048      # second hidden width (BatchNorm1d features)
_BN_EPS = 1e-5


def _generator_kernel(noise_ref, genre_ref, w1n_ref, w1g_ref, b1_ref,
                      w2_ref, b2_ref, gamma_ref, beta_ref,
                      w3_ref, b3_ref, o_ref, h_ref):
    """Grid axis 0 tiles the output features of the final Linear.

    At j == 0 the shared trunk is computed over the whole batch and cached in
    the VMEM scratch `h_ref`; every grid step then runs one
    (B, 2048) @ (2048, tn) matmul + bias + tanh on the streamed w3 tile.
    """

    @pl.when(pl.program_id(0) == 0)
    def _():
        # Linear(noise_dim + genre_dim, 512) with the concat fused into a
        # split-weight sum, then ReLU.  bf16 operands, f32 MXU accumulation.
        h1 = (jnp.dot(noise_ref[...].astype(jnp.bfloat16), w1n_ref[...],
                      preferred_element_type=jnp.float32)
              + jnp.dot(genre_ref[...].astype(jnp.bfloat16), w1g_ref[...],
                        preferred_element_type=jnp.float32)
              + b1_ref[...])
        h1 = jnp.maximum(h1, 0.0)

        # Linear(512, 2048): bf16 weights, f32 accumulation.
        h2 = jnp.dot(h1.astype(jnp.bfloat16), w2_ref[...],
                     preferred_element_type=jnp.float32) + b2_ref[...]

        # BatchNorm1d(2048), training-mode semantics (biased batch var),
        # f32 math; gamma * rsqrt folded into a single scale.
        mean = jnp.mean(h2, axis=0, keepdims=True)              # (1, 2048)
        d = h2 - mean
        var = jnp.mean(d * d, axis=0, keepdims=True)
        scale = gamma_ref[...] * jax.lax.rsqrt(var + _BN_EPS)
        h2n = d * scale + beta_ref[...]

        # ReLU; cache in bf16 for the streamed final matmul.
        h_ref[...] = jnp.maximum(h2n, 0.0).astype(jnp.bfloat16)

    # Linear(2048, tn) tile + Tanh (per grid step, w3 tile is double-buffered).
    h3 = jnp.dot(h_ref[...], w3_ref[...],
                 preferred_element_type=jnp.float32) + b3_ref[...]
    o_ref[...] = jnp.tanh(h3)


def _tiling(out_feats):
    """Lane-dense tiling of the output feature axis: (tile_width, padded_width)."""
    pad128 = ((out_feats + 127) // 128) * 128
    tn = min(pad128, 512)                     # stream w3 in (2048, tn) tiles
    padded = ((pad128 + tn - 1) // tn) * tn
    return tn, padded


@functools.partial(jax.jit, static_argnames=("output_shape",))
def generator_forward(noise, genre, params, output_shape):
    noise = noise.astype(jnp.float32)
    genre = genre.astype(jnp.float32)
    B = noise.shape[0]
    nd = noise.shape[1]
    gd = genre.shape[1]
    out_feats = output_shape[1] * output_shape[2]
    tn, padded = _tiling(out_feats)
    n_tiles = padded // tn

    def trunk_spec(shape):
        # Constant block index -> fetched once, buffer reused across the grid.
        return pl.BlockSpec(shape, lambda j: (0, 0))

    out = pl.pallas_call(
        _generator_kernel,
        out_shape=jax.ShapeDtypeStruct((B, padded), jnp.float32),
        grid=(n_tiles,),
        in_specs=[
            trunk_spec((B, nd)),                           # noise
            trunk_spec((B, gd)),                           # genre
            trunk_spec((nd, _H1)),                         # w1 (noise rows, bf16)
            trunk_spec((gd, _H1)),                         # w1 (genre rows, bf16)
            trunk_spec((1, _H1)),                          # b1
            trunk_spec((_H1, _H2)),                        # w2 (bf16)
            trunk_spec((1, _H2)),                          # b2
            trunk_spec((1, _H2)),                          # gamma
            trunk_spec((1, _H2)),                          # beta
            pl.BlockSpec((_H2, tn), lambda j: (0, j)),     # w3 tile (bf16, streamed)
            pl.BlockSpec((1, tn), lambda j: (0, j)),       # b3 tile
        ],
        out_specs=pl.BlockSpec((B, tn), lambda j: (0, j)),
        scratch_shapes=[pltpu.VMEM((B, _H2), jnp.bfloat16)],   # cached trunk
        compiler_params=pltpu.CompilerParams(
            dimension_semantics=("arbitrary",),   # scratch carried across tiles
            vmem_limit_bytes=32 << 20,            # safe on v5e/v6e/v7x
        ),
    )(
        noise, genre,
        params["w1n"], params["w1g"], params["b1"],
        params["w2"], params["b2"],
        params["gamma"], params["beta"],
        params["w3"], params["b3"],
    )

    return out[:, :out_feats].reshape((-1,) + tuple(output_shape))


def init_params(key, noise_dim, genre_dim, output_shape):
    """Synthetic parameters matching the PyTorch module's shapes.

    Weights are stored (in_features, out_features); w1 is pre-split into its
    noise/genre row blocks (fuses torch.cat), all weights are bf16, and
    w3/b3 are zero-padded to the lane-dense output width used by the kernel.
    """
    out_feats = output_shape[1] * output_shape[2]
    _, padded = _tiling(out_feats)
    ks = jax.random.split(key, 6)

    def linear(kw, kb, fan_in, fan_out):
        bound = 1.0 / jnp.sqrt(fan_in)
        w = jax.random.uniform(kw, (fan_in, fan_out), jnp.float32, -bound, bound)
        b = jax.random.uniform(kb, (1, fan_out), jnp.float32, -bound, bound)
        return w, b

    w1, b1 = linear(ks[0], ks[1], noise_dim + genre_dim, _H1)
    w2, b2 = linear(ks[2], ks[3], _H1, _H2)
    w3, b3 = linear(ks[4], ks[5], _H2, out_feats)

    pad = padded - out_feats
    w3 = jnp.pad(w3, ((0, 0), (0, pad)))
    b3 = jnp.pad(b3, ((0, 0), (0, pad)))

    return dict(
        w1n=w1[:noise_dim].astype(jnp.bfloat16),
        w1g=w1[noise_dim:].astype(jnp.bfloat16),
        b1=b1,
        w2=w2.astype(jnp.bfloat16),
        b2=b2,
        gamma=jnp.ones((1, _H2), jnp.float32),
        beta=jnp.zeros((1, _H2), jnp.float32),
        w3=w3.astype(jnp.bfloat16),
        b3=b3,
    )


def reference_forward(noise, genre, params, output_shape):
    """Pure-JAX reference mirroring the kernel's dtype policy exactly."""
    out_feats = output_shape[1] * output_shape[2]
    noise = noise.astype(jnp.float32)
    genre = genre.astype(jnp.float32)

    h1 = (jnp.dot(noise.astype(jnp.bfloat16), params["w1n"],
                  preferred_element_type=jnp.float32)
          + jnp.dot(genre.astype(jnp.bfloat16), params["w1g"],
                    preferred_element_type=jnp.float32)
          + params["b1"])
    h1 = jnp.maximum(h1, 0.0)

    h2 = jnp.dot(h1.astype(jnp.bfloat16), params["w2"],
                 preferred_element_type=jnp.float32) + params["b2"]

    mean = jnp.mean(h2, axis=0, keepdims=True)
    d = h2 - mean
    var = jnp.mean(d * d, axis=0, keepdims=True)
    h2n = d * (params["gamma"] * jax.lax.rsqrt(var + _BN_EPS)) + params["beta"]
    h2n = jnp.maximum(h2n, 0.0).astype(jnp.bfloat16)

    h3 = jnp.tanh(jnp.dot(h2n, params["w3"],
                          preferred_element_type=jnp.float32) + params["b3"])
    return h3[:, :out_feats].reshape((-1,) + tuple(output_shape))


if __name__ == "__main__":
    # Small, deterministic example shapes consistent with the module.
    batch = 8
    noise_dim = 16
    genre_dim = 16
    output_shape = (1, 28, 28)   # H*W = 784 -> padded to 1024, 2 output tiles

    key = jax.random.PRNGKey(0)
    k_noise, k_genre, k_params = jax.random.split(key, 3)
    noise = jax.random.normal(k_noise, (batch, noise_dim), jnp.float32)
    genre = jax.random.normal(k_genre, (batch, genre_dim), jnp.float32)
    params = init_params(k_params, noise_dim, genre_dim, output_shape)

    out = generator_forward(noise, genre, params, output_shape)
    out = jax.block_until_ready(out)

    ref = reference_forward(noise, genre, params, output_shape)
    assert out.shape == (batch,) + output_shape, out.shape
    max_err = float(jnp.max(jnp.abs(out - ref)))
    assert jnp.allclose(out, ref, atol=5e-3, rtol=5e-3), f"mismatch vs ref, max_err={max_err}"

    print("KERNEL_OK")
</pallas_src>

<mosaic_0001>
module attributes {stable_mosaic.version = 11 : i64} {
  func.func @_generator_kernel(%arg0: i32, %arg1: memref<8x16xf32, #tpu.memory_space<vmem>>, %arg2: memref<8x16xf32, #tpu.memory_space<vmem>>, %arg3: memref<16x512xbf16, #tpu.memory_space<vmem>>, %arg4: memref<16x512xbf16, #tpu.memory_space<vmem>>, %arg5: memref<1x512xf32, #tpu.memory_space<vmem>>, %arg6: memref<512x2048xbf16, #tpu.memory_space<vmem>>, %arg7: memref<1x2048xf32, #tpu.memory_space<vmem>>, %arg8: memref<1x2048xf32, #tpu.memory_space<vmem>>, %arg9: memref<1x2048xf32, #tpu.memory_space<vmem>>, %arg10: memref<2048x512xbf16, #tpu.memory_space<vmem>>, %arg11: memref<1x512xf32, #tpu.memory_space<vmem>>, %arg12: memref<8x512xf32, #tpu.memory_space<vmem>>, %arg13: memref<8x2048xbf16, #tpu.memory_space<vmem>>) attributes {dimension_semantics = [#tpu.dimension_semantics<arbitrary>], iteration_bounds = array<i64: 2>, scalar_prefetch = 0 : i64, scratch_operands = 1 : i64, tpu.core_type = #tpu.core_type<tc>, window_params = [{pipeline_mode = #tpu.pipeline_mode<synchronous>, transform_indices = @transform_0, window_bounds = array<i64: 8, 16>}, {pipeline_mode = #tpu.pipeline_mode<synchronous>, transform_indices = @transform_1, window_bounds = array<i64: 8, 16>}, {pipeline_mode = #tpu.pipeline_mode<synchronous>, transform_indices = @transform_2, window_bounds = array<i64: 16, 512>}, {pipeline_mode = #tpu.pipeline_mode<synchronous>, transform_indices = @transform_3, window_bounds = array<i64: 16, 512>}, {pipeline_mode = #tpu.pipeline_mode<synchronous>, transform_indices = @transform_4, window_bounds = array<i64: 1, 512>}, {pipeline_mode = #tpu.pipeline_mode<synchronous>, transform_indices = @transform_5, window_bounds = array<i64: 512, 2048>}, {pipeline_mode = #tpu.pipeline_mode<synchronous>, transform_indices = @transform_6, window_bounds = array<i64: 1, 2048>}, {pipeline_mode = #tpu.pipeline_mode<synchronous>, transform_indices = @transform_7, window_bounds = array<i64: 1, 2048>}, {pipeline_mode = #tpu.pipeline_mode<synchronous>, transform_indices = @transform_8, window_bounds = array<i64: 1, 2048>}, {transform_indices = @transform_9, window_bounds = array<i64: 2048, 512>}, {transform_indices = @transform_10, window_bounds = array<i64: 1, 512>}, {transform_indices = @transform_11, window_bounds = array<i64: 8, 512>}]} {
    %c0_i32 = arith.constant 0 : i32
    %0 = arith.cmpi eq, %arg0, %c0_i32 : i32
    %1 = arith.extui %0 : i1 to i32
    %c0_i32_0 = arith.constant 0 : i32
    %2 = arith.cmpi ne, %1, %c0_i32_0 : i32
    scf.if %2 {
      %c0_8 = arith.constant 0 : index
      %c0_9 = arith.constant 0 : index
      %11 = vector.load %arg1[%c0_8, %c0_9] : memref<8x16xf32, #tpu.memory_space<vmem>>, vector<8x16xf32>
      %12 = arith.truncf %11 : vector<8x16xf32> to vector<8x16xbf16>
      %c0_10 = arith.constant 0 : index
      %c0_11 = arith.constant 0 : index
      %13 = vector.load %arg3[%c0_10, %c0_11] : memref<16x512xbf16, #tpu.memory_space<vmem>>, vector<16x512xbf16>
      %cst_12 = arith.constant dense<0.000000e+00> : vector<8x512xf32>
      %14 = tpu.matmul %12, %13, %cst_12 {dimension_numbers = #tpu.dot_dimension_numbers<[1], [0], [0], [1], [0, 0, 1, 1], [], []>} : vector<8x16xbf16>, vector<16x512xbf16>, vector<8x512xf32> -> vector<8x512xf32>
      %c0_13 = arith.constant 0 : index
      %c0_14 = arith.constant 0 : index
      %15 = vector.load %arg2[%c0_13, %c0_14] : memref<8x16xf32, #tpu.memory_space<vmem>>, vector<8x16xf32>
      %16 = arith.truncf %15 : vector<8x16xf32> to vector<8x16xbf16>
      %c0_15 = arith.constant 0 : index
      %c0_16 = arith.constant 0 : index
      %17 = vector.load %arg4[%c0_15, %c0_16] : memref<16x512xbf16, #tpu.memory_space<vmem>>, vector<16x512xbf16>
      %cst_17 = arith.constant dense<0.000000e+00> : vector<8x512xf32>
      %18 = tpu.matmul %16, %17, %cst_17 {dimension_numbers = #tpu.dot_dimension_numbers<[1], [0], [0], [1], [0, 0, 1, 1], [], []>} : vector<8x16xbf16>, vector<16x512xbf16>, vector<8x512xf32> -> vector<8x512xf32>
      %19 = arith.addf %14, %18 : vector<8x512xf32>
      %c0_18 = arith.constant 0 : index
      %c0_19 = arith.constant 0 : index
      %20 = vector.load %arg5[%c0_18, %c0_19] : memref<1x512xf32, #tpu.memory_space<vmem>>, vector<1x512xf32>
      %21 = vector.broadcast %20 : vector<1x512xf32> to vector<8x512xf32>
      %22 = arith.addf %19, %21 : vector<8x512xf32>
      %cst_20 = arith.constant 0.000000e+00 : f32
      %23 = vector.broadcast %cst_20 : f32 to vector<8x512xf32>
      %24 = arith.maximumf %22, %23 : vector<8x512xf32>
      %25 = arith.truncf %24 : vector<8x512xf32> to vector<8x512xbf16>
      %c0_21 = arith.constant 0 : index
      %c0_22 = arith.constant 0 : index
      %26 = vector.load %arg6[%c0_21, %c0_22] : memref<512x2048xbf16, #tpu.memory_space<vmem>>, vector<512x2048xbf16>
      %cst_23 = arith.constant dense<0.000000e+00> : vector<8x2048xf32>
      %27 = tpu.matmul %25, %26, %cst_23 {dimension_numbers = #tpu.dot_dimension_numbers<[1], [0], [0], [1], [0, 0, 1, 1], [], []>} : vector<8x512xbf16>, vector<512x2048xbf16>, vector<8x2048xf32> -> vector<8x2048xf32>
      %c0_24 = arith.constant 0 : index
      %c0_25 = arith.constant 0 : index
      %28 = vector.load %arg7[%c0_24, %c0_25] : memref<1x2048xf32, #tpu.memory_space<vmem>>, vector<1x2048xf32>
      %29 = vector.broadcast %28 : vector<1x2048xf32> to vector<8x2048xf32>
      %30 = arith.addf %27, %29 : vector<8x2048xf32>
      %cst_26 = arith.constant dense<0.000000e+00> : vector<2048xf32>
      %31 = vector.multi_reduction <add>, %30, %cst_26 [0] : vector<8x2048xf32> to vector<2048xf32>
      %32 = vector.shape_cast %31 : vector<2048xf32> to vector<1x2048xf32>
      %cst_27 = arith.constant 8.000000e+00 : f32
      %33 = vector.broadcast %cst_27 : f32 to vector<1x2048xf32>
      %34 = arith.divf %32, %33 : vector<1x2048xf32>
      %35 = vector.broadcast %34 : vector<1x2048xf32> to vector<8x2048xf32>
      %36 = arith.subf %30, %35 : vector<8x2048xf32>
      %37 = arith.mulf %36, %36 : vector<8x2048xf32>
      %cst_28 = arith.constant dense<0.000000e+00> : vector<2048xf32>
      %38 = vector.multi_reduction <add>, %37, %cst_28 [0] : vector<8x2048xf32> to vector<2048xf32>
      %39 = vector.shape_cast %38 : vector<2048xf32> to vector<1x2048xf32>
      %cst_29 = arith.constant 8.000000e+00 : f32
      %40 = vector.broadcast %cst_29 : f32 to vector<1x2048xf32>
      %41 = arith.divf %39, %40 : vector<1x2048xf32>
      %c0_30 = arith.constant 0 : index
      %c0_31 = arith.constant 0 : index
      %42 = vector.load %arg8[%c0_30, %c0_31] : memref<1x2048xf32, #tpu.memory_space<vmem>>, vector<1x2048xf32>
      %cst_32 = arith.constant 9.99999974E-6 : f32
      %43 = vector.broadcast %cst_32 : f32 to vector<1x2048xf32>
      %44 = arith.addf %41, %43 : vector<1x2048xf32>
      %45 = math.rsqrt %44 : vector<1x2048xf32>
      %46 = arith.mulf %42, %45 : vector<1x2048xf32>
      %47 = vector.broadcast %46 : vector<1x2048xf32> to vector<8x2048xf32>
      %48 = arith.mulf %36, %47 : vector<8x2048xf32>
      %c0_33 = arith.constant 0 : index
      %c0_34 = arith.constant 0 : index
      %49 = vector.load %arg9[%c0_33, %c0_34] : memref<1x2048xf32, #tpu.memory_space<vmem>>, vector<1x2048xf32>
      %50 = vector.broadcast %49 : vector<1x2048xf32> to vector<8x2048xf32>
      %51 = arith.addf %48, %50 : vector<8x2048xf32>
      %cst_35 = arith.constant 0.000000e+00 : f32
      %52 = vector.broadcast %cst_35 : f32 to vector<8x2048xf32>
      %53 = arith.maximumf %51, %52 : vector<8x2048xf32>
      %54 = arith.truncf %53 : vector<8x2048xf32> to vector<8x2048xbf16>
      %c0_36 = arith.constant 0 : index
      %c0_37 = arith.constant 0 : index
      %55 = vector.load %arg13[%c0_36, %c0_37] : memref<8x2048xbf16, #tpu.memory_space<vmem>>, vector<8x2048xbf16>
      tpu.vector_store %arg13[%c0_36, %c0_37], %54 {strides = array<i32>} : memref<8x2048xbf16, #tpu.memory_space<vmem>>, vector<8x2048xbf16>,
    } else {
    }
    %c0 = arith.constant 0 : index
    %c0_1 = arith.constant 0 : index
    %3 = vector.load %arg13[%c0, %c0_1] : memref<8x2048xbf16, #tpu.memory_space<vmem>>, vector<8x2048xbf16>
    %c0_2 = arith.constant 0 : index
    %c0_3 = arith.constant 0 : index
    %4 = vector.load %arg10[%c0_2, %c0_3] : memref<2048x512xbf16, #tpu.memory_space<vmem>>, vector<2048x512xbf16>
    %cst = arith.constant dense<0.000000e+00> : vector<8x512xf32>
    %5 = tpu.matmul %3, %4, %cst {dimension_numbers = #tpu.dot_dimension_numbers<[1], [0], [0], [1], [0, 0, 1, 1], [], []>} : vector<8x2048xbf16>, vector<2048x512xbf16>, vector<8x512xf32> -> vector<8x512xf32>
    %c0_4 = arith.constant 0 : index
    %c0_5 = arith.constant 0 : index
    %6 = vector.load %arg11[%c0_4, %c0_5] : memref<1x512xf32, #tpu.memory_space<vmem>>, vector<1x512xf32>
    %7 = vector.broadcast %6 : vector<1x512xf32> to vector<8x512xf32>
    %8 = arith.addf %5, %7 : vector<8x512xf32>
    %9 = math.tanh %8 : vector<8x512xf32>
    %c0_6 = arith.constant 0 : index
    %c0_7 = arith.constant 0 : index
    %10 = vector.load %arg12[%c0_6, %c0_7] : memref<8x512xf32, #tpu.memory_space<vmem>>, vector<8x512xf32>
    tpu.vector_store %arg12[%c0_6, %c0_7], %9 {strides = array<i32>} : memref<8x512xf32, #tpu.memory_space<vmem>>, vector<8x512xf32>,
    return
  }
  func.func @transform_0(%arg0: i32) -> (i32, i32) {
    %c0_i32 = arith.constant 0 : i32
    %c0_i32_0 = arith.constant 0 : i32
    %c0_i32_1 = arith.constant 0 : i32
    return %c0_i32, %c0_i32_0 : i32, i32
  }
  func.func @transform_1(%arg0: i32) -> (i32, i32) {
    %c0_i32 = arith.constant 0 : i32
    %c0_i32_0 = arith.constant 0 : i32
    %c0_i32_1 = arith.constant 0 : i32
    return %c0_i32, %c0_i32_0 : i32, i32
  }
  func.func @transform_2(%arg0: i32) -> (i32, i32) {
    %c0_i32 = arith.constant 0 : i32
    %c0_i32_0 = arith.constant 0 : i32
    %c0_i32_1 = arith.constant 0 : i32
    return %c0_i32, %c0_i32_0 : i32, i32
  }
  func.func @transform_3(%arg0: i32) -> (i32, i32) {
    %c0_i32 = arith.constant 0 : i32
    %c0_i32_0 = arith.constant 0 : i32
    %c0_i32_1 = arith.constant 0 : i32
    return %c0_i32, %c0_i32_0 : i32, i32
  }
  func.func @transform_4(%arg0: i32) -> (i32, i32) {
    %c0_i32 = arith.constant 0 : i32
    %c0_i32_0 = arith.constant 0 : i32
    %c0_i32_1 = arith.constant 0 : i32
    return %c0_i32, %c0_i32_0 : i32, i32
  }
  func.func @transform_5(%arg0: i32) -> (i32, i32) {
    %c0_i32 = arith.constant 0 : i32
    %c0_i32_0 = arith.constant 0 : i32
    %c0_i32_1 = arith.constant 0 : i32
    return %c0_i32, %c0_i32_0 : i32, i32
  }
  func.func @transform_6(%arg0: i32) -> (i32, i32) {
    %c0_i32 = arith.constant 0 : i32
    %c0_i32_0 = arith.constant 0 : i32
    %c0_i32_1 = arith.constant 0 : i32
    return %c0_i32, %c0_i32_0 : i32, i32
  }
  func.func @transform_7(%arg0: i32) -> (i32, i32) {
    %c0_i32 = arith.constant 0 : i32
    %c0_i32_0 = arith.constant 0 : i32
    %c0_i32_1 = arith.constant 0 : i32
    return %c0_i32, %c0_i32_0 : i32, i32
  }
  func.func @transform_8(%arg0: i32) -> (i32, i32) {
    %c0_i32 = arith.constant 0 : i32
    %c0_i32_0 = arith.constant 0 : i32
    %c0_i32_1 = arith.constant 0 : i32
    return %c0_i32, %c0_i32_0 : i32, i32
  }
  func.func @transform_9(%arg0: i32) -> (i32, i32) {
    %c0_i32 = arith.constant 0 : i32
    %c0_i32_0 = arith.constant 0 : i32
    return %c0_i32, %arg0 : i32, i32
  }
  func.func @transform_10(%arg0: i32) -> (i32, i32) {
    %c0_i32 = arith.constant 0 : i32
    %c0_i32_0 = arith.constant 0 : i32
    return %c0_i32, %arg0 : i32, i32
  }
  func.func @transform_11(%arg0: i32) -> (i32, i32) {
    %c0_i32 = arith.constant 0 : i32
    %c0_i32_0 = arith.constant 0 : i32
    return %c0_i32, %arg0 : i32, i32
  }
}

</mosaic_0001>

<bundles_post_ra>
// kernel: generator_forward.1
= control target key start
LH: loop header
LB: loop body
LE: loop exit
PB: predicated region body
PF: predicated region fallthrough
CT: control target
= control target key end

     0   :  { %s13083_s0 = inlined_call_operand.hbm [shape: f32[8,16], index: 0, kind: input, shape index: {}]   ;;  %s13084_s1 = inlined_call_operand.hbm [shape: f32[8,16], index: 1, kind: input, shape index: {}]   ;;  %s13085_s2 = inlined_call_operand.hbm [shape: bf16[16,512], index: 2, kind: input, shape index: {}]   ;;  %s13086_s3 = inlined_call_operand.hbm [shape: bf16[16,512], index: 3, kind: input, shape index: {}]   ;;  %s13087_s4 = inlined_call_operand.hbm [shape: f32[1,512], index: 4, kind: input, shape index: {}]   ;;  %s13088_s5 = inlined_call_operand.hbm [shape: bf16[512,2048], index: 5, kind: input, shape index: {}]   ;;  %s13089_s6 = inlined_call_operand.hbm [shape: f32[1,2048], index: 6, kind: input, shape index: {}]   ;;  %s13090_s7 = inlined_call_operand.hbm [shape: f32[1,2048], index: 7, kind: input, shape index: {}]   ;;  %s13091_s8 = inlined_call_operand.hbm [shape: f32[1,2048], index: 8, kind: input, shape index: {}]   ;;  %s13092_s9 = inlined_call_operand.hbm [shape: bf16[2048,1024], index: 9, kind: input, shape index: {}]   ;;  %s13093_s10 = inlined_call_operand.hbm [shape: f32[1,1024], index: 10, kind: input, shape index: {}]   ;;  %s13094_s11 = inlined_call_operand.vmem [shape: f32[8,1024], index: 11, kind: output, shape index: {}]  }
   0x1   :  { %13105 = sst [smem:[#allocation26_spill]] %s13084_s1 }
   0x2   :  { %13106 = sst [smem:[#allocation27_spill]] %s13086_s3 }
   0x3   :  { %13107 = sst [smem:[#allocation28_spill]] %s13088_s5 }
   0x4   :  { %13108 = sst [smem:[#allocation29_spill]] %s13090_s7 }
   0x5   :  { %16 = vsyncpa [#allocation4], 0 }
   0x6   :  { %17 = vsyncpa [#allocation6], 0 }
   0x7   :  { %18 = vsyncpa [#allocation9], 0 }
   0x8   :  { %19 = vsyncpa [#allocation12], 0 }
   0x9   :  { %20 = vsyncpa [#allocation15], 0 }
   0xa   :  { %21 = vsyncpa [#allocation18], 0 }
   0xb   :  { %23 = vsyncpa [#allocation18 + $0x1], 0  ;;  %s11840_s17 = smov 0   ;;  %s11842_s18 = smov 0  }
   0xc   :  { %s11844_s19 = smov 0   ;;  %s11846_s20 = smov 0  }
   0xd LB: > { %s11762_s21 = smov [#allocation5]   ;;  %s11861_s23 = sadd.s32 4294967295, %s11760_s20   ;;  %s11760_s20 = sphi %s11846_s20, %s13138_s20   ;;  %s11756_s19 = sphi %s11844_s19, %s13137_s19   ;;  %s11752_s18 = sphi %s11842_s18, %s13136_s18   ;;  %s11748_s17 = sphi %s11840_s17, %s13135_s17  }
   0xe   : > { %s325_s22 = sshll.u32 %s11762_s21, 4  ;;  %p9332_p0 = scmp.ge.s32.totalorder %s11760_s20, 1  ;;  %s326_s22 = int_to_ptr.vmem [resolvable:$true] %s325_s22 }
   0xf   : > { %p13100_p1 = scmp.eq.s32.totalorder %s11861_s23, 0  ;;  %p301_p2 = scmp.lt.s32.totalorder %s11760_s20, 3 }
  0x10   : > { %s11763_s25 = smov [#allocation8]   ;;  %s11764_s28 = smov [#allocation11]  }
  0x11   : > { %p11867_p4 = pnand %p9332_p0, %p301_p2  ;;  %s348_s26 = sshll.u32 %s11763_s25, 4  ;;  %s11879_s26 = int_to_ptr.vmem [resolvable:$true] %s348_s26 }
  0x12   : > { %s372_s29 = sshll.u32 %s11764_s28, 4  ;;  %s11427_s12 = scalar_lea.vmem %s326_s22, 128  ;;  %s11881_s29 = int_to_ptr.vmem [resolvable:$true] %s372_s29 }
  0x13   : > { %s13109_s24 = scalar_select %p11867_p4, 1, 0 }
  0x14   : > { %p10476_p5 = pneg %p11867_p4  ;;  %p11428_p8 = scmp.ne.s32.totalorder %s326_s22, %s11427_s12 }
  0x15   : > { %p11435_p11 = scmp.lt.s32.totalorder %s326_s22, %s326_s22  ;;  %p11436_p12 = scmp.lt.s32.totalorder %s11427_s12, %s11427_s12 }
  0x16   : > { %p11875_p6 = pnand %p10476_p5, %p13100_p1 }
  0x17   : > { %p11437_p13 = por %p11436_p12, %p11435_p11 }
  0x18   : > { %s13110_s27 = scalar_select %p11875_p6, 1, 0 }
  0x19   : > { %p11885_p7 = pneg %p11875_p6 }
  0x1b   : > { %p11430_p9 = pnand %p11428_p8, %p11885_p7 }
  0x1d   : > { %p11431_p10 = pneg %p11430_p9 }
  0x1f   : > { %p11438_p0 = pnand %p11437_p13, %p11431_p10 }
  0x21   : > { %11441 = shalt.err (!%p11438_p0)
}
  0x22   : > { %s13112_s1 = sld [smem:[#allocation26_spill]]  ;;  %s11453_s15 = scalar_lea.vmem %s11879_s26, 512 }
  0x23   : > { %p11454_p2 = scmp.ne.s32.totalorder %s11879_s26, %s11453_s15  ;;  %p11461_p9 = scmp.lt.s32.totalorder %s11879_s26, %s11879_s26 }
  0x24   : > { %p11462_p11 = scmp.lt.s32.totalorder %s11453_s15, %s11453_s15 }
  0x25   : > { %p11456_p5 = pnand %p11454_p2, %p11885_p7 }
  0x26   : > { %p11463_p10 = por %p11462_p11, %p11461_p9 }
  0x27   : > { %p11457_p8 = pneg %p11456_p5 }
  0x28   : > { %10482 = dma.hbm_to_vmem [thread:$0]  (!%p11875_p6), %s13112_s1, 128, %s326_s22, [#allocation6]  }
  0x29   : > { %p11464_p12 = pnand %p11463_p10, %p11457_p8 }
  0x2b   : > { %11467 = shalt.err (!%p11464_p12)
}
  0x2c   : > { %s13095_s16 = smov 256   ;;  %s13097_s21 = smov 16  }
  0x2d   : > { %s13113_s3 = sld [smem:[#allocation27_spill]]  ;;  %s11479_s28 = scalar_lea.vmem %s11881_s29, 65536 }
  0x2e   : > { %p11480_p13 = scmp.ne.s32.totalorder %s11881_s29, %s11479_s28  ;;  %p11487_p5 = scmp.lt.s32.totalorder %s11881_s29, %s11881_s29 }
  0x2f   : > { %p11488_p8 = scmp.lt.s32.totalorder %s11479_s28, %s11479_s28 }
  0x30   : > { %p11482_p0 = pnand %p11480_p13, %p11885_p7 }
  0x31   : > { %p11489_p9 = por %p11488_p8, %p11487_p5 }
  0x32   : > { %p11483_p2 = pneg %p11482_p0 }
  0x33   : > { %10488 = dma.hbm_to_vmem [thread:$0]  (!%p11875_p6), %s13113_s3, 512, %s11879_s26, [#allocation9], %s13095_s16, %s13095_s16, %s13097_s21  }
  0x34   : > { %p11490_p11 = pnand %p11489_p9, %p11483_p2 }
  0x36   : > { %11493 = shalt.err (!%p11490_p11)
}
  0x37   : > { %s11767_s12 = smov 1024   ;;  %s11768_s13 = smov 64  }
  0x38   : > { %s13114_s5 = sld [smem:[#allocation28_spill]]  ;;  %s11769_s26 = smov [#allocation14]  }
  0x39   : > { %s397_s22 = sshll.u32 %s11769_s26, 4  ;;  %s398_s22 = int_to_ptr.vmem [resolvable:$true] %s397_s22 }
  0x3a   : > { %s11505_s25 = scalar_lea.vmem %s398_s22, 256  ;;  %p11513_p0 = scmp.lt.s32.totalorder %s398_s22, %s398_s22 }
  0x3b   : > { %p11506_p10 = scmp.ne.s32.totalorder %s398_s22, %s11505_s25  ;;  %p11514_p2 = scmp.lt.s32.totalorder %s11505_s25, %s11505_s25 }
  0x3d   : > { %p11508_p12 = pnand %p11506_p10, %p11885_p7  ;;  %p11515_p5 = por %p11514_p2, %p11513_p0 }
  0x3e   : > { %10494 = dma.hbm_to_vmem [thread:$0]  (!%p11875_p6), %s13114_s5, 65536, %s11881_s29, [#allocation12], %s11767_s12, %s11767_s12, %s11768_s13  }
  0x3f   : > { %p11509_p13 = pneg %p11508_p12 }
  0x41   : > { %p11516_p8 = pnand %p11515_p5, %p11509_p13 }
  0x43   : > { %11519 = shalt.err (!%p11516_p8)
}
  0x44   : > { %s13115_s7 = sld [smem:[#allocation29_spill]]  ;;  %s11931_s29 = sadd.s32 1, %s11760_s20  }
  0x45   : > { %s225_s16 = sadd.s32 1, %s11756_s19  ;;  %s222_s12 = ssub.s32 %s11760_s20, %s11931_s29 }
  0x46   : > { %p232_p9 = scmp.ne.s32.totalorder %s11756_s19, %s11752_s18  ;;  %p223_p11 = scmp.eq.s32.totalorder %s222_s12, 0 }
  0x47   : > { %p233_p10 = scmp.eq.s32.totalorder %s11760_s20, 0  ;;  %p238_p12 = scmp.ne.s32.totalorder %s11752_s18, %s11748_s17 }
  0x48   : > { %p10520_p13 = scmp.lt.s32.totalorder %s11760_s20, 2  ;;  %s419_s15 = sand.u32 1, %s11760_s20  }
  0x49   : > { %s11943_s13 = scalar_select %p223_p11, %s11756_s19, %s225_s16  }
  0x4a   : > { %10500 = dma.hbm_to_vmem [thread:$0]  (!%p11875_p6), %s13115_s7, 256, %s398_s22, [#allocation15]  }
  0x4b   : > { %p234_p0 = por %p233_p10, %p232_p9  ;;  %p11947_p2 = por %p13100_p1, %p238_p12 }
  0x4c   : > { %s13099_s26 = sand.u32 1, %s11756_s19   ;;  %s10426_s25 = sshll.u32 %s11760_s20, 8 }
  0x4d   : > { %s13116_s14 = scalar_select %p11947_p2, 1, 0 }
  0x4e   : > { %s9343_s22 = sshll.u32 %s13099_s26, 12  ;;  %s11959_s12 = scalar_lea.hbm %s13092_s9, %s10426_s25 }
  0x4f   : > { %s423_s17 = scalar_lea.vmem [#allocation17], %s9343_s22  ;;  %p11963_p5 = pnand %p10520_p13, %p234_p0 }
  0x50   : > { %s430_s16 = sshll.u32 %s423_s17, 4  ;;  %s11770_s26 = smov [#allocation3]   ;;  %s11961_s16 = int_to_ptr.vmem [resolvable:$true] %s430_s16 }
  0x51   : > { %s11967_s3 = sshll.u32 %s11770_s26, 4  ;;  %s11969_s5 = scalar_lea.sflag [#allocation18], %s419_s15  ;;  %s315_s3 = int_to_ptr.vmem [resolvable:$true] %s11967_s3 }
  0x52   : > { %s11520_s21 = scalar_lea.hbm %s11959_s12, 65536  ;;  %p11522_p9 = pneg %p11963_p5 }
  0x53   : > { %p11521_p8 = scmp.ne.s32.totalorder %s11959_s12, %s11520_s21  ;;  %s11525_s28 = scalar_lea.hbm %s13092_s9, 131072 }
  0x54   : > { %p11526_p12 = scmp.lt.s32.totalorder %s11959_s12, %s13092_s9  ;;  %p11527_p13 = scmp.lt.s32.totalorder %s11525_s28, %s11520_s21 }
  0x55   : > { %p11523_p11 = pnand %p11522_p9, %p11521_p8 }
  0x56   : > { %p11528_p0 = por %p11527_p13, %p11526_p12 }
  0x57   : > { %p11524_p10 = pneg %p11523_p11 }
  0x59   : > { %p11529_p3 = pnand %p11528_p0, %p11524_p10 }
  0x5b   : > { %11532 = shalt.err (!%p11529_p3)
}
  0x5c   : > { %s11533_s15 = scalar_lea.vmem %s11961_s16, 65536  ;;  %s11771_s26 = smov [#allocation17]  }
  0x5d   : > { %p11534_p1 = scmp.ne.s32.totalorder %s11961_s16, %s11533_s15  ;;  %s11538_s22 = sshll.u32 %s11771_s26, 4  ;;  %s11539_s22 = int_to_ptr.vmem [resolvable:$false] %s11538_s22 }
  0x5e   : > { %s11540_s25 = scalar_lea.vmem %s11539_s22, 131072  ;;  %p11541_p2 = scmp.lt.s32.totalorder %s11961_s16, %s11539_s22 }
  0x5f   : > { %p11536_p8 = pnand %p11534_p1, %p11522_p9  ;;  %p11542_p4 = scmp.lt.s32.totalorder %s11540_s25, %s11533_s15 }
  0x61   : > { %p11537_p11 = pneg %p11536_p8  ;;  %p11543_p6 = por %p11542_p4, %p11541_p2 }
  0x63   : > { %p11544_p12 = pnand %p11543_p6, %p11537_p11 }
  0x65   : > { %11547 = shalt.err (!%p11544_p12)
}
  0x66   : > { %s11772_s7 = smov 512   ;;  %s13118_s21 = smov 16  }
  0x67   : > { %s13119_s28 = smov 256   ;;  %s11559_s17 = scalar_lea.vmem %s315_s3, 128 }
  0x68   : > { %10507 = dma.hbm_to_vmem [thread:$0]  (!%p11963_p5), %s11959_s12, 65536, %s11961_s16, %s11969_s5, %s11772_s7, %s13119_s28, %s13118_s21  }
  0x69   : > { %p11560_p1 = scmp.ne.s32.totalorder %s315_s3, %s11559_s17  ;;  %p11567_p4 = scmp.lt.s32.totalorder %s315_s3, %s315_s3 }
  0x6a   : > { %p11568_p6 = scmp.lt.s32.totalorder %s11559_s17, %s11559_s17 }
  0x6b   : > { %p11562_p3 = pnand %p11560_p1, %p11885_p7 }
  0x6c   : > { %p11569_p2 = por %p11568_p6, %p11567_p4 }
  0x6d   : > { %p11563_p10 = pneg %p11562_p3 }
  0x6f   : > { %p11570_p13 = pnand %p11569_p2, %p11563_p10 }
  0x71   : > { %11573 = shalt.err (!%p11570_p13)
}
  0x72   : > { %p13120_p0 = scmp.ne.s32.totalorder %s13110_s27, 0  ;;  %s11773_s22 = smov [#allocation7]  }
  0x73   : > { %s335_s12 = sshll.u32 %s11773_s22, 4  ;;  %s11774_s16 = smov [#allocation10]   ;;  %s336_s12 = int_to_ptr.vmem [resolvable:$true] %s335_s12 }
  0x74   : > { %10479 = dma.hbm_to_vmem [thread:$0]  (!%p13120_p0), %s13083_s0, 128, %s315_s3, [#allocation4]  }
  0x75   : > { %s362_s25 = sshll.u32 %s11774_s16, 4  ;;  %s11585_s7 = scalar_lea.vmem %s336_s12, 512  ;;  %s363_s25 = int_to_ptr.vmem [resolvable:$true] %s362_s25 }
  0x76   : > { %p11586_p8 = scmp.ne.s32.totalorder %s336_s12, %s11585_s7  ;;  %p11593_p1 = scmp.lt.s32.totalorder %s336_s12, %s336_s12 }
  0x77   : > { %p11594_p3 = scmp.lt.s32.totalorder %s11585_s7, %s11585_s7 }
  0x78   : > { %p11588_p11 = pnand %p11586_p8, %p11885_p7 }
  0x79   : > { %p11595_p10 = por %p11594_p3, %p11593_p1 }
  0x7a   : > { %p11589_p12 = pneg %p11588_p11 }
  0x7c   : > { %p11596_p4 = pnand %p11595_p10, %p11589_p12 }
  0x7e   : > { %11599 = shalt.err (!%p11596_p4)
}
  0x7f   : > { %10485 = dma.hbm_to_vmem [thread:$0]  (!%p13120_p0), %s13085_s2, 512, %s336_s12, [#allocation6], %s13119_s28, %s13119_s28, %s13118_s21  }
  0x80   : > { %s11611_s15 = scalar_lea.vmem %s363_s25, 64  ;;  %p11619_p8 = scmp.lt.s32.totalorder %s363_s25, %s363_s25 }
  0x81   : > { %p11612_p6 = scmp.ne.s32.totalorder %s363_s25, %s11611_s15  ;;  %p11620_p11 = scmp.lt.s32.totalorder %s11611_s15, %s11611_s15 }
  0x83   : > { %p11614_p2 = pnand %p11612_p6, %p11885_p7  ;;  %p11621_p12 = por %p11620_p11, %p11619_p8 }
  0x85   : > { %p11615_p13 = pneg %p11614_p2 }
  0x87   : > { %p11622_p1 = pnand %p11621_p12, %p11615_p13 }
  0x89   : > { %11625 = shalt.err (!%p11622_p1)
}
  0x8a   : > { %10491 = dma.hbm_to_vmem [thread:$0]  (!%p13120_p0), %s13087_s4, 64, %s363_s25, [#allocation9]  }
  0x8b   : > { %s11775_s16 = smov [#allocation13]   ;;  %s11776_s28 = smov [#allocation16]  }
  0x8c   : > { %s386_s21 = sshll.u32 %s11775_s16, 4  ;;  %s408_s12 = sshll.u32 %s11776_s28, 4  ;;  %s387_s21 = int_to_ptr.vmem [resolvable:$true] %s386_s21  ;;  %s409_s12 = int_to_ptr.vmem [resolvable:$true] %s408_s12 }
  0x8d   : > { %s11637_s7 = scalar_lea.vmem %s387_s21, 256  ;;  %p11645_p6 = scmp.lt.s32.totalorder %s387_s21, %s387_s21 }
  0x8e   : > { %p11638_p3 = scmp.ne.s32.totalorder %s387_s21, %s11637_s7  ;;  %p11646_p2 = scmp.lt.s32.totalorder %s11637_s7, %s11637_s7 }
  0x90   : > { %p11640_p10 = pnand %p11638_p3, %p11885_p7  ;;  %p11647_p13 = por %p11646_p2, %p11645_p6 }
  0x92   : > { %p11641_p4 = pneg %p11640_p10 }
  0x94   : > { %p11648_p8 = pnand %p11647_p13, %p11641_p4 }
  0x96   : > { %11651 = shalt.err (!%p11648_p8)
}
  0x97   : > { %10497 = dma.hbm_to_vmem [thread:$0]  (!%p13120_p0), %s13089_s6, 256, %s387_s21, [#allocation12]  }
  0x98   : > { %s13121_s25 = sand.u32 1, %s11756_s19   ;;  %s11663_s26 = scalar_lea.vmem %s409_s12, 256 }
  0x99   : > { %s9346_s15 = sshll.u32 %s13121_s25, 2  ;;  %p11664_p11 = scmp.ne.s32.totalorder %s409_s12, %s11663_s26 }
  0x9a   : > { %p11671_p3 = scmp.lt.s32.totalorder %s409_s12, %s409_s12  ;;  %p11672_p10 = scmp.lt.s32.totalorder %s11663_s26, %s11663_s26 }
  0x9b   : > { %p11666_p12 = pnand %p11664_p11, %p11885_p7 }
  0x9c   : > { %p11673_p4 = por %p11672_p10, %p11671_p3 }
  0x9d   : > { %p11667_p1 = pneg %p11666_p12 }
  0x9f   : > { %p11674_p6 = pnand %p11673_p4, %p11667_p1 }
  0xa1   : > { %11677 = shalt.err (!%p11674_p6)
}
  0xa2   : > { %10503 = dma.hbm_to_vmem [thread:$0]  (!%p13120_p0), %s13091_s8, 256, %s409_s12, [#allocation15]  }
  0xa3   : > { %s10427_s21 = sshll.u32 %s11760_s20, 6  ;;  %s444_s3 = scalar_lea.vmem [#allocation19], %s9346_s15 }
  0xa4   : > { %s450_s30 = scalar_lea.hbm %s13093_s10, %s10427_s21  ;;  %s452_s17 = sshll.u32 %s444_s3, 4  ;;  %s453_s17 = int_to_ptr.vmem [resolvable:$true] %s452_s17 }
  0xa5   : > { %s11678_s25 = scalar_lea.hbm %s450_s30, 64  ;;  %s11683_s22 = scalar_lea.hbm %s13093_s10, 128 }
  0xa6   : > { %p11679_p7 = scmp.ne.s32.totalorder %s450_s30, %s11678_s25  ;;  %p11684_p0 = scmp.lt.s32.totalorder %s450_s30, %s13093_s10 }
  0xa7   : > { %p11685_p8 = scmp.lt.s32.totalorder %s11683_s22, %s11678_s25 }
  0xa8   : > { %p11681_p2 = pnand %p11679_p7, %p11522_p9 }
  0xa9   : > { %p11686_p11 = por %p11685_p8, %p11684_p0 }
  0xaa   : > { %p11682_p13 = pneg %p11681_p2 }
  0xac   : > { %p11687_p12 = pnand %p11686_p11, %p11682_p13 }
  0xae   : > { %11690 = shalt.err (!%p11687_p12)
}
  0xaf   : > { %s11691_s20 = scalar_lea.vmem %s453_s17, 64  ;;  %s11777_s15 = smov [#allocation19]  }
  0xb0   : > { %p11692_p1 = scmp.ne.s32.totalorder %s453_s17, %s11691_s20  ;;  %s11696_s21 = sshll.u32 %s11777_s15, 4  ;;  %s11697_s21 = int_to_ptr.vmem [resolvable:$false] %s11696_s21 }
  0xb1   : > { %s11698_s28 = scalar_lea.vmem %s11697_s21, 128  ;;  %p11699_p4 = scmp.lt.s32.totalorder %s453_s17, %s11697_s21 }
  0xb2   : > { %p11694_p3 = pnand %p11692_p1, %p11522_p9  ;;  %p11700_p6 = scmp.lt.s32.totalorder %s11698_s28, %s11691_s20 }
  0xb4   : > { %p11695_p10 = pneg %p11694_p3  ;;  %p11701_p7 = por %p11700_p6, %p11699_p4 }
  0xb6   : > { %p11702_p2 = pnand %p11701_p7, %p11695_p10 }
  0xb8   : > { %11705 = shalt.err (!%p11702_p2)
}
  0xb9   : > { %10510 = dma.hbm_to_vmem [thread:$0]  (!%p11963_p5), %s450_s30, 64, %s453_s17, %s11969_s5  }
  0xba   : > { %p13122_p13 = scmp.ne.s32.totalorder %s13109_s24, 0 }
  0xbb   : > { %p13123_p0 = scmp.eq.s32.totalorder (!%p13122_p13), %s11861_s23, 0 }
  0xbc   : > { %461 = sbr.rel (%p13122_p13) target bundleno = 1884 (0x75c), region = 64 }
  0xc1   : > { %11723 = dma.done.wait (%p13123_p0), [#allocation4], 128   ;;  %p13124_p9 = pmov %p13123_p0 }
  0xc2   : > { %p13125_p8 = pmov %p13123_p0 }
  0xc3   : > { %11725 = vsyncadd (%p13124_p9), [#allocation4], 4294967168 }
  0xc4   : > { %11727 = dma.done.wait (%p13125_p8), [#allocation6], 640   ;;  %p13126_p11 = pmov %p13123_p0 }
  0xc5   : > { %p13127_p12 = pmov %p13123_p0 }
  0xc6   : > { %11729 = vsyncadd (%p13126_p11), [#allocation6], 4294966656 }
  0xc7   : > { %11731 = dma.done.wait (%p13127_p12), [#allocation9], 576   ;;  %p13128_p5 = pmov %p13123_p0 }
  0xc8   : > { %p13129_p1 = pmov %p13123_p0 }
  0xc9   : > { %11733 = vsyncadd (%p13128_p5), [#allocation9], 4294966720 }
  0xca   : > { %11735 = dma.done.wait (%p13129_p1), [#allocation12], 65792   ;;  %p13130_p3 = pmov %p13123_p0 }
  0xcb   : > { %p13131_p10 = pmov %p13123_p0 }
  0xcc   : > { %11737 = vsyncadd (%p13130_p3), [#allocation12], 4294901504 }
  0xcd   : > { %11739 = dma.done.wait (%p13131_p10), [#allocation15], 512   ;;  %p13132_p4 = pmov %p13123_p0 }
  0xce   : > { %s499_s1 = sand.u32 1, %s11861_s23   ;;  %s501_s5 = sand.u32 1, %s11752_s18  }
  0xcf   : > { %11741 = vsyncadd (%p13132_p4), [#allocation15], 4294966784  ;;  %s9359_s24 = sshll.u32 %s501_s5, 12  ;;  %s500_s7 = scalar_lea.sflag [#allocation18], %s499_s1 }
  0xd0   : > { %s12082_s30 = scalar_lea.vmem [#allocation17], %s9359_s24  ;;  %p13133_p6 = scmp.ne.s32.totalorder %s13116_s14, 0 }
  0xd2   : > { %11743 = dma.done.wait (%p13133_p6), %s500_s7, 65600  }
  0xd3   : > { %11745 = vsyncadd (%p13133_p6), %s500_s7, 4294901696  ;;  %s12088_s3 = sshll.u32 %s501_s5, 2  ;;  %s9361_s17 = sshll.u32 %s11861_s23, 2 }
  0xd4   : > { %p559_p7 = scmp.lt.s32.totalorder %s9361_s17, 7  ;;  %s512_s16 = scalar_lea.vmem [#allocation19], %s12088_s3 }
  0xd5   : > { %p13134_p2 = scmp.ne.s32.totalorder %s11861_s23, 0 }
  0xd6   : > { %s13140_s17 = smov (!%p559_p7, %s9361_s17), 7 }
  0xd7   : > { %s9362_s25 = sshll.u32 %s13140_s17, 3  ;;  %568 = sbr.rel (%p13134_p2) target bundleno = 1157 (0x485), region = 112 }
  0xd8   : > { %s12094_s22 = scalar_lea.vmem %s13094_s11, %s9362_s25 }
  0xdc   : > { %v10578_v0 = vld [vmem:[#allocation8 + $0x4] ss:$16 sps:$4 sm:$0xff]   ;;  %v10580_v1 = vld [vmem:[#allocation8 + $0xc] ss:$16 sps:$4 sm:$0xff]   ;;  %v11778_v2 = vmov 0   ;;  %vm601_vm0 = vcmask 130048  }
  0xdd   : > { %637 = vmatprep.mubr.bf16.mxu0 %v11778_v2  ;;  %678 = vmatprep.mubr.bf16.mxu1 %v11778_v2  ;;  %v10582_v3 = vld [vmem:[#allocation8] ss:$16 sps:$4 sm:$0xff]   ;;  %v10583_v4 = vld [vmem:[#allocation8 + $0x8] ss:$16 sps:$4 sm:$0xff]   ;;  %v10586_v8 = vld [vmem:[#allocation7 + $0x4] ss:$16 sps:$4 sm:$0xff]  }
  0xde   : > { %619 = vmatprep.subr.bf16.mxu0 %v10578_v0  ;;  %v575_v5 = vld [vmem:[#allocation5] sm:$0xff]  ;;  %660 = vmatprep.subr.bf16.mxu1 %v10580_v1  ;;  %v10584_v7 = vld [vmem:[#allocation7] ss:$16 sps:$4 sm:$0xff]   ;;  %v938_v11 = vld [vmem:[#allocation11 + $0x380] sm:$0xff] }
  0xdf   : > { %v576_v6 = vpack.c.bf16 %v575_v5, %v575_v5  ;;  %620 = vmatpush1.bf16.msra.mxu0 %v10582_v3  ;;  %661 = vmatpush1.bf16.msra.mxu1 %v10583_v4  ;;  %v10587_v9 = vld [vmem:[#allocation7 + $0x8] ss:$16 sps:$4 sm:$0xff]   ;;  %v10589_v10 = vld [vmem:[#allocation7 + $0xc] ss:$16 sps:$4 sm:$0xff]   ;;  %v569_v16 = vld [vmem:[#allocation3] sm:$0xff] }
  0xe0   : > { %724 = vmatprep.subr.bf16.mxu0 %v10586_v8  ;;  %v946_v12 = vld [vmem:[#allocation11 + $0x3c0] sm:$0xff]  ;;  %765 = vmatprep.subr.bf16.mxu1 %v10589_v10  ;;  %v570_v22 = vpack.c.bf16 %v569_v16, %v569_v16 }
  0xe1   : > { %v1194_v13 = vld [vmem:[#allocation11 + $0xb80] sm:$0xff]  ;;  %v9489_v14 = vcombine.high %v938_v11, %v946_v12  ;;  %v9488_v23 = vcombine.low %v938_v11, %v946_v12 }
  0xe2   : > { %9368 = vmatmul.mubr.msk.bf16.vlgmr.msra.gmra.mxu0 %vm601_vm0, %v576_v6  ;;  %9369 = vmatmul.mubr.msk.bf16.vlgmr.msra.gmra.mxu1 %vm601_vm0, %v576_v6  ;;  %v1202_v15 = vld [vmem:[#allocation11 + $0xbc0] sm:$0xff] }
  0xe3   : > { %725 = vmatpush1.bf16.msra.mxu0 %v10584_v7  ;;  %v9745_v17 = vcombine.high %v1194_v13, %v1202_v15  ;;  %766 = vmatpush1.bf16.msra.mxu1 %v10587_v9  ;;  %v922_v18 = vld [vmem:[#allocation11 + $0x300] sm:$0xff]  ;;  %v9744_v24 = vcombine.low %v1194_v13, %v1202_v15 }
  0xe4   : > { %742 = vmatprep.mubr.bf16.mxu0 %v11778_v2  ;;  %783 = vmatprep.mubr.bf16.mxu1 %v11778_v2  ;;  %v930_v19 = vld [vmem:[#allocation11 + $0x340] sm:$0xff] }
  0xe5   : > { %3982 = vmatprep.subr.bf16.mxu0 %v9489_v14  ;;  %v1178_v20 = vld [vmem:[#allocation11 + $0xb00] sm:$0xff]  ;;  %4023 = vmatprep.subr.bf16.mxu1 %v9745_v17  ;;  %v9473_v25 = vcombine.high %v922_v18, %v930_v19  ;;  %v9472_v31 = vcombine.low %v922_v18, %v930_v19 }
  0xe6   : > { %v1186_v21 = vld [vmem:[#allocation11 + $0xb40] sm:$0xff] }
  0xe7   : > { %v9729_v26 = vcombine.high %v1178_v20, %v1186_v21  ;;  %v906_v27 = vld [vmem:[#allocation11 + $0x280] sm:$0xff]  ;;  %v9728_v32 = vcombine.low %v1178_v20, %v1186_v21 }
  0xe8   : > { %v914_v28 = vld [vmem:[#allocation11 + $0x2c0] sm:$0xff] }
  0xe9   : > { %v1162_v29 = vld [vmem:[#allocation11 + $0xa80] sm:$0xff]  ;;  %v9457_v33 = vcombine.high %v906_v27, %v914_v28  ;;  %v9456_v39 = vcombine.low %v906_v27, %v914_v28 }
  0xea   : > { %v1170_v30 = vld [vmem:[#allocation11 + $0xac0] sm:$0xff]  ;;  %9374 = vmatmul.mubr.msk.bf16.vlgmr.msra.gmra.mxu0 %vm601_vm0, %v570_v22  ;;  %9375 = vmatmul.mubr.msk.bf16.vlgmr.msra.gmra.mxu1 %vm601_vm0, %v570_v22 }
  0xeb   : > { %3983 = vmatpush1.bf16.msra.mxu0 %v9488_v23  ;;  %4024 = vmatpush1.bf16.msra.mxu1 %v9744_v24  ;;  %v9713_v34 = vcombine.high %v1162_v29, %v1170_v30  ;;  %v890_v35 = vld [vmem:[#allocation11 + $0x200] sm:$0xff]  ;;  %v9712_v40 = vcombine.low %v1162_v29, %v1170_v30 }
  0xec   : > { %3984 = vmatprep.subr.bf16.mxu0 %v9473_v25  ;;  %4025 = vmatprep.subr.bf16.mxu1 %v9729_v26  ;;  %v898_v36 = vld [vmem:[#allocation11 + $0x240] sm:$0xff] }
  0xed   : > { %v1146_v37 = vld [vmem:[#allocation11 + $0xa00] sm:$0xff]  ;;  %v9441_v41 = vcombine.high %v890_v35, %v898_v36  ;;  %v9440_v47 = vcombine.low %v890_v35, %v898_v36 }
  0xee   : > { %v1154_v38 = vld [vmem:[#allocation11 + $0xa40] sm:$0xff] }
  0xef   : > { %3985 = vmatpush1.bf16.msra.mxu0 %v9472_v31  ;;  %4026 = vmatpush1.bf16.msra.mxu1 %v9728_v32  ;;  %v9697_v42 = vcombine.high %v1146_v37, %v1154_v38  ;;  %v874_v43 = vld [vmem:[#allocation11 + $0x180] sm:$0xff]  ;;  %v9696_v48 = vcombine.low %v1146_v37, %v1154_v38 }
  0xf0   : > { %3986 = vmatprep.subr.bf16.mxu0 %v9457_v33  ;;  %4027 = vmatprep.subr.bf16.mxu1 %v9713_v34  ;;  %v882_v44 = vld [vmem:[#allocation11 + $0x1c0] sm:$0xff] }
  0xf1   : > { %v1130_v45 = vld [vmem:[#allocation11 + $0x980] sm:$0xff]  ;;  %v9425_v49 = vcombine.high %v874_v43, %v882_v44  ;;  %v9424_v55 = vcombine.low %v874_v43, %v882_v44 }
  0xf2   : > { %v1138_v46 = vld [vmem:[#allocation11 + $0x9c0] sm:$0xff] }
  0xf3   : > { %3987 = vmatpush1.bf16.msra.mxu0 %v9456_v39  ;;  %4028 = vmatpush1.bf16.msra.mxu1 %v9712_v40  ;;  %v9681_v50 = vcombine.high %v1130_v45, %v1138_v46  ;;  %v858_v51 = vld [vmem:[#allocation11 + $0x100] sm:$0xff]  ;;  %v9680_v56 = vcombine.low %v1130_v45, %v1138_v46 }
  0xf4   : > { %3988 = vmatprep.subr.bf16.mxu0 %v9441_v41  ;;  %4029 = vmatprep.subr.bf16.mxu1 %v9697_v42  ;;  %v866_v52 = vld [vmem:[#allocation11 + $0x140] sm:$0xff] }
  0xf5   : > { %v1114_v53 = vld [vmem:[#allocation11 + $0x900] sm:$0xff]  ;;  %v9409_v57 = vcombine.high %v858_v51, %v866_v52  ;;  %v9408_v63 = vcombine.low %v858_v51, %v866_v52 }
  0xf6   : > { %v1122_v54 = vld [vmem:[#allocation11 + $0x940] sm:$0xff] }
  0xf7   : > { %3989 = vmatpush1.bf16.msra.mxu0 %v9440_v47  ;;  %4030 = vmatpush1.bf16.msra.mxu1 %v9696_v48  ;;  %v9665_v58 = vcombine.high %v1114_v53, %v1122_v54  ;;  %v842_v59 = vld [vmem:[#allocation11 + $0x80] sm:$0xff]  ;;  %v9664_v0 = vcombine.low %v1114_v53, %v1122_v54 }
  0xf8   : > { %3990 = vmatprep.subr.bf16.mxu0 %v9425_v49  ;;  %4031 = vmatprep.subr.bf16.mxu1 %v9681_v50  ;;  %v850_v60 = vld [vmem:[#allocation11 + $0xc0] sm:$0xff] }
  0xf9   : > { %v1098_v61 = vld [vmem:[#allocation11 + $0x880] sm:$0xff]  ;;  %v9393_v1 = vcombine.high %v842_v59, %v850_v60  ;;  %v9392_v7 = vcombine.low %v842_v59, %v850_v60 }
  0xfa   : > { %v1106_v62 = vld [vmem:[#allocation11 + $0x8c0] sm:$0xff] }
  0xfb   : > { %3991 = vmatpush1.bf16.msra.mxu0 %v9424_v55  ;;  %4032 = vmatpush1.bf16.msra.mxu1 %v9680_v56  ;;  %v9649_v2 = vcombine.high %v1098_v61, %v1106_v62  ;;  %v826_v3 = vld [vmem:[#allocation11] sm:$0xff]  ;;  %v9648_v8 = vcombine.low %v1098_v61, %v1106_v62 }
  0xfc   : > { %3992 = vmatprep.subr.bf16.mxu0 %v9409_v57  ;;  %4033 = vmatprep.subr.bf16.mxu1 %v9665_v58  ;;  %v834_v4 = vld [vmem:[#allocation11 + $0x40] sm:$0xff] }
  0xfd   : > { %v1082_v5 = vld [vmem:[#allocation11 + $0x800] sm:$0xff]  ;;  %v9377_v9 = vcombine.high %v826_v3, %v834_v4  ;;  %v9376_v15 = vcombine.low %v826_v3, %v834_v4 }
  0xfe   : > { %v1090_v6 = vld [vmem:[#allocation11 + $0x840] sm:$0xff] }
  0xff   : > { %3993 = vmatpush1.bf16.msra.mxu0 %v9408_v63  ;;  %4034 = vmatpush1.bf16.msra.mxu1 %v9664_v0  ;;  %v9633_v10 = vcombine.high %v1082_v5, %v1090_v6  ;;  %v1066_v11 = vld [vmem:[#allocation11 + $0x780] sm:$0xff]  ;;  %v9632_v16 = vcombine.low %v1082_v5, %v1090_v6 }
 0x100   : > { %3994 = vmatprep.subr.bf16.mxu0 %v9393_v1  ;;  %4035 = vmatprep.subr.bf16.mxu1 %v9649_v2  ;;  %v1074_v12 = vld [vmem:[#allocation11 + $0x7c0] sm:$0xff] }
 0x101   : > { %v1322_v13 = vld [vmem:[#allocation11 + $0xf80] sm:$0xff]  ;;  %v9617_v17 = vcombine.high %v1066_v11, %v1074_v12  ;;  %v9616_v23 = vcombine.low %v1066_v11, %v1074_v12 }
 0x102   : > { %v1330_v14 = vld [vmem:[#allocation11 + $0xfc0] sm:$0xff] }
 0x103   : > { %3995 = vmatpush1.bf16.msra.mxu0 %v9392_v7  ;;  %4036 = vmatpush1.bf16.msra.mxu1 %v9648_v8  ;;  %v9873_v18 = vcombine.high %v1322_v13, %v1330_v14  ;;  %v1050_v19 = vld [vmem:[#allocation11 + $0x700] sm:$0xff]  ;;  %v9872_v24 = vcombine.low %v1322_v13, %v1330_v14  ;;  %v12103_v13 = vld [vmem:[#allocation11 + $0x388] sm:$0xff] }
 0x104   : > { %3996 = vmatprep.subr.bf16.mxu0 %v9377_v9  ;;  %4037 = vmatprep.subr.bf16.mxu1 %v9633_v10  ;;  %v1058_v20 = vld [vmem:[#allocation11 + $0x740] sm:$0xff]  ;;  %v12105_v14 = vld [vmem:[#allocation11 + $0x3c8] sm:$0xff] }
 0x105   : > { %v1306_v21 = vld [vmem:[#allocation11 + $0xf00] sm:$0xff]  ;;  %v9601_v25 = vcombine.high %v1050_v19, %v1058_v20  ;;  %v9600_v31 = vcombine.low %v1050_v19, %v1058_v20 }
 0x106   : > { %v1314_v22 = vld [vmem:[#allocation11 + $0xf40] sm:$0xff] }
 0x107   : > { %3997 = vmatpush1.bf16.msra.mxu0 %v9376_v15  ;;  %4038 = vmatpush1.bf16.msra.mxu1 %v9632_v16  ;;  %v9857_v26 = vcombine.high %v1306_v21, %v1314_v22  ;;  %v1034_v27 = vld [vmem:[#allocation11 + $0x680] sm:$0xff]  ;;  %v9856_v32 = vcombine.low %v1306_v21, %v1314_v22  ;;  %v12107_v15 = vld [vmem:[#allocation11 + $0xb88] sm:$0xff]  ;;  %v9491_v16 = vcombine.high %v12103_v13, %v12105_v14  ;;  %v794_v21 = vlaneseq }
 0x108   : > { %3998 = vmatprep.subr.bf16.mxu0 %v9617_v17  ;;  %4039 = vmatprep.subr.bf16.mxu1 %v9873_v18  ;;  %v1042_v28 = vld [vmem:[#allocation11 + $0x6c0] sm:$0xff]  ;;  %v12111_v17 = vld [vmem:[#allocation11 + $0xbc8] sm:$0xff]  ;;  %v9490_v18 = vcombine.low %v12103_v13, %v12105_v14 }
 0x109   : > { %v1290_v29 = vld [vmem:[#allocation11 + $0xe80] sm:$0xff]  ;;  %v9585_v33 = vcombine.high %v1034_v27, %v1042_v28  ;;  %v9584_v39 = vcombine.low %v1034_v27, %v1042_v28  ;;  %v9746_v19 = vcombine.low %v12107_v15, %v12111_v17  ;;  %v9747_v20 = vcombine.high %v12107_v15, %v12111_v17  ;;  %v891_v14 = vld [vmem:[#allocation11 + $0x208] sm:$0xff] }
 0x10a   : > { %v1298_v30 = vld [vmem:[#allocation11 + $0xec0] sm:$0xff]  ;;  %v12119_v22 = vshrl.u32 %v794_v21, 7  ;;  %v899_v15 = vld [vmem:[#allocation11 + $0x248] sm:$0xff] }
 0x10b   : > { %3999 = vmatpush2.bf16.msra.mxu0 %v9616_v23  ;;  %4040 = vmatpush2.bf16.msra.mxu1 %v9872_v24  ;;  %v9841_v34 = vcombine.high %v1290_v29, %v1298_v30  ;;  %v1018_v35 = vld [vmem:[#allocation11 + $0x600] sm:$0xff]  ;;  %v9840_v40 = vcombine.low %v1290_v29, %v1298_v30  ;;  %v1155_v17 = vld [vmem:[#allocation11 + $0xa48] sm:$0xff] }
 0x10c   : > { %4000 = vmatprep.subr.bf16.mxu0 %v9601_v25  ;;  %4041 = vmatprep.subr.bf16.mxu1 %v9857_v26  ;;  %v1026_v36 = vld [vmem:[#allocation11 + $0x640] sm:$0xff]  ;;  %v12122_v27 = vsub.s32 0, %v12119_v22  ;;  %v12125_v28 = vsub.s32 2, %v12119_v22 }
 0x10d   : > { %v1274_v37 = vld [vmem:[#allocation11 + $0xe00] sm:$0xff]  ;;  %v9569_v41 = vcombine.high %v1018_v35, %v1026_v36  ;;  %v9568_v43 = vcombine.low %v1018_v35, %v1026_v36 }
 0x10e   : > { %v1282_v38 = vld [vmem:[#allocation11 + $0xe40] sm:$0xff] }
 0x10f   : > { %4001 = vmatpush2.bf16.msra.mxu0 %v9600_v31  ;;  %4042 = vmatpush2.bf16.msra.mxu1 %v9856_v32  ;;  %v9825_v42 = vcombine.high %v1274_v37, %v1282_v38  ;;  %v9824_v44 = vcombine.low %v1274_v37, %v1282_v38  ;;  %v1002_v45 = vld [vmem:[#allocation11 + $0x580] sm:$0xff]  ;;  %v792_v31 = vld [vmem:[#allocation10] sm:$0xf]  ;;  %v12128_v32 = vsub.s32 1, %v12119_v22 }
 0x110   : > { %4002 = vmatprep.subr.bf16.mxu0 %v9585_v33  ;;  %4043 = vmatprep.subr.bf16.mxu1 %v9841_v34  ;;  %v1010_v46 = vld [vmem:[#allocation11 + $0x5c0] sm:$0xff]  ;;  %v12131_v33 = vsub.s32 3, %v12119_v22  ;;  %v797_v36 = vrot.slane %v792_v31, %v12122_v27  ;;  %v805_v37 = vrot.slane %v792_v31, %v12125_v28 }
 0x111   : > { %v1258_v47 = vld [vmem:[#allocation11 + $0xd80] sm:$0xff]  ;;  %v9553_v48 = vcombine.high %v1002_v45, %v1010_v46  ;;  %v9552_v50 = vcombine.low %v1002_v45, %v1010_v46 }
 0x112   : > { %v1266_v49 = vld [vmem:[#allocation11 + $0xdc0] sm:$0xff] }
 0x113   : > { %4003 = vmatpush2.bf16.msra.mxu0 %v9584_v39  ;;  %4044 = vmatpush2.bf16.msra.mxu1 %v9840_v40  ;;  %v9808_v51 = vcombine.low %v1258_v47, %v1266_v49  ;;  %v9809_v52 = vcombine.high %v1258_v47, %v1266_v49  ;;  %v986_v53 = vld [vmem:[#allocation11 + $0x500] sm:$0xff] }
 0x114   : > { %4004 = vmatprep.subr.bf16.mxu0 %v9569_v41  ;;  %4045 = vmatprep.subr.bf16.mxu1 %v9825_v42  ;;  %v994_v54 = vld [vmem:[#allocation11 + $0x540] sm:$0xff]  ;;  %v801_v42 = vrot.slane %v792_v31, %v12128_v32 }
 0x115   : > { %v1242_v55 = vld [vmem:[#allocation11 + $0xd00] sm:$0xff]  ;;  %v9537_v56 = vcombine.high %v986_v53, %v994_v54  ;;  %v9536_v58 = vcombine.low %v986_v53, %v994_v54 }
 0x116   : > { %v1250_v57 = vld [vmem:[#allocation11 + $0xd40] sm:$0xff] }
 0x117   : > { %4005 = vmatpush2.bf16.msra.mxu0 %v9568_v43  ;;  %4046 = vmatpush2.bf16.msra.mxu1 %v9824_v44  ;;  %v9792_v59 = vcombine.low %v1242_v55, %v1250_v57  ;;  %v9793_v60 = vcombine.high %v1242_v55, %v1250_v57  ;;  %v970_v61 = vld [vmem:[#allocation11 + $0x480] sm:$0xff]  ;;  %v809_v43 = vrot.slane %v792_v31, %v12131_v33 }
 0x118   : > { %4006 = vmatprep.subr.bf16.mxu0 %v9553_v48  ;;  %4047 = vmatprep.subr.bf16.mxu1 %v9809_v52  ;;  %v978_v62 = vld [vmem:[#allocation11 + $0x4c0] sm:$0xff] }
 0x119   : > { %v1226_v63 = vld [vmem:[#allocation11 + $0xc80] sm:$0xff]  ;;  %v9520_v1 = vcombine.low %v970_v61, %v978_v62  ;;  %v9521_v2 = vcombine.high %v970_v61, %v978_v62  ;;  %v931_v61 = vld [vmem:[#allocation11 + $0x348] sm:$0xff] }
 0x11a   : > { %v1234_v0 = vld [vmem:[#allocation11 + $0xcc0] sm:$0xff]  ;;  %v1179_v62 = vld [vmem:[#allocation11 + $0xb08] sm:$0xff] }
 0x11b   : > { %4007 = vmatpush2.bf16.msra.mxu0 %v9552_v50  ;;  %4048 = vmatpush2.bf16.msra.mxu1 %v9808_v51  ;;  %v9776_v3 = vcombine.low %v1226_v63, %v1234_v0  ;;  %v9777_v4 = vcombine.high %v1226_v63, %v1234_v0  ;;  %v954_v5 = vld [vmem:[#allocation11 + $0x400] sm:$0xff]  ;;  %v1187_v63 = vld [vmem:[#allocation11 + $0xb48] sm:$0xff] }
 0x11c   : > { %4008 = vmatprep.subr.bf16.mxu0 %v9537_v56  ;;  %4049 = vmatprep.subr.bf16.mxu1 %v9793_v60  ;;  %v962_v6 = vld [vmem:[#allocation11 + $0x440] sm:$0xff]  ;;  %v923_v60 = vld [vmem:[#allocation11 + $0x308] sm:$0xff] }
 0x11d   : > { %v1210_v7 = vld [vmem:[#allocation11 + $0xc00] sm:$0xff]  ;;  %v9505_v8 = vcombine.high %v954_v5, %v962_v6  ;;  %v9504_v10 = vcombine.low %v954_v5, %v962_v6  ;;  %v9475_v5 = vcombine.high %v923_v60, %v931_v61  ;;  %v9731_v6 = vcombine.high %v1179_v62, %v1187_v63 }
 0x11e   : > { %v1218_v9 = vld [vmem:[#allocation11 + $0xc40] sm:$0xff] }
 0x11f   : > { %4009 = vmatpush2.bf16.msra.mxu0 %v9536_v58  ;;  %4050 = vmatpush2.bf16.msra.mxu1 %v9792_v59  ;;  %v9760_v11 = vcombine.low %v1210_v7, %v1218_v9  ;;  %v9761_v12 = vcombine.high %v1210_v7, %v1218_v9  ;;  %v915_v7 = vld [vmem:[#allocation11 + $0x2c8] sm:$0xff] }
 0x120   : > { %4010 = vmatprep.subr.bf16.mxu0 %v9521_v2  ;;  %4051 = vmatprep.subr.bf16.mxu1 %v9777_v4  ;;  %v907_v4 = vld [vmem:[#allocation11 + $0x288] sm:$0xff] }
 0x121   : > { %v1171_v9 = vld [vmem:[#allocation11 + $0xac8] sm:$0xff] }
 0x123   : > { %4011 = vmatpush2.bf16.msra.mxu0 %v9520_v1  ;;  %4052 = vmatpush2.bf16.msra.mxu1 %v9776_v3 }
 0x124   : > { %4012 = vmatprep.subr.bf16.mxu0 %v9505_v8  ;;  %4053 = vmatprep.subr.bf16.mxu1 %v9761_v12  ;;  %v1163_v8 = vld [vmem:[#allocation11 + $0xa88] sm:$0xff]  ;;  %v9459_v12 = vcombine.high %v907_v4, %v915_v7 }
 0x125   : > { %v9715_v13 = vcombine.high %v1163_v8, %v1171_v9  ;;  %v9714_v21 = vcombine.low %v1163_v8, %v1171_v9  ;;  %v1059_v8 = vld [vmem:[#allocation11 + $0x748] sm:$0xff] }
 0x126   : > { %v1307_v9 = vld [vmem:[#allocation11 + $0xf08] sm:$0xff] }
 0x127   : > { %4013 = vmatpush2.bf16.msra.mxu0 %v9504_v10  ;;  %4054 = vmatpush2.bf16.msra.mxu1 %v9760_v11  ;;  %v9474_v10 = vcombine.low %v923_v60, %v931_v61  ;;  %v9730_v11 = vcombine.low %v1179_v62, %v1187_v63  ;;  %v1075_v60 = vld [vmem:[#allocation11 + $0x7c8] sm:$0xff] }
 0x128   : > { %4064 = vmatprep.subr.bf16.mxu0 %v9491_v16  ;;  %4105 = vmatprep.subr.bf16.mxu1 %v9747_v20  ;;  %v1147_v16 = vld [vmem:[#allocation11 + $0xa08] sm:$0xff]  ;;  %v9458_v20 = vcombine.low %v907_v4, %v915_v7 }
 0x129   : > { %v1323_v61 = vld [vmem:[#allocation11 + $0xf88] sm:$0xff] }
 0x12a   : > { %v1331_v62 = vld [vmem:[#allocation11 + $0xfc8] sm:$0xff] }
 0x12b   : > { %v1051_v7 = vld [vmem:[#allocation11 + $0x708] sm:$0xff] }
 0x1a2   : > { %v639_v23 = vpop.f32.mrf.mxu0  ;;  %v680_v24 = vpop.f32.mrf.mxu1 }
 0x1a4   : > { %v641_v25 = vpop.f32.mrf.mxu0  ;;  %v682_v26 = vpop.f32.mrf.mxu1 }
 0x1a6   : > { %v643_v29 = vpop.f32.mrf.mxu0  ;;  %v684_v30 = vpop.f32.mrf.mxu1 }
 0x1a7   : > { %v9442_v29 = vcombine.low %v891_v14, %v899_v15  ;;  %v9698_v30 = vcombine.low %v1147_v16, %v1155_v17 }
 0x1a8   : > { %v644_v34 = vpop.f32.mrf.mxu0  ;;  %v685_v35 = vpop.f32.mrf.mxu1 }
 0x1a9   : > { %v859_v35 = vld [vmem:[#allocation11 + $0x108] sm:$0xff] }
 0x1aa   : > { %v744_v38 = vpop.f32.mrf.mxu0  ;;  %v785_v39 = vpop.f32.mrf.mxu1 }
 0x1ab   : > { %v745_v40 = vadd.f32 %v744_v38, %v639_v23  ;;  %v786_v41 = vadd.f32 %v785_v39, %v680_v24  ;;  %v875_v23 = vld [vmem:[#allocation11 + $0x188] sm:$0xff] }
 0x1ac   : > { %v746_v44 = vpop.f32.mrf.mxu0  ;;  %v787_v45 = vpop.f32.mrf.mxu1  ;;  %v883_v24 = vld [vmem:[#allocation11 + $0x1c8] sm:$0xff] }
 0x1ad   : > { %v814_v46 = vadd.f32 %v797_v36, %v745_v40  ;;  %v816_v47 = vadd.f32 %v805_v37, %v786_v41  ;;  %v747_v48 = vadd.f32 %v746_v44, %v641_v25  ;;  %v788_v49 = vadd.f32 %v787_v45, %v682_v26  ;;  %v1131_v25 = vld [vmem:[#allocation11 + $0x988] sm:$0xff] }
 0x1ae   : > { %v748_v50 = vpop.f32.mrf.mxu0  ;;  %v789_v51 = vpop.f32.mrf.mxu1  ;;  %v1139_v26 = vld [vmem:[#allocation11 + $0x9c8] sm:$0xff]  ;;  %v9427_v31 = vcombine.high %v875_v23, %v883_v24  ;;  %v9426_v39 = vcombine.low %v875_v23, %v883_v24 }
 0x1af   : > { %v815_v52 = vadd.f32 %v801_v42, %v747_v48  ;;  %v817_v53 = vadd.f32 %v809_v43, %v788_v49  ;;  %v818_v54 = vmax.f32 %v814_v46, 0.0  ;;  %v820_v55 = vmax.f32 %v816_v47, 0.0  ;;  %v867_v36 = vld [vmem:[#allocation11 + $0x148] sm:$0xff] }
 0x1b0   : > { %v749_v56 = vpop.f32.mrf.mxu0  ;;  %v790_v57 = vpop.f32.mrf.mxu1  ;;  %v9683_v34 = vcombine.high %v1131_v25, %v1139_v26  ;;  %v1115_v37 = vld [vmem:[#allocation11 + $0x908] sm:$0xff]  ;;  %v9682_v40 = vcombine.low %v1131_v25, %v1139_v26  ;;  %v9411_v41 = vcombine.high %v859_v35, %v867_v36  ;;  %v9410_v47 = vcombine.low %v859_v35, %v867_v36 }
 0x1b1   : > { %v819_v58 = vmax.f32 %v815_v52, 0.0  ;;  %v821_v59 = vmax.f32 %v817_v53, 0.0  ;;  %v12141_v2 = vpack.c.bf16 %v818_v54, %v818_v54  ;;  %v12143_v3 = vpack.c.bf16 %v820_v55, %v820_v55  ;;  %v1123_v38 = vld [vmem:[#allocation11 + $0x948] sm:$0xff] }
 0x1b2   : > { %v9667_v42 = vcombine.high %v1115_v37, %v1123_v38  ;;  %v843_v43 = vld [vmem:[#allocation11 + $0x88] sm:$0xff]  ;;  %v9666_v48 = vcombine.low %v1115_v37, %v1123_v38 }
 0x1b3   : > { %v12137_v0 = vpack.c.bf16 %v819_v58, %v819_v58  ;;  %v12139_v1 = vpack.c.bf16 %v821_v59, %v821_v59  ;;  %v851_v44 = vld [vmem:[#allocation11 + $0xc8] sm:$0xff] }
 0x1b4   : > { %v1099_v45 = vld [vmem:[#allocation11 + $0x888] sm:$0xff]  ;;  %v9395_v49 = vcombine.high %v843_v43, %v851_v44  ;;  %v9394_v55 = vcombine.low %v843_v43, %v851_v44 }
 0x1b5   : > { %4014 = vmatprep.mubr.bf16.mxu0 %v12137_v0  ;;  %4055 = vmatprep.mubr.bf16.mxu1 %v12139_v1  ;;  %v1107_v46 = vld [vmem:[#allocation11 + $0x8c8] sm:$0xff] }
 0x1b6   : > { %4015 = vmatmul.mubr.bf16.vlgmr.msra.gmra.mxu0 %v12141_v2  ;;  %4056 = vmatmul.mubr.bf16.vlgmr.msra.gmra.mxu1 %v12143_v3  ;;  %v9651_v50 = vcombine.high %v1099_v45, %v1107_v46  ;;  %v827_v51 = vld [vmem:[#allocation11 + $0x8] sm:$0xff]  ;;  %v9650_v56 = vcombine.low %v1099_v45, %v1107_v46 }
 0x1b7   : > { %4065 = vmatpush1.bf16.msra.mxu0 %v9490_v18  ;;  %4106 = vmatpush1.bf16.msra.mxu1 %v9746_v19  ;;  %v9443_v18 = vcombine.high %v891_v14, %v899_v15  ;;  %v9699_v19 = vcombine.high %v1147_v16, %v1155_v17  ;;  %v835_v52 = vld [vmem:[#allocation11 + $0x48] sm:$0xff] }
 0x1b8   : > { %4096 = vmatprep.mubr.bf16.mxu0 %v12137_v0  ;;  %4137 = vmatprep.mubr.bf16.mxu1 %v12139_v1  ;;  %v1083_v53 = vld [vmem:[#allocation11 + $0x808] sm:$0xff]  ;;  %v9379_v57 = vcombine.high %v827_v51, %v835_v52  ;;  %v9378_v63 = vcombine.low %v827_v51, %v835_v52 }
 0x1b9   : > { %4066 = vmatprep.subr.bf16.mxu0 %v9475_v5  ;;  %4107 = vmatprep.subr.bf16.mxu1 %v9731_v6  ;;  %v1091_v54 = vld [vmem:[#allocation11 + $0x848] sm:$0xff]  ;;  %v9875_v6 = vcombine.high %v1323_v61, %v1331_v62 }
 0x1ba   : > { %v9635_v58 = vcombine.high %v1083_v53, %v1091_v54  ;;  %v1067_v59 = vld [vmem:[#allocation11 + $0x788] sm:$0xff]  ;;  %v9634_v4 = vcombine.low %v1083_v53, %v1091_v54 }
 0x1bb   : > { %4067 = vmatpush1.bf16.msra.mxu0 %v9474_v10  ;;  %4108 = vmatpush1.bf16.msra.mxu1 %v9730_v11  ;;  %v9619_v5 = vcombine.high %v1067_v59, %v1075_v60  ;;  %v1315_v10 = vld [vmem:[#allocation11 + $0xf48] sm:$0xff]  ;;  %v9618_v11 = vcombine.low %v1067_v59, %v1075_v60 }
 0x1bc   : > { %4068 = vmatprep.subr.bf16.mxu0 %v9459_v12  ;;  %4109 = vmatprep.subr.bf16.mxu1 %v9715_v13  ;;  %v9874_v12 = vcombine.low %v1323_v61, %v1331_v62  ;;  %v9603_v13 = vcombine.high %v1051_v7, %v1059_v8  ;;  %v9859_v14 = vcombine.high %v1307_v9, %v1315_v10  ;;  %v1035_v15 = vld [vmem:[#allocation11 + $0x688] sm:$0xff] }
 0x1bd   : > { %v1043_v16 = vld [vmem:[#allocation11 + $0x6c8] sm:$0xff] }
 0x1be   : > { %v1291_v17 = vld [vmem:[#allocation11 + $0xe88] sm:$0xff] }
 0x1bf   : > { %4069 = vmatpush1.bf16.msra.mxu0 %v9458_v20  ;;  %4110 = vmatpush1.bf16.msra.mxu1 %v9714_v21  ;;  %v1299_v20 = vld [vmem:[#allocation11 + $0xec8] sm:$0xff]  ;;  %v9602_v21 = vcombine.low %v1051_v7, %v1059_v8  ;;  %v940_v8 = vld [vmem:[#allocation11 + $0x390] sm:$0xff] }
 0x1c0   : > { %4070 = vmatprep.subr.bf16.mxu0 %v9443_v18  ;;  %4111 = vmatprep.subr.bf16.mxu1 %v9699_v19  ;;  %v9858_v18 = vcombine.low %v1307_v9, %v1315_v10  ;;  %v9587_v19 = vcombine.high %v1035_v15, %v1043_v16  ;;  %v9843_v23 = vcombine.high %v1291_v17, %v1299_v20  ;;  %v1019_v24 = vld [vmem:[#allocation11 + $0x608] sm:$0xff]  ;;  %v948_v9 = vld [vmem:[#allocation11 + $0x3d0] sm:$0xff] }
 0x1c1   : > { %v1027_v25 = vld [vmem:[#allocation11 + $0x648] sm:$0xff]  ;;  %v1196_v10 = vld [vmem:[#allocation11 + $0xb90] sm:$0xff] }
 0x1c2   : > { %v1275_v26 = vld [vmem:[#allocation11 + $0xe08] sm:$0xff] }
 0x1c3   : > { %4071 = vmatpush1.bf16.msra.mxu0 %v9442_v29  ;;  %4112 = vmatpush1.bf16.msra.mxu1 %v9698_v30  ;;  %v1283_v29 = vld [vmem:[#allocation11 + $0xe48] sm:$0xff]  ;;  %v9586_v30 = vcombine.low %v1035_v15, %v1043_v16  ;;  %v924_v16 = vld [vmem:[#allocation11 + $0x310] sm:$0xff] }
 0x1c4   : > { %4072 = vmatprep.subr.bf16.mxu0 %v9427_v31  ;;  %4113 = vmatprep.subr.bf16.mxu1 %v9683_v34  ;;  %v9842_v31 = vcombine.low %v1291_v17, %v1299_v20  ;;  %v9571_v34 = vcombine.high %v1019_v24, %v1027_v25  ;;  %v9827_v35 = vcombine.high %v1275_v26, %v1283_v29  ;;  %v1003_v36 = vld [vmem:[#allocation11 + $0x588] sm:$0xff]  ;;  %v932_v17 = vld [vmem:[#allocation11 + $0x350] sm:$0xff] }
 0x1c5   : > { %v1011_v37 = vld [vmem:[#allocation11 + $0x5c8] sm:$0xff]  ;;  %v1180_v20 = vld [vmem:[#allocation11 + $0xb10] sm:$0xff] }
 0x1c6   : > { %v1259_v38 = vld [vmem:[#allocation11 + $0xd88] sm:$0xff] }
 0x1c7   : > { %4073 = vmatpush1.bf16.msra.mxu0 %v9426_v39  ;;  %4114 = vmatpush1.bf16.msra.mxu1 %v9682_v40  ;;  %v1267_v39 = vld [vmem:[#allocation11 + $0xdc8] sm:$0xff]  ;;  %v9570_v40 = vcombine.low %v1019_v24, %v1027_v25  ;;  %v908_v25 = vld [vmem:[#allocation11 + $0x290] sm:$0xff] }
 0x1c8   : > { %4074 = vmatprep.subr.bf16.mxu0 %v9411_v41  ;;  %4115 = vmatprep.subr.bf16.mxu1 %v9667_v42  ;;  %v9826_v41 = vcombine.low %v1275_v26, %v1283_v29  ;;  %v9555_v42 = vcombine.high %v1003_v36, %v1011_v37  ;;  %v9811_v43 = vcombine.high %v1259_v38, %v1267_v39  ;;  %v987_v44 = vld [vmem:[#allocation11 + $0x508] sm:$0xff]  ;;  %v916_v26 = vld [vmem:[#allocation11 + $0x2d0] sm:$0xff] }
 0x1c9   : > { %v995_v45 = vld [vmem:[#allocation11 + $0x548] sm:$0xff]  ;;  %v1164_v29 = vld [vmem:[#allocation11 + $0xa90] sm:$0xff] }
 0x1ca   : > { %v1243_v46 = vld [vmem:[#allocation11 + $0xd08] sm:$0xff] }
 0x1cb   : > { %4075 = vmatpush1.bf16.msra.mxu0 %v9410_v47  ;;  %4116 = vmatpush1.bf16.msra.mxu1 %v9666_v48  ;;  %v1251_v47 = vld [vmem:[#allocation11 + $0xd48] sm:$0xff]  ;;  %v9554_v48 = vcombine.low %v1003_v36, %v1011_v37  ;;  %v892_v37 = vld [vmem:[#allocation11 + $0x210] sm:$0xff] }
 0x1cc   : > { %4076 = vmatprep.subr.bf16.mxu0 %v9395_v49  ;;  %4117 = vmatprep.subr.bf16.mxu1 %v9651_v50  ;;  %v9810_v49 = vcombine.low %v1259_v38, %v1267_v39  ;;  %v9539_v50 = vcombine.high %v987_v44, %v995_v45  ;;  %v9795_v51 = vcombine.high %v1243_v46, %v1251_v47  ;;  %v971_v52 = vld [vmem:[#allocation11 + $0x488] sm:$0xff]  ;;  %v900_v38 = vld [vmem:[#allocation11 + $0x250] sm:$0xff] }
 0x1cd   : > { %v979_v53 = vld [vmem:[#allocation11 + $0x4c8] sm:$0xff]  ;;  %v1148_v39 = vld [vmem:[#allocation11 + $0xa10] sm:$0xff] }
 0x1ce   : > { %v1227_v54 = vld [vmem:[#allocation11 + $0xc88] sm:$0xff] }
 0x1cf   : > { %4077 = vmatpush1.bf16.msra.mxu0 %v9394_v55  ;;  %4118 = vmatpush1.bf16.msra.mxu1 %v9650_v56  ;;  %v1235_v55 = vld [vmem:[#allocation11 + $0xcc8] sm:$0xff]  ;;  %v9538_v56 = vcombine.low %v987_v44, %v995_v45  ;;  %v876_v45 = vld [vmem:[#allocation11 + $0x190] sm:$0xff] }
 0x1d0   : > { %4078 = vmatprep.subr.bf16.mxu0 %v9379_v57  ;;  %4119 = vmatprep.subr.bf16.mxu1 %v9635_v58  ;;  %v9794_v57 = vcombine.low %v1243_v46, %v1251_v47  ;;  %v9523_v58 = vcombine.high %v971_v52, %v979_v53  ;;  %v9779_v59 = vcombine.high %v1227_v54, %v1235_v55  ;;  %v955_v60 = vld [vmem:[#allocation11 + $0x408] sm:$0xff]  ;;  %v884_v46 = vld [vmem:[#allocation11 + $0x1d0] sm:$0xff] }
 0x1d1   : > { %v963_v61 = vld [vmem:[#allocation11 + $0x448] sm:$0xff]  ;;  %v1132_v47 = vld [vmem:[#allocation11 + $0x990] sm:$0xff] }
 0x1d2   : > { %v1211_v62 = vld [vmem:[#allocation11 + $0xc08] sm:$0xff] }
 0x1d3   : > { %4079 = vmatpush1.bf16.msra.mxu0 %v9378_v63  ;;  %4120 = vmatpush1.bf16.msra.mxu1 %v9634_v4  ;;  %v1219_v63 = vld [vmem:[#allocation11 + $0xc48] sm:$0xff]  ;;  %v9522_v4 = vcombine.low %v971_v52, %v979_v53  ;;  %v860_v53 = vld [vmem:[#allocation11 + $0x110] sm:$0xff] }
 0x1d4   : > { %4080 = vmatprep.subr.bf16.mxu0 %v9619_v5  ;;  %4121 = vmatprep.subr.bf16.mxu1 %v9875_v6  ;;  %v9778_v5 = vcombine.low %v1227_v54, %v1235_v55  ;;  %v9507_v6 = vcombine.high %v955_v60, %v963_v61  ;;  %v9763_v7 = vcombine.high %v1211_v62, %v1219_v63  ;;  %v868_v54 = vld [vmem:[#allocation11 + $0x150] sm:$0xff] }
 0x1d5   : > { %v1116_v55 = vld [vmem:[#allocation11 + $0x910] sm:$0xff] }
 0x1d7   : > { %4081 = vmatpush2.bf16.msra.mxu0 %v9618_v11  ;;  %4122 = vmatpush2.bf16.msra.mxu1 %v9874_v12  ;;  %v1204_v11 = vld [vmem:[#allocation11 + $0xbd0] sm:$0xff]  ;;  %v9506_v12 = vcombine.low %v955_v60, %v963_v61 }
 0x1d8   : > { %4082 = vmatprep.subr.bf16.mxu0 %v9603_v13  ;;  %4123 = vmatprep.subr.bf16.mxu1 %v9859_v14  ;;  %v9762_v13 = vcombine.low %v1211_v62, %v1219_v63  ;;  %v9493_v14 = vcombine.high %v940_v8, %v948_v9  ;;  %v9749_v15 = vcombine.high %v1196_v10, %v1204_v11  ;;  %v844_v61 = vld [vmem:[#allocation11 + $0x90] sm:$0xff] }
 0x1d9   : > { %v852_v62 = vld [vmem:[#allocation11 + $0xd0] sm:$0xff] }
 0x1da   : > { %v1100_v63 = vld [vmem:[#allocation11 + $0x890] sm:$0xff] }
 0x1db   : > { %4083 = vmatpush2.bf16.msra.mxu0 %v9602_v21  ;;  %4124 = vmatpush2.bf16.msra.mxu1 %v9858_v18  ;;  %v1188_v21 = vld [vmem:[#allocation11 + $0xb50] sm:$0xff]  ;;  %v9492_v18 = vcombine.low %v940_v8, %v948_v9 }
 0x1dc   : > { %4084 = vmatprep.subr.bf16.mxu0 %v9587_v19  ;;  %4125 = vmatprep.subr.bf16.mxu1 %v9843_v23  ;;  %v9748_v19 = vcombine.low %v1196_v10, %v1204_v11  ;;  %v9477_v23 = vcombine.high %v924_v16, %v932_v17  ;;  %v9733_v24 = vcombine.high %v1180_v20, %v1188_v21  ;;  %v828_v9 = vld [vmem:[#allocation11 + $0x10] sm:$0xff] }
 0x1dd   : > { %v836_v10 = vld [vmem:[#allocation11 + $0x50] sm:$0xff] }
 0x1de   : > { %v1084_v11 = vld [vmem:[#allocation11 + $0x810] sm:$0xff] }
 0x1df   : > { %4085 = vmatpush2.bf16.msra.mxu0 %v9586_v30  ;;  %4126 = vmatpush2.bf16.msra.mxu1 %v9842_v31  ;;  %v1172_v30 = vld [vmem:[#allocation11 + $0xad0] sm:$0xff]  ;;  %v9476_v31 = vcombine.low %v924_v16, %v932_v17 }
 0x1e0   : > { %4086 = vmatprep.subr.bf16.mxu0 %v9571_v34  ;;  %4127 = vmatprep.subr.bf16.mxu1 %v9827_v35  ;;  %v9732_v34 = vcombine.low %v1180_v20, %v1188_v21  ;;  %v9461_v35 = vcombine.high %v908_v25, %v916_v26  ;;  %v9717_v36 = vcombine.high %v1164_v29, %v1172_v30  ;;  %v1068_v17 = vld [vmem:[#allocation11 + $0x790] sm:$0xff] }
 0x1e1   : > { %v1076_v20 = vld [vmem:[#allocation11 + $0x7d0] sm:$0xff] }
 0x1e2   : > { %v1324_v21 = vld [vmem:[#allocation11 + $0xf90] sm:$0xff] }
 0x1e3   : > { %4087 = vmatpush2.bf16.msra.mxu0 %v9570_v40  ;;  %4128 = vmatpush2.bf16.msra.mxu1 %v9826_v41  ;;  %v1156_v40 = vld [vmem:[#allocation11 + $0xa50] sm:$0xff]  ;;  %v9460_v41 = vcombine.low %v908_v25, %v916_v26 }
 0x1e4   : > { %4088 = vmatprep.subr.bf16.mxu0 %v9555_v42  ;;  %4129 = vmatprep.subr.bf16.mxu1 %v9811_v43  ;;  %v9716_v42 = vcombine.low %v1164_v29, %v1172_v30  ;;  %v9445_v43 = vcombine.high %v892_v37, %v900_v38  ;;  %v9701_v44 = vcombine.high %v1148_v39, %v1156_v40  ;;  %v1052_v26 = vld [vmem:[#allocation11 + $0x710] sm:$0xff] }
 0x1e5   : > { %v1060_v29 = vld [vmem:[#allocation11 + $0x750] sm:$0xff] }
 0x1e6   : > { %v1308_v30 = vld [vmem:[#allocation11 + $0xf10] sm:$0xff] }
 0x1e7   : > { %4089 = vmatpush2.bf16.msra.mxu0 %v9554_v48  ;;  %4130 = vmatpush2.bf16.msra.mxu1 %v9810_v49  ;;  %v1140_v48 = vld [vmem:[#allocation11 + $0x9d0] sm:$0xff]  ;;  %v9444_v49 = vcombine.low %v892_v37, %v900_v38 }
 0x1e8   : > { %4090 = vmatprep.subr.bf16.mxu0 %v9539_v50  ;;  %4131 = vmatprep.subr.bf16.mxu1 %v9795_v51  ;;  %v9700_v50 = vcombine.low %v1148_v39, %v1156_v40  ;;  %v9429_v51 = vcombine.high %v876_v45, %v884_v46  ;;  %v9685_v52 = vcombine.high %v1132_v47, %v1140_v48  ;;  %v1036_v38 = vld [vmem:[#allocation11 + $0x690] sm:$0xff] }
 0x1e9   : > { %v1044_v39 = vld [vmem:[#allocation11 + $0x6d0] sm:$0xff] }
 0x1ea   : > { %v1292_v40 = vld [vmem:[#allocation11 + $0xe90] sm:$0xff] }
 0x1eb   : > { %4091 = vmatpush2.bf16.msra.mxu0 %v9538_v56  ;;  %4132 = vmatpush2.bf16.msra.mxu1 %v9794_v57  ;;  %v1124_v56 = vld [vmem:[#allocation11 + $0x950] sm:$0xff]  ;;  %v9428_v57 = vcombine.low %v876_v45, %v884_v46 }
 0x1ec   : > { %4092 = vmatprep.subr.bf16.mxu0 %v9523_v58  ;;  %4133 = vmatprep.subr.bf16.mxu1 %v9779_v59  ;;  %v9684_v58 = vcombine.low %v1132_v47, %v1140_v48  ;;  %v9413_v59 = vcombine.high %v860_v53, %v868_v54  ;;  %v9669_v60 = vcombine.high %v1116_v55, %v1124_v56  ;;  %v1020_v46 = vld [vmem:[#allocation11 + $0x610] sm:$0xff] }
 0x1ed   : > { %v1028_v47 = vld [vmem:[#allocation11 + $0x650] sm:$0xff] }
 0x1ee   : > { %v1276_v48 = vld [vmem:[#allocation11 + $0xe10] sm:$0xff] }
 0x1ef   : > { %4093 = vmatpush2.bf16.msra.mxu0 %v9522_v4  ;;  %4134 = vmatpush2.bf16.msra.mxu1 %v9778_v5  ;;  %v1108_v4 = vld [vmem:[#allocation11 + $0x8d0] sm:$0xff]  ;;  %v9412_v5 = vcombine.low %v860_v53, %v868_v54 }
 0x1f0   : > { %4094 = vmatprep.subr.bf16.mxu0 %v9507_v6  ;;  %4135 = vmatprep.subr.bf16.mxu1 %v9763_v7  ;;  %v9668_v6 = vcombine.low %v1116_v55, %v1124_v56  ;;  %v9397_v7 = vcombine.high %v844_v61, %v852_v62  ;;  %v9653_v8 = vcombine.high %v1100_v63, %v1108_v4  ;;  %v1004_v54 = vld [vmem:[#allocation11 + $0x590] sm:$0xff] }
 0x1f1   : > { %v1012_v55 = vld [vmem:[#allocation11 + $0x5d0] sm:$0xff] }
 0x1f2   : > { %v1260_v56 = vld [vmem:[#allocation11 + $0xd90] sm:$0xff] }
 0x1f3   : > { %4095 = vmatpush2.bf16.msra.mxu0 %v9506_v12  ;;  %4136 = vmatpush2.bf16.msra.mxu1 %v9762_v13  ;;  %v1092_v12 = vld [vmem:[#allocation11 + $0x850] sm:$0xff]  ;;  %v9396_v13 = vcombine.low %v844_v61, %v852_v62 }
 0x1f4   : > { %4146 = vmatprep.subr.bf16.mxu0 %v9493_v14  ;;  %4187 = vmatprep.subr.bf16.mxu1 %v9749_v15  ;;  %v9652_v14 = vcombine.low %v1100_v63, %v1108_v4  ;;  %v9381_v15 = vcombine.high %v828_v9, %v836_v10  ;;  %v9637_v16 = vcombine.high %v1084_v11, %v1092_v12  ;;  %v988_v62 = vld [vmem:[#allocation11 + $0x510] sm:$0xff] }
 0x1f5   : > { %v996_v63 = vld [vmem:[#allocation11 + $0x550] sm:$0xff] }
 0x1f6   : > { %4097 = vmatmul.mubr.bf16.vlgmr.msra.gmra.mxu0 %v12141_v2  ;;  %4138 = vmatmul.mubr.bf16.vlgmr.msra.gmra.mxu1 %v12143_v3  ;;  %v1244_v4 = vld [vmem:[#allocation11 + $0xd10] sm:$0xff] }
 0x1f7   : > { %4147 = vmatpush1.bf16.msra.mxu0 %v9492_v18  ;;  %4178 = vmatprep.mubr.bf16.mxu0 %v12137_v0  ;;  %v1332_v18 = vld [vmem:[#allocation11 + $0xfd0] sm:$0xff] }
 0x1f8   : > { %4188 = vmatpush1.bf16.msra.mxu1 %v9748_v19  ;;  %4219 = vmatprep.mubr.bf16.mxu1 %v12139_v1  ;;  %v9380_v19 = vcombine.low %v828_v9, %v836_v10  ;;  %v9877_v25 = vcombine.high %v1324_v21, %v1332_v18  ;;  %v972_v10 = vld [vmem:[#allocation11 + $0x490] sm:$0xff] }
 0x1f9   : > { %4148 = vmatprep.subr.bf16.mxu0 %v9477_v23  ;;  %4189 = vmatprep.subr.bf16.mxu1 %v9733_v24  ;;  %v9636_v23 = vcombine.low %v1084_v11, %v1092_v12  ;;  %v9621_v24 = vcombine.high %v1068_v17, %v1076_v20  ;;  %v980_v11 = vld [vmem:[#allocation11 + $0x4d0] sm:$0xff] }
 0x1fa   : > { %v1228_v12 = vld [vmem:[#allocation11 + $0xc90] sm:$0xff] }
 0x1fb   : > { %4149 = vmatpush1.bf16.msra.mxu0 %v9476_v31  ;;  %v1316_v31 = vld [vmem:[#allocation11 + $0xf50] sm:$0xff] }
 0x1fc   : > { %4190 = vmatpush1.bf16.msra.mxu1 %v9732_v34  ;;  %4150 = vmatprep.subr.bf16.mxu0 %v9461_v35  ;;  %v9620_v34 = vcombine.low %v1068_v17, %v1076_v20  ;;  %v9876_v35 = vcombine.low %v1324_v21, %v1332_v18  ;;  %v9861_v37 = vcombine.high %v1308_v30, %v1316_v31  ;;  %v956_v20 = vld [vmem:[#allocation11 + $0x410] sm:$0xff] }
 0x1fd   : > { %4191 = vmatprep.subr.bf16.mxu1 %v9717_v36  ;;  %v9605_v36 = vcombine.high %v1052_v26, %v1060_v29  ;;  %v964_v21 = vld [vmem:[#allocation11 + $0x450] sm:$0xff] }
 0x1fe   : > { %v1212_v18 = vld [vmem:[#allocation11 + $0xc10] sm:$0xff] }
 0x1ff   : > { %4151 = vmatpush1.bf16.msra.mxu0 %v9460_v41  ;;  %v1300_v41 = vld [vmem:[#allocation11 + $0xed0] sm:$0xff] }
 0x200   : > { %4192 = vmatpush1.bf16.msra.mxu1 %v9716_v42  ;;  %4152 = vmatprep.subr.bf16.mxu0 %v9445_v43  ;;  %v9604_v42 = vcombine.low %v1052_v26, %v1060_v29  ;;  %v9860_v43 = vcombine.low %v1308_v30, %v1316_v31  ;;  %v9845_v45 = vcombine.high %v1292_v40, %v1300_v41  ;;  %v941_v29 = vld [vmem:[#allocation11 + $0x398] sm:$0xff] }
 0x201   : > { %4193 = vmatprep.subr.bf16.mxu1 %v9701_v44  ;;  %v9589_v44 = vcombine.high %v1036_v38, %v1044_v39  ;;  %v949_v30 = vld [vmem:[#allocation11 + $0x3d8] sm:$0xff] }
 0x202   : > { %v1197_v31 = vld [vmem:[#allocation11 + $0xb98] sm:$0xff] }
 0x203   : > { %4153 = vmatpush1.bf16.msra.mxu0 %v9444_v49  ;;  %v1284_v49 = vld [vmem:[#allocation11 + $0xe50] sm:$0xff] }
 0x204   : > { %4194 = vmatpush1.bf16.msra.mxu1 %v9700_v50  ;;  %4154 = vmatprep.subr.bf16.mxu0 %v9429_v51  ;;  %v9588_v50 = vcombine.low %v1036_v38, %v1044_v39  ;;  %v9844_v51 = vcombine.low %v1292_v40, %v1300_v41  ;;  %v9829_v53 = vcombine.high %v1276_v48, %v1284_v49  ;;  %v925_v39 = vld [vmem:[#allocation11 + $0x318] sm:$0xff] }
 0x205   : > { %4195 = vmatprep.subr.bf16.mxu1 %v9685_v52  ;;  %v9573_v52 = vcombine.high %v1020_v46, %v1028_v47  ;;  %v933_v40 = vld [vmem:[#allocation11 + $0x358] sm:$0xff]  ;;  %v9494_v41 = vcombine.low %v941_v29, %v949_v30 }
 0x207   : > { %4155 = vmatpush1.bf16.msra.mxu0 %v9428_v57  ;;  %v1268_v57 = vld [vmem:[#allocation11 + $0xdd0] sm:$0xff] }
 0x208   : > { %4196 = vmatpush1.bf16.msra.mxu1 %v9684_v58  ;;  %4156 = vmatprep.subr.bf16.mxu0 %v9413_v59  ;;  %v9572_v58 = vcombine.low %v1020_v46, %v1028_v47  ;;  %v9828_v59 = vcombine.low %v1276_v48, %v1284_v49  ;;  %v9813_v61 = vcombine.high %v1260_v56, %v1268_v57  ;;  %v909_v46 = vld [vmem:[#allocation11 + $0x298] sm:$0xff] }
 0x209   : > { %4197 = vmatprep.subr.bf16.mxu1 %v9669_v60  ;;  %v9557_v60 = vcombine.high %v1004_v54, %v1012_v55  ;;  %v917_v47 = vld [vmem:[#allocation11 + $0x2d8] sm:$0xff] }
 0x20a   : > { %v1165_v49 = vld [vmem:[#allocation11 + $0xa98] sm:$0xff] }
 0x20b   : > { %4157 = vmatpush1.bf16.msra.mxu0 %v9412_v5  ;;  %v1252_v5 = vld [vmem:[#allocation11 + $0xd50] sm:$0xff] }
 0x20c   : > { %4198 = vmatpush1.bf16.msra.mxu1 %v9668_v6  ;;  %4158 = vmatprep.subr.bf16.mxu0 %v9397_v7  ;;  %v9556_v6 = vcombine.low %v1004_v54, %v1012_v55  ;;  %v9812_v7 = vcombine.low %v1260_v56, %v1268_v57  ;;  %v9797_v9 = vcombine.high %v1244_v4, %v1252_v5  ;;  %v893_v55 = vld [vmem:[#allocation11 + $0x218] sm:$0xff] }
 0x20d   : > { %4199 = vmatprep.subr.bf16.mxu1 %v9653_v8  ;;  %v9541_v8 = vcombine.high %v988_v62, %v996_v63  ;;  %v901_v56 = vld [vmem:[#allocation11 + $0x258] sm:$0xff] }
 0x20e   : > { %v1149_v57 = vld [vmem:[#allocation11 + $0xa18] sm:$0xff] }
 0x20f   : > { %4159 = vmatpush1.bf16.msra.mxu0 %v9396_v13  ;;  %v1236_v13 = vld [vmem:[#allocation11 + $0xcd0] sm:$0xff] }
 0x210   : > { %4200 = vmatpush1.bf16.msra.mxu1 %v9652_v14  ;;  %4160 = vmatprep.subr.bf16.mxu0 %v9381_v15  ;;  %v9540_v14 = vcombine.low %v988_v62, %v996_v63  ;;  %v9796_v15 = vcombine.low %v1244_v4, %v1252_v5  ;;  %v9781_v17 = vcombine.high %v1228_v12, %v1236_v13  ;;  %v877_v63 = vld [vmem:[#allocation11 + $0x198] sm:$0xff] }
 0x211   : > { %4201 = vmatprep.subr.bf16.mxu1 %v9637_v16  ;;  %v9525_v16 = vcombine.high %v972_v10, %v980_v11  ;;  %v885_v4 = vld [vmem:[#allocation11 + $0x1d8] sm:$0xff] }
 0x212   : > { %v1133_v5 = vld [vmem:[#allocation11 + $0x998] sm:$0xff] }
 0x213   : > { %4161 = vmatpush1.bf16.msra.mxu0 %v9380_v19  ;;  %v1220_v19 = vld [vmem:[#allocation11 + $0xc50] sm:$0xff] }
 0x214   : > { %4202 = vmatpush1.bf16.msra.mxu1 %v9636_v23  ;;  %4162 = vmatprep.subr.bf16.mxu0 %v9621_v24  ;;  %v9524_v23 = vcombine.low %v972_v10, %v980_v11  ;;  %v9780_v24 = vcombine.low %v1228_v12, %v1236_v13  ;;  %v9765_v26 = vcombine.high %v1212_v18, %v1220_v19  ;;  %v861_v11 = vld [vmem:[#allocation11 + $0x118] sm:$0xff] }
 0x215   : > { %4203 = vmatprep.subr.bf16.mxu1 %v9877_v25  ;;  %v9509_v25 = vcombine.high %v956_v20, %v964_v21  ;;  %v869_v12 = vld [vmem:[#allocation11 + $0x158] sm:$0xff] }
 0x216   : > { %v1117_v13 = vld [vmem:[#allocation11 + $0x918] sm:$0xff] }
 0x217   : > { %4163 = vmatpush2.bf16.msra.mxu0 %v9620_v34  ;;  %v1205_v34 = vld [vmem:[#allocation11 + $0xbd8] sm:$0xff] }
 0x218   : > { %4204 = vmatpush2.bf16.msra.mxu1 %v9876_v35  ;;  %4164 = vmatprep.subr.bf16.mxu0 %v9605_v36  ;;  %v9508_v35 = vcombine.low %v956_v20, %v964_v21  ;;  %v9764_v36 = vcombine.low %v1212_v18, %v1220_v19  ;;  %v9751_v38 = vcombine.high %v1197_v31, %v1205_v34  ;;  %v845_v21 = vld [vmem:[#allocation11 + $0x98] sm:$0xff] }
 0x219   : > { %4205 = vmatprep.subr.bf16.mxu1 %v9861_v37  ;;  %v9495_v37 = vcombine.high %v941_v29, %v949_v30  ;;  %v853_v18 = vld [vmem:[#allocation11 + $0xd8] sm:$0xff] }
 0x21a   : > { %v1101_v19 = vld [vmem:[#allocation11 + $0x898] sm:$0xff] }
 0x21b   : > { %4165 = vmatpush2.bf16.msra.mxu0 %v9604_v42  ;;  %v1181_v42 = vld [vmem:[#allocation11 + $0xb18] sm:$0xff] }
 0x21c   : > { %4206 = vmatpush2.bf16.msra.mxu1 %v9860_v43  ;;  %4166 = vmatprep.subr.bf16.mxu0 %v9589_v44  ;;  %v1189_v43 = vld [vmem:[#allocation11 + $0xb58] sm:$0xff]  ;;  %v9750_v44 = vcombine.low %v1197_v31, %v1205_v34 }
 0x21d   : > { %4207 = vmatprep.subr.bf16.mxu1 %v9845_v45  ;;  %v9479_v45 = vcombine.high %v925_v39, %v933_v40  ;;  %v9735_v48 = vcombine.high %v1181_v42, %v1189_v43  ;;  %v829_v30 = vld [vmem:[#allocation11 + $0x18] sm:$0xff] }
 0x21e   : > { %v837_v31 = vld [vmem:[#allocation11 + $0x58] sm:$0xff] }
 0x21f   : > { %4167 = vmatpush2.bf16.msra.mxu0 %v9588_v50  ;;  %v1173_v50 = vld [vmem:[#allocation11 + $0xad8] sm:$0xff] }
 0x220   : > { %4208 = vmatpush2.bf16.msra.mxu1 %v9844_v51  ;;  %4168 = vmatprep.subr.bf16.mxu0 %v9573_v52  ;;  %v9478_v51 = vcombine.low %v925_v39, %v933_v40  ;;  %v9734_v52 = vcombine.low %v1181_v42, %v1189_v43  ;;  %v9719_v54 = vcombine.high %v1165_v49, %v1173_v50  ;;  %v1085_v34 = vld [vmem:[#allocation11 + $0x818] sm:$0xff] }
 0x221   : > { %4209 = vmatprep.subr.bf16.mxu1 %v9829_v53  ;;  %v9463_v53 = vcombine.high %v909_v46, %v917_v47  ;;  %v1069_v40 = vld [vmem:[#allocation11 + $0x798] sm:$0xff] }
 0x222   : > { %v1325_v42 = vld [vmem:[#allocation11 + $0xf98] sm:$0xff] }
 0x223   : > { %4169 = vmatpush2.bf16.msra.mxu0 %v9572_v58  ;;  %v1157_v58 = vld [vmem:[#allocation11 + $0xa58] sm:$0xff] }
 0x224   : > { %4210 = vmatpush2.bf16.msra.mxu1 %v9828_v59  ;;  %4170 = vmatprep.subr.bf16.mxu0 %v9557_v60  ;;  %v9462_v59 = vcombine.low %v909_v46, %v917_v47  ;;  %v9718_v60 = vcombine.low %v1165_v49, %v1173_v50  ;;  %v9703_v62 = vcombine.high %v1149_v57, %v1157_v58  ;;  %v1333_v43 = vld [vmem:[#allocation11 + $0xfd8] sm:$0xff] }
 0x225   : > { %4211 = vmatprep.subr.bf16.mxu1 %v9813_v61  ;;  %v9447_v61 = vcombine.high %v893_v55, %v901_v56  ;;  %v9879_v47 = vcombine.high %v1325_v42, %v1333_v43  ;;  %v1061_v49 = vld [vmem:[#allocation11 + $0x758] sm:$0xff] }
 0x226   : > { %v1309_v50 = vld [vmem:[#allocation11 + $0xf18] sm:$0xff] }
 0x227   : > { %4171 = vmatpush2.bf16.msra.mxu0 %v9556_v6  ;;  %v1141_v6 = vld [vmem:[#allocation11 + $0x9d8] sm:$0xff] }
 0x228   : > { %4212 = vmatpush2.bf16.msra.mxu1 %v9812_v7  ;;  %4172 = vmatprep.subr.bf16.mxu0 %v9541_v8  ;;  %v9446_v7 = vcombine.low %v893_v55, %v901_v56  ;;  %v9702_v8 = vcombine.low %v1149_v57, %v1157_v58  ;;  %v9687_v10 = vcombine.high %v1133_v5, %v1141_v6  ;;  %v1037_v56 = vld [vmem:[#allocation11 + $0x698] sm:$0xff] }
 0x229   : > { %4213 = vmatprep.subr.bf16.mxu1 %v9797_v9  ;;  %v9431_v9 = vcombine.high %v877_v63, %v885_v4  ;;  %v1045_v57 = vld [vmem:[#allocation11 + $0x6d8] sm:$0xff] }
 0x22a   : > { %v1293_v58 = vld [vmem:[#allocation11 + $0xe98] sm:$0xff] }
 0x22b   : > { %4173 = vmatpush2.bf16.msra.mxu0 %v9540_v14  ;;  %v1125_v14 = vld [vmem:[#allocation11 + $0x958] sm:$0xff] }
 0x22c   : > { %4214 = vmatpush2.bf16.msra.mxu1 %v9796_v15  ;;  %4174 = vmatprep.subr.bf16.mxu0 %v9525_v16  ;;  %v9430_v15 = vcombine.low %v877_v63, %v885_v4  ;;  %v9686_v16 = vcombine.low %v1133_v5, %v1141_v6  ;;  %v9671_v20 = vcombine.high %v1117_v13, %v1125_v14  ;;  %v1021_v4 = vld [vmem:[#allocation11 + $0x618] sm:$0xff] }
 0x22d   : > { %4215 = vmatprep.subr.bf16.mxu1 %v9781_v17  ;;  %v9415_v17 = vcombine.high %v861_v11, %v869_v12  ;;  %v1029_v5 = vld [vmem:[#allocation11 + $0x658] sm:$0xff] }
 0x22e   : > { %v1277_v6 = vld [vmem:[#allocation11 + $0xe18] sm:$0xff] }
 0x22f   : > { %4175 = vmatpush2.bf16.msra.mxu0 %v9524_v23  ;;  %v1109_v23 = vld [vmem:[#allocation11 + $0x8d8] sm:$0xff] }
 0x230   : > { %4216 = vmatpush2.bf16.msra.mxu1 %v9780_v24  ;;  %4176 = vmatprep.subr.bf16.mxu0 %v9509_v25  ;;  %v9414_v24 = vcombine.low %v861_v11, %v869_v12  ;;  %v9670_v25 = vcombine.low %v1117_v13, %v1125_v14  ;;  %v9655_v29 = vcombine.high %v1101_v19, %v1109_v23  ;;  %v1005_v12 = vld [vmem:[#allocation11 + $0x598] sm:$0xff] }
 0x231   : > { %4217 = vmatprep.subr.bf16.mxu1 %v9765_v26  ;;  %v9399_v26 = vcombine.high %v845_v21, %v853_v18  ;;  %v1013_v13 = vld [vmem:[#allocation11 + $0x5d8] sm:$0xff] }
 0x232   : > { %v1261_v14 = vld [vmem:[#allocation11 + $0xd98] sm:$0xff] }
 0x233   : > { %4177 = vmatpush2.bf16.msra.mxu0 %v9508_v35  ;;  %v1093_v35 = vld [vmem:[#allocation11 + $0x858] sm:$0xff] }
 0x234   : > { %4218 = vmatpush2.bf16.msra.mxu1 %v9764_v36  ;;  %4228 = vmatprep.subr.bf16.mxu0 %v9495_v37  ;;  %v9398_v36 = vcombine.low %v845_v21, %v853_v18  ;;  %v9654_v37 = vcombine.low %v1101_v19, %v1109_v23  ;;  %v9639_v39 = vcombine.high %v1085_v34, %v1093_v35  ;;  %v989_v18 = vld [vmem:[#allocation11 + $0x518] sm:$0xff] }
 0x235   : > { %4269 = vmatprep.subr.bf16.mxu1 %v9751_v38  ;;  %v9383_v38 = vcombine.high %v829_v30, %v837_v31  ;;  %v997_v19 = vld [vmem:[#allocation11 + $0x558] sm:$0xff] }
 0x236   : > { %4179 = vmatmul.mubr.bf16.vlgmr.msra.gmra.mxu0 %v12141_v2  ;;  %v1245_v23 = vld [vmem:[#allocation11 + $0xd18] sm:$0xff] }
 0x237   : > { %4220 = vmatmul.mubr.bf16.vlgmr.msra.gmra.mxu1 %v12143_v3  ;;  %4229 = vmatpush1.bf16.msra.mxu0 %v9494_v41  ;;  %v1077_v41 = vld [vmem:[#allocation11 + $0x7d8] sm:$0xff] }
 0x238   : > { %4260 = vmatprep.mubr.bf16.mxu0 %v12137_v0  ;;  %4270 = vmatpush1.bf16.msra.mxu1 %v9750_v44  ;;  %v9382_v44 = vcombine.low %v829_v30, %v837_v31  ;;  %v9623_v46 = vcombine.high %v1069_v40, %v1077_v41  ;;  %v973_v31 = vld [vmem:[#allocation11 + $0x498] sm:$0xff] }
 0x239   : > { %4301 = vmatprep.mubr.bf16.mxu1 %v12139_v1  ;;  %4230 = vmatprep.subr.bf16.mxu0 %v9479_v45  ;;  %v9638_v45 = vcombine.low %v1085_v34, %v1093_v35  ;;  %v981_v34 = vld [vmem:[#allocation11 + $0x4d8] sm:$0xff] }
 0x23a   : > { %4271 = vmatprep.subr.bf16.mxu1 %v9735_v48  ;;  %v1053_v48 = vld [vmem:[#allocation11 + $0x718] sm:$0xff] }
 0x23b   : > { %4231 = vmatpush1.bf16.msra.mxu0 %v9478_v51  ;;  %v1317_v51 = vld [vmem:[#allocation11 + $0xf58] sm:$0xff] }
 0x23c   : > { %4272 = vmatpush1.bf16.msra.mxu1 %v9734_v52  ;;  %4232 = vmatprep.subr.bf16.mxu0 %v9463_v53  ;;  %v9622_v52 = vcombine.low %v1069_v40, %v1077_v41  ;;  %v9878_v53 = vcombine.low %v1325_v42, %v1333_v43  ;;  %v9863_v55 = vcombine.high %v1309_v50, %v1317_v51  ;;  %v1229_v35 = vld [vmem:[#allocation11 + $0xc98] sm:$0xff] }
 0x23d   : > { %4273 = vmatprep.subr.bf16.mxu1 %v9719_v54  ;;  %v9607_v54 = vcombine.high %v1053_v48, %v1061_v49  ;;  %v957_v41 = vld [vmem:[#allocation11 + $0x418] sm:$0xff] }
 0x23e   : > { %v965_v42 = vld [vmem:[#allocation11 + $0x458] sm:$0xff] }
 0x23f   : > { %4233 = vmatpush1.bf16.msra.mxu0 %v9462_v59  ;;  %v1301_v59 = vld [vmem:[#allocation11 + $0xed8] sm:$0xff] }
 0x240   : > { %4274 = vmatpush1.bf16.msra.mxu1 %v9718_v60  ;;  %4234 = vmatprep.subr.bf16.mxu0 %v9447_v61  ;;  %v9606_v60 = vcombine.low %v1053_v48, %v1061_v49  ;;  %v9862_v61 = vcombine.low %v1309_v50, %v1317_v51  ;;  %v9847_v63 = vcombine.high %v1293_v58, %v1301_v59  ;;  %v1213_v43 = vld [vmem:[#allocation11 + $0xc18] sm:$0xff]  ;;  %v942_v49 = vld [vmem:[#allocation11 + $0x3a0] sm:$0xff] }
 0x241   : > { %4275 = vmatprep.subr.bf16.mxu1 %v9703_v62  ;;  %v9591_v62 = vcombine.high %v1037_v56, %v1045_v57  ;;  %v950_v50 = vld [vmem:[#allocation11 + $0x3e0] sm:$0xff] }
 0x242   : > { %v1198_v51 = vld [vmem:[#allocation11 + $0xba0] sm:$0xff] }
 0x243   : > { %4235 = vmatpush1.bf16.msra.mxu0 %v9446_v7  ;;  %v1285_v7 = vld [vmem:[#allocation11 + $0xe58] sm:$0xff] }
 0x244   : > { %4276 = vmatpush1.bf16.msra.mxu1 %v9702_v8  ;;  %4236 = vmatprep.subr.bf16.mxu0 %v9431_v9  ;;  %v9590_v8 = vcombine.low %v1037_v56, %v1045_v57  ;;  %v9846_v9 = vcombine.low %v1293_v58, %v1301_v59  ;;  %v9831_v11 = vcombine.high %v1277_v6, %v1285_v7  ;;  %v12159_v56 = vld [vmem:[#allocation13] sm:$0xff] }
 0x245   : > { %4277 = vmatprep.subr.bf16.mxu1 %v9687_v10  ;;  %v9575_v10 = vcombine.high %v1021_v4, %v1029_v5  ;;  %v926_v58 = vld [vmem:[#allocation11 + $0x320] sm:$0xff] }
 0x246   : > { %v934_v59 = vld [vmem:[#allocation11 + $0x360] sm:$0xff] }
 0x247   : > { %4237 = vmatpush1.bf16.msra.mxu0 %v9430_v15  ;;  %v1269_v15 = vld [vmem:[#allocation11 + $0xdd8] sm:$0xff] }
 0x248   : > { %4278 = vmatpush1.bf16.msra.mxu1 %v9686_v16  ;;  %4238 = vmatprep.subr.bf16.mxu0 %v9415_v17  ;;  %v9574_v16 = vcombine.low %v1021_v4, %v1029_v5  ;;  %v9830_v17 = vcombine.low %v1277_v6, %v1285_v7  ;;  %v9815_v21 = vcombine.high %v1261_v14, %v1269_v15  ;;  %v910_v7 = vld [vmem:[#allocation11 + $0x2a0] sm:$0xff] }
 0x249   : > { %4279 = vmatprep.subr.bf16.mxu1 %v9671_v20  ;;  %v9559_v20 = vcombine.high %v1005_v12, %v1013_v13  ;;  %v1349_v5 = vrot.slane %v12159_v56, %v12128_v32  ;;  %v9481_v6 = vcombine.high %v926_v58, %v934_v59 }
 0x24b   : > { %4239 = vmatpush1.bf16.msra.mxu0 %v9414_v24  ;;  %v1253_v24 = vld [vmem:[#allocation11 + $0xd58] sm:$0xff] }
 0x24c   : > { %4280 = vmatpush1.bf16.msra.mxu1 %v9670_v25  ;;  %4240 = vmatprep.subr.bf16.mxu0 %v9399_v26  ;;  %v9558_v25 = vcombine.low %v1005_v12, %v1013_v13  ;;  %v9814_v26 = vcombine.low %v1261_v14, %v1269_v15  ;;  %v9799_v30 = vcombine.high %v1245_v23, %v1253_v24  ;;  %v1166_v12 = vld [vmem:[#allocation11 + $0xaa0] sm:$0xff] }
 0x24d   : > { %4281 = vmatprep.subr.bf16.mxu1 %v9655_v29  ;;  %v9543_v29 = vcombine.high %v989_v18, %v997_v19  ;;  %v1174_v13 = vld [vmem:[#allocation11 + $0xae0] sm:$0xff]  ;;  %v9480_v15 = vcombine.low %v926_v58, %v934_v59 }
 0x24e   : > { %v870_v58 = vld [vmem:[#allocation11 + $0x160] sm:$0xff] }
 0x24f   : > { %4241 = vmatpush1.bf16.msra.mxu0 %v9398_v36  ;;  %v1237_v36 = vld [vmem:[#allocation11 + $0xcd8] sm:$0xff]  ;;  %v1118_v59 = vld [vmem:[#allocation11 + $0x920] sm:$0xff] }
 0x250   : > { %4282 = vmatpush1.bf16.msra.mxu1 %v9654_v37  ;;  %4242 = vmatprep.subr.bf16.mxu0 %v9383_v38  ;;  %v9542_v37 = vcombine.low %v989_v18, %v997_v19  ;;  %v9798_v38 = vcombine.low %v1245_v23, %v1253_v24  ;;  %v9783_v40 = vcombine.high %v1229_v35, %v1237_v36  ;;  %v894_v24 = vld [vmem:[#allocation11 + $0x220] sm:$0xff] }
 0x251   : > { %4283 = vmatprep.subr.bf16.mxu1 %v9639_v39  ;;  %v9527_v39 = vcombine.high %v973_v31, %v981_v34  ;;  %v9721_v23 = vcombine.high %v1166_v12, %v1174_v13 }
 0x253   : > { %4243 = vmatpush1.bf16.msra.mxu0 %v9382_v44  ;;  %v1221_v44 = vld [vmem:[#allocation11 + $0xc58] sm:$0xff] }
 0x254   : > { %4284 = vmatpush1.bf16.msra.mxu1 %v9638_v45  ;;  %4244 = vmatprep.subr.bf16.mxu0 %v9623_v46  ;;  %v9526_v45 = vcombine.low %v973_v31, %v981_v34  ;;  %v9782_v46 = vcombine.low %v1229_v35, %v1237_v36  ;;  %v9767_v48 = vcombine.high %v1213_v43, %v1221_v44  ;;  %v1158_v31 = vld [vmem:[#allocation11 + $0xa60] sm:$0xff] }
 0x255   : > { %4285 = vmatprep.subr.bf16.mxu1 %v9879_v47  ;;  %v9511_v47 = vcombine.high %v957_v41, %v965_v42 }
 0x257   : > { %4245 = vmatpush2.bf16.msra.mxu0 %v9622_v52  ;;  %v1206_v52 = vld [vmem:[#allocation11 + $0xbe0] sm:$0xff] }
 0x258   : > { %4286 = vmatpush2.bf16.msra.mxu1 %v9878_v53  ;;  %4246 = vmatprep.subr.bf16.mxu0 %v9607_v54  ;;  %v9510_v53 = vcombine.low %v957_v41, %v965_v42  ;;  %v9766_v54 = vcombine.low %v1213_v43, %v1221_v44  ;;  %v9753_v57 = vcombine.high %v1198_v51, %v1206_v52  ;;  %v878_v44 = vld [vmem:[#allocation11 + $0x1a0] sm:$0xff] }
 0x259   : > { %4287 = vmatprep.subr.bf16.mxu1 %v9863_v55  ;;  %v9497_v55 = vcombine.high %v942_v49, %v950_v50  ;;  %v9752_v4 = vcombine.low %v1198_v51, %v1206_v52 }
 0x25b   : > { %4247 = vmatpush2.bf16.msra.mxu0 %v9606_v60  ;;  %v9496_v60 = vcombine.low %v942_v49, %v950_v50 }
 0x25c   : > { %4288 = vmatpush2.bf16.msra.mxu1 %v9862_v61  ;;  %4248 = vmatprep.subr.bf16.mxu0 %v9591_v62  ;;  %v1345_v61 = vrot.slane %v12159_v56, %v12122_v27  ;;  %v1182_v62 = vld [vmem:[#allocation11 + $0xb20] sm:$0xff] }
 0x25d   : > { %4289 = vmatprep.subr.bf16.mxu1 %v9847_v63  ;;  %v1190_v63 = vld [vmem:[#allocation11 + $0xb60] sm:$0xff] }
 0x25f   : > { %4249 = vmatpush2.bf16.msra.mxu0 %v9590_v8  ;;  %v918_v8 = vld [vmem:[#allocation11 + $0x2e0] sm:$0xff] }
 0x260   : > { %4290 = vmatpush2.bf16.msra.mxu1 %v9846_v9  ;;  %4250 = vmatprep.subr.bf16.mxu0 %v9575_v10  ;;  %v9464_v36 = vcombine.low %v910_v7, %v918_v8 }
 0x261   : > { %4291 = vmatprep.subr.bf16.mxu1 %v9831_v11  ;;  %v9737_v11 = vcombine.high %v1182_v62, %v1190_v63 }
 0x263   : > { %4251 = vmatpush2.bf16.msra.mxu0 %v9574_v16 }
 0x264   : > { %4292 = vmatpush2.bf16.msra.mxu1 %v9830_v17  ;;  %4252 = vmatprep.subr.bf16.mxu0 %v9559_v20  ;;  %v9736_v20 = vcombine.low %v1182_v62, %v1190_v63 }
 0x265   : > { %4293 = vmatprep.subr.bf16.mxu1 %v9815_v21  ;;  %v9465_v21 = vcombine.high %v910_v7, %v918_v8 }
 0x267   : > { %4253 = vmatpush2.bf16.msra.mxu0 %v9558_v25  ;;  %v902_v25 = vld [vmem:[#allocation11 + $0x260] sm:$0xff] }
 0x268   : > { %4294 = vmatpush2.bf16.msra.mxu1 %v9814_v26  ;;  %4254 = vmatprep.subr.bf16.mxu0 %v9543_v29  ;;  %v9448_v50 = vcombine.low %v894_v24, %v902_v25 }
 0x269   : > { %4295 = vmatprep.subr.bf16.mxu1 %v9799_v30  ;;  %v1150_v30 = vld [vmem:[#allocation11 + $0xa20] sm:$0xff] }
 0x26a   : > { %v9705_v43 = vcombine.high %v1150_v30, %v1158_v31  ;;  %v9704_v51 = vcombine.low %v1150_v30, %v1158_v31 }
 0x26b   : > { %4255 = vmatpush2.bf16.msra.mxu0 %v9542_v37 }
 0x26c   : > { %4296 = vmatpush2.bf16.msra.mxu1 %v9798_v38  ;;  %4256 = vmatprep.subr.bf16.mxu0 %v9527_v39  ;;  %v9720_v39 = vcombine.low %v1166_v12, %v1174_v13  ;;  %v1110_v12 = vld [vmem:[#allocation11 + $0x8e0] sm:$0xff] }
 0x26d   : > { %4297 = vmatprep.subr.bf16.mxu1 %v9783_v40  ;;  %v9449_v40 = vcombine.high %v894_v24, %v902_v25  ;;  %v838_v24 = vld [vmem:[#allocation11 + $0x60] sm:$0xff] }
 0x26e   : > { %v1086_v25 = vld [vmem:[#allocation11 + $0x820] sm:$0xff] }
 0x26f   : > { %4257 = vmatpush2.bf16.msra.mxu0 %v9526_v45  ;;  %v886_v45 = vld [vmem:[#allocation11 + $0x1e0] sm:$0xff] }
 0x270   : > { %4298 = vmatpush2.bf16.msra.mxu1 %v9782_v46  ;;  %4258 = vmatprep.subr.bf16.mxu0 %v9511_v47  ;;  %v1134_v46 = vld [vmem:[#allocation11 + $0x9a0] sm:$0xff]  ;;  %v9433_v52 = vcombine.high %v878_v44, %v886_v45  ;;  %v9432_v63 = vcombine.low %v878_v44, %v886_v45 }
 0x271   : > { %4299 = vmatprep.subr.bf16.mxu1 %v9767_v48  ;;  %v1142_v47 = vld [vmem:[#allocation11 + $0x9e0] sm:$0xff] }
 0x273   : > { %4259 = vmatpush2.bf16.msra.mxu0 %v9510_v53 }
 0x274   : > { %4300 = vmatpush2.bf16.msra.mxu1 %v9766_v54  ;;  %4310 = vmatprep.subr.bf16.mxu0 %v9497_v55  ;;  %v9689_v55 = vcombine.high %v1134_v46, %v1142_v47 }
 0x275   : > { %4351 = vmatprep.subr.bf16.mxu1 %v9753_v57  ;;  %v862_v57 = vld [vmem:[#allocation11 + $0x120] sm:$0xff] }
 0x276   : > { %4261 = vmatmul.mubr.bf16.vlgmr.msra.gmra.mxu0 %v12141_v2  ;;  %v4016_v9 = vpop.f32.mrf.mxu0  ;;  %v4057_v10 = vpop.f32.mrf.mxu1 }
 0x277   : > { %4302 = vmatmul.mubr.bf16.vlgmr.msra.gmra.mxu1 %v12143_v3  ;;  %v4017_v14 = vadd.f32 %v4016_v9, %v1345_v61  ;;  %4311 = vmatpush1.bf16.msra.mxu0 %v9496_v60  ;;  %v1126_v60 = vld [vmem:[#allocation11 + $0x960] sm:$0xff] }
 0x278   : > { %4342 = vmatprep.mubr.bf16.mxu0 %v12137_v0  ;;  %4352 = vmatpush1.bf16.msra.mxu1 %v9752_v4  ;;  %v4018_v16 = vpop.f32.mrf.mxu0  ;;  %v4059_v17 = vpop.f32.mrf.mxu1  ;;  %v9688_v4 = vcombine.low %v1134_v46, %v1142_v47  ;;  %v9673_v8 = vcombine.high %v1118_v59, %v1126_v60  ;;  %v846_v9 = vld [vmem:[#allocation11 + $0xa0] sm:$0xff] }
 0x279   : > { %v12168_v18 = vadd.f32 %v4057_v10, %v4017_v14  ;;  %4383 = vmatprep.mubr.bf16.mxu1 %v12139_v1  ;;  %v4019_v19 = vadd.f32 %v4018_v16, %v1349_v5  ;;  %4312 = vmatprep.subr.bf16.mxu0 %v9481_v6  ;;  %v9417_v5 = vcombine.high %v862_v57, %v870_v58  ;;  %v854_v10 = vld [vmem:[#allocation11 + $0xe0] sm:$0xff] }
 0x27a   : > { %4353 = vmatprep.subr.bf16.mxu1 %v9737_v11  ;;  %v4020_v26 = vpop.f32.mrf.mxu0  ;;  %v4061_v29 = vpop.f32.mrf.mxu1  ;;  %v1102_v11 = vld [vmem:[#allocation11 + $0x8a0] sm:$0xff]  ;;  %v9672_v16 = vcombine.low %v1118_v59, %v1126_v60  ;;  %v9400_v31 = vcombine.low %v846_v9, %v854_v10 }
 0x27b   : > { %v4638_v34 = vrot.slane %v12168_v18, 4  ;;  %v12172_v35 = vadd.f32 %v4059_v17, %v4019_v19  ;;  %4313 = vmatpush1.bf16.msra.mxu0 %v9480_v15  ;;  %v9416_v15 = vcombine.low %v862_v57, %v870_v58  ;;  %v9401_v17 = vcombine.high %v846_v9, %v854_v10  ;;  %v1094_v26 = vld [vmem:[#allocation11 + $0x860] sm:$0xff] }
 0x27c   : > { %4354 = vmatpush1.bf16.msra.mxu1 %v9736_v20  ;;  %v4021_v37 = vpop.f32.mrf.mxu0  ;;  %v4062_v38 = vpop.f32.mrf.mxu1  ;;  %4314 = vmatprep.subr.bf16.mxu0 %v9465_v21  ;;  %v9657_v19 = vcombine.high %v1102_v11, %v1110_v12  ;;  %v9640_v45 = vcombine.low %v1086_v25, %v1094_v26 }
 0x27d   : > { %v4639_v41 = vadd.f32 %v4638_v34, %v12168_v18  ;;  %v4644_v42 = vrot.slane %v12172_v35, 4  ;;  %4355 = vmatprep.subr.bf16.mxu1 %v9721_v23  ;;  %v830_v23 = vld [vmem:[#allocation11 + $0x20] sm:$0xff]  ;;  %v9656_v34 = vcombine.low %v1102_v11, %v1110_v12  ;;  %v9641_v38 = vcombine.high %v1086_v25, %v1094_v26 }
 0x27f   : > { %v4640_v48 = vrot.slane %v4639_v41, 2  ;;  %v4645_v49 = vadd.f32 %v4644_v42, %v12172_v35  ;;  %4315 = vmatpush1.bf16.msra.mxu0 %v9464_v36  ;;  %v1334_v42 = vld [vmem:[#allocation11 + $0xfe0] sm:$0xff] }
 0x280   : > { %4356 = vmatpush1.bf16.msra.mxu1 %v9720_v39  ;;  %4316 = vmatprep.subr.bf16.mxu0 %v9449_v40  ;;  %v1070_v39 = vld [vmem:[#allocation11 + $0x7a0] sm:$0xff] }
 0x281   : > { %v4641_v53 = vadd.f32 %v4640_v48, %v4639_v41  ;;  %v4646_v54 = vrot.slane %v4645_v49, 2  ;;  %4357 = vmatprep.subr.bf16.mxu1 %v9705_v43  ;;  %v1078_v40 = vld [vmem:[#allocation11 + $0x7e0] sm:$0xff] }
 0x282   : > { %v1326_v41 = vld [vmem:[#allocation11 + $0xfa0] sm:$0xff]  ;;  %v9625_v46 = vcombine.high %v1070_v39, %v1078_v40  ;;  %v9624_v57 = vcombine.low %v1070_v39, %v1078_v40 }
 0x283   : > { %v4642_v61 = vrot.slane %v4641_v53, 1  ;;  %v4647_v62 = vadd.f32 %v4646_v54, %v4645_v49  ;;  %4317 = vmatpush1.bf16.msra.mxu0 %v9448_v50  ;;  %v9881_v49 = vcombine.high %v1326_v41, %v1334_v42  ;;  %v1054_v50 = vld [vmem:[#allocation11 + $0x720] sm:$0xff]  ;;  %v9880_v58 = vcombine.low %v1326_v41, %v1334_v42 }
 0x284   : > { %4358 = vmatpush1.bf16.msra.mxu1 %v9704_v51  ;;  %4318 = vmatprep.subr.bf16.mxu0 %v9433_v52  ;;  %v1062_v51 = vld [vmem:[#allocation11 + $0x760] sm:$0xff] }
 0x285   : > { %v4643_v6 = vadd.f32 %v4642_v61, %v4641_v53  ;;  %v4648_v7 = vrot.slane %v4647_v62, 1  ;;  %4359 = vmatprep.subr.bf16.mxu1 %v9689_v55  ;;  %v1310_v52 = vld [vmem:[#allocation11 + $0xf20] sm:$0xff]  ;;  %v9609_v59 = vcombine.high %v1054_v50, %v1062_v51  ;;  %v9608_v9 = vcombine.low %v1054_v50, %v1062_v51 }
 0x286   : > { %v1318_v53 = vld [vmem:[#allocation11 + $0xf60] sm:$0xff] }
 0x287   : > { %v4735_v13 = vmul.f32 0.125, %v4643_v6  ;;  %v4649_v14 = vadd.f32 %v4648_v7, %v4647_v62  ;;  %4319 = vmatpush1.bf16.msra.mxu0 %v9432_v63  ;;  %v9865_v62 = vcombine.high %v1310_v52, %v1318_v53  ;;  %v1038_v63 = vld [vmem:[#allocation11 + $0x6a0] sm:$0xff]  ;;  %v9864_v10 = vcombine.low %v1310_v52, %v1318_v53 }
 0x288   : > { %4360 = vmatpush1.bf16.msra.mxu1 %v9688_v4  ;;  %4320 = vmatprep.subr.bf16.mxu0 %v9417_v5  ;;  %v1046_v4 = vld [vmem:[#allocation11 + $0x6e0] sm:$0xff] }
 0x289   : > { %v12178_v20 = vsub.f32 %v12168_v18, %v4735_v13  ;;  %v4736_v21 = vmul.f32 0.125, %v4649_v14  ;;  %4361 = vmatprep.subr.bf16.mxu1 %v9673_v8  ;;  %v9385_v18 = vcombine.high %v830_v23, %v838_v24  ;;  %v1294_v5 = vld [vmem:[#allocation11 + $0xea0] sm:$0xff]  ;;  %v9593_v11 = vcombine.high %v1038_v63, %v1046_v4 }
 0x28a   : > { %v1302_v6 = vld [vmem:[#allocation11 + $0xee0] sm:$0xff] }
 0x28b   : > { %v4767_v29 = vmul.f32 %v12178_v20, %v12178_v20  ;;  %v12183_v30 = vsub.f32 %v12172_v35, %v4736_v21  ;;  %4321 = vmatpush1.bf16.msra.mxu0 %v9416_v15  ;;  %v9384_v35 = vcombine.low %v830_v23, %v838_v24  ;;  %v9849_v14 = vcombine.high %v1294_v5, %v1302_v6  ;;  %v1022_v15 = vld [vmem:[#allocation11 + $0x620] sm:$0xff] }
 0x28c   : > { %4362 = vmatpush1.bf16.msra.mxu1 %v9672_v16  ;;  %4322 = vmatprep.subr.bf16.mxu0 %v9401_v17  ;;  %v1030_v16 = vld [vmem:[#allocation11 + $0x660] sm:$0xff]  ;;  %v9592_v24 = vcombine.low %v1038_v63, %v1046_v4  ;;  %v9848_v25 = vcombine.low %v1294_v5, %v1302_v6 }
 0x28d   : > { %v4783_v36 = vrot.slane %v4767_v29, 4  ;;  %v4768_v37 = vmul.f32 %v12183_v30, %v12183_v30  ;;  %4363 = vmatprep.subr.bf16.mxu1 %v9657_v19  ;;  %v1278_v17 = vld [vmem:[#allocation11 + $0xe20] sm:$0xff]  ;;  %v9577_v26 = vcombine.high %v1022_v15, %v1030_v16 }
 0x28e   : > { %v1286_v21 = vld [vmem:[#allocation11 + $0xe60] sm:$0xff] }
 0x28f   : > { %v4784_v43 = vadd.f32 %v4783_v36, %v4767_v29  ;;  %v4789_v44 = vrot.slane %v4768_v37, 4  ;;  %4323 = vmatpush1.bf16.msra.mxu0 %v9400_v31  ;;  %v9833_v31 = vcombine.high %v1278_v17, %v1286_v21  ;;  %v1262_v36 = vld [vmem:[#allocation11 + $0xda0] sm:$0xff]  ;;  %v9832_v39 = vcombine.low %v1278_v17, %v1286_v21  ;;  %v927_v17 = vld [vmem:[#allocation11 + $0x328] sm:$0xff] }
 0x290   : > { %4364 = vmatpush1.bf16.msra.mxu1 %v9656_v34  ;;  %4324 = vmatprep.subr.bf16.mxu0 %v9385_v18  ;;  %v1006_v34 = vld [vmem:[#allocation11 + $0x5a0] sm:$0xff]  ;;  %v935_v21 = vld [vmem:[#allocation11 + $0x368] sm:$0xff] }
 0x291   : > { %v4785_v47 = vrot.slane %v4784_v43, 2  ;;  %v4790_v48 = vadd.f32 %v4789_v44, %v4768_v37  ;;  %4365 = vmatprep.subr.bf16.mxu1 %v9641_v38  ;;  %v1014_v18 = vld [vmem:[#allocation11 + $0x5e0] sm:$0xff]  ;;  %v9576_v38 = vcombine.low %v1022_v15, %v1030_v16 }
 0x292   : > { %v1270_v37 = vld [vmem:[#allocation11 + $0xde0] sm:$0xff]  ;;  %v9561_v40 = vcombine.high %v1006_v34, %v1014_v18 }
 0x293   : > { %v4786_v54 = vadd.f32 %v4785_v47, %v4784_v43  ;;  %v4791_v55 = vrot.slane %v4790_v48, 2  ;;  %4325 = vmatpush1.bf16.msra.mxu0 %v9384_v35  ;;  %v9817_v41 = vcombine.high %v1262_v36, %v1270_v37  ;;  %v990_v42 = vld [vmem:[#allocation11 + $0x520] sm:$0xff] }
 0x294   : > { %4366 = vmatpush1.bf16.msra.mxu1 %v9640_v45  ;;  %4326 = vmatprep.subr.bf16.mxu0 %v9625_v46  ;;  %v998_v43 = vld [vmem:[#allocation11 + $0x560] sm:$0xff]  ;;  %v9560_v45 = vcombine.low %v1006_v34, %v1014_v18  ;;  %v9816_v46 = vcombine.low %v1262_v36, %v1270_v37  ;;  %v911_v34 = vld [vmem:[#allocation11 + $0x2a8] sm:$0xff] }
 0x295   : > { %v4787_v60 = vrot.slane %v4786_v54, 1  ;;  %v4792_v61 = vadd.f32 %v4791_v55, %v4790_v48  ;;  %4367 = vmatprep.subr.bf16.mxu1 %v9881_v49  ;;  %v1246_v44 = vld [vmem:[#allocation11 + $0xd20] sm:$0xff]  ;;  %v9545_v47 = vcombine.high %v990_v42, %v998_v43  ;;  %v9544_v53 = vcombine.low %v990_v42, %v998_v43  ;;  %v919_v18 = vld [vmem:[#allocation11 + $0x2e8] sm:$0xff] }
 0x296   : > { %v1254_v35 = vld [vmem:[#allocation11 + $0xd60] sm:$0xff]  ;;  %v9482_v42 = vcombine.low %v927_v17, %v935_v21 }
 0x297   : > { %v4788_v7 = vadd.f32 %v4787_v60, %v4786_v54  ;;  %v4793_v8 = vrot.slane %v4792_v61, 1  ;;  %4327 = vmatpush2.bf16.msra.mxu0 %v9624_v57  ;;  %v9801_v48 = vcombine.high %v1246_v44, %v1254_v35  ;;  %v974_v49 = vld [vmem:[#allocation11 + $0x4a0] sm:$0xff]  ;;  %v9800_v54 = vcombine.low %v1246_v44, %v1254_v35 }
 0x298   : > { %4368 = vmatpush2.bf16.msra.mxu1 %v9880_v58  ;;  %4328 = vmatprep.subr.bf16.mxu0 %v9609_v59  ;;  %v982_v50 = vld [vmem:[#allocation11 + $0x4e0] sm:$0xff]  ;;  %v9467_v35 = vcombine.high %v911_v34, %v919_v18 }
 0x299   : > { %v4879_v12 = vmul.f32 0.125, %v4788_v7  ;;  %v4794_v13 = vadd.f32 %v4793_v8, %v4792_v61  ;;  %4369 = vmatprep.subr.bf16.mxu1 %v9865_v62  ;;  %v1230_v51 = vld [vmem:[#allocation11 + $0xca0] sm:$0xff]  ;;  %v9529_v55 = vcombine.high %v974_v49, %v982_v50  ;;  %v9528_v63 = vcombine.low %v974_v49, %v982_v50  ;;  %v903_v49 = vld [vmem:[#allocation11 + $0x268] sm:$0xff] }
 0x29a   : > { %v1238_v52 = vld [vmem:[#allocation11 + $0xce0] sm:$0xff] }
 0x29b   : > { %v4897_v19 = vadd.f32 1e-05, %v4879_v12  ;;  %v4880_v23 = vmul.f32 0.125, %v4794_v13  ;;  %4329 = vmatpush2.bf16.msra.mxu0 %v9608_v9  ;;  %v9785_v57 = vcombine.high %v1230_v51, %v1238_v52  ;;  %v958_v58 = vld [vmem:[#allocation11 + $0x420] sm:$0xff]  ;;  %v9784_v5 = vcombine.low %v1230_v51, %v1238_v52  ;;  %v943_v9 = vld [vmem:[#allocation11 + $0x3a8] sm:$0xff] }
 0x29c   : > { %4370 = vmatpush2.bf16.msra.mxu1 %v9864_v10  ;;  %4330 = vmatprep.subr.bf16.mxu0 %v9593_v11  ;;  %v966_v59 = vld [vmem:[#allocation11 + $0x460] sm:$0xff]  ;;  %v951_v10 = vld [vmem:[#allocation11 + $0x3e8] sm:$0xff] }
 0x29d   : > { %v4898_v29 = vadd.f32 1e-05, %v4880_v23  ;;  %4371 = vmatprep.subr.bf16.mxu1 %v9849_v14  ;;  %10590 = vrsqrt.f32 %v4897_v19  ;;  %v1214_v60 = vld [vmem:[#allocation11 + $0xc20] sm:$0xff]  ;;  %v9513_v6 = vcombine.high %v958_v58, %v966_v59  ;;  %v1199_v11 = vld [vmem:[#allocation11 + $0xba8] sm:$0xff]  ;;  %v9512_v13 = vcombine.low %v958_v58, %v966_v59 }
 0x29e   : > { %v1222_v61 = vld [vmem:[#allocation11 + $0xc60] sm:$0xff]  ;;  %v1207_v12 = vld [vmem:[#allocation11 + $0xbe8] sm:$0xff]  ;;  %v9499_v15 = vcombine.high %v943_v9, %v951_v10  ;;  %v1353_v19 = vrot.slane %v12159_v56, %v12125_v28  ;;  %v9498_v23 = vcombine.low %v943_v9, %v951_v10 }
 0x29f   : > { %10592 = vrsqrt.f32 %v4898_v29  ;;  %4331 = vmatpush2.bf16.msra.mxu0 %v9592_v24  ;;  %v9769_v8 = vcombine.high %v1214_v60, %v1222_v61  ;;  %v9768_v14 = vcombine.low %v1214_v60, %v1222_v61  ;;  %v9755_v16 = vcombine.high %v1199_v11, %v1207_v12  ;;  %v1183_v24 = vld [vmem:[#allocation11 + $0xb28] sm:$0xff] }
 0x2a0   : > { %4372 = vmatpush2.bf16.msra.mxu1 %v9848_v25  ;;  %4332 = vmatprep.subr.bf16.mxu0 %v9577_v26  ;;  %v1191_v25 = vld [vmem:[#allocation11 + $0xb68] sm:$0xff]  ;;  %v9754_v26 = vcombine.low %v1199_v11, %v1207_v12  ;;  %v1357_v29 = vrot.slane %v12159_v56, %v12131_v33 }
 0x2a1   : > { %4373 = vmatprep.subr.bf16.mxu1 %v9833_v31  ;;  %v9483_v31 = vcombine.high %v927_v17, %v935_v21  ;;  %v9738_v44 = vcombine.low %v1183_v24, %v1191_v25  ;;  %v1151_v52 = vld [vmem:[#allocation11 + $0xa28] sm:$0xff] }
 0x2a2   : > { %v887_v9 = vld [vmem:[#allocation11 + $0x1e8] sm:$0xff] }
 0x2a3   : > { %4333 = vmatpush2.bf16.msra.mxu0 %v9576_v38  ;;  %v9739_v38 = vcombine.high %v1183_v24, %v1191_v25  ;;  %v1135_v10 = vld [vmem:[#allocation11 + $0x9a8] sm:$0xff] }
 0x2a4   : > { %4374 = vmatpush2.bf16.msra.mxu1 %v9832_v39  ;;  %4334 = vmatprep.subr.bf16.mxu0 %v9561_v40  ;;  %v1167_v39 = vld [vmem:[#allocation11 + $0xaa8] sm:$0xff] }
 0x2a5   : > { %4375 = vmatprep.subr.bf16.mxu1 %v9817_v41  ;;  %v1175_v40 = vld [vmem:[#allocation11 + $0xae8] sm:$0xff] }
 0x2a6   : > { %v9722_v60 = vcombine.low %v1167_v39, %v1175_v40  ;;  %v1143_v11 = vld [vmem:[#allocation11 + $0x9e8] sm:$0xff] }
 0x2a7   : > { %4335 = vmatpush2.bf16.msra.mxu0 %v9560_v45  ;;  %v871_v24 = vld [vmem:[#allocation11 + $0x168] sm:$0xff] }
 0x2a8   : > { %4376 = vmatpush2.bf16.msra.mxu1 %v9816_v46  ;;  %4336 = vmatprep.subr.bf16.mxu0 %v9545_v47  ;;  %v9723_v47 = vcombine.high %v1167_v39, %v1175_v40  ;;  %v1119_v25 = vld [vmem:[#allocation11 + $0x928] sm:$0xff] }
 0x2a9   : > { %4377 = vmatprep.subr.bf16.mxu1 %v9801_v48  ;;  %v895_v48 = vld [vmem:[#allocation11 + $0x228] sm:$0xff] }
 0x2aa   : > { %v12187_v62 = vpop.eup %10590  ;;  %v9451_v61 = vcombine.high %v895_v48, %v903_v49  ;;  %v847_v40 = vld [vmem:[#allocation11 + $0xa8] sm:$0xff] }
 0x2ab   : > { %4337 = vmatpush2.bf16.msra.mxu0 %v9544_v53  ;;  %v1159_v53 = vld [vmem:[#allocation11 + $0xa68] sm:$0xff] }
 0x2ac   : > { %v12189_v4 = vpop.eup %10592  ;;  %4378 = vmatpush2.bf16.msra.mxu1 %v9800_v54  ;;  %4338 = vmatprep.subr.bf16.mxu0 %v9529_v55 }
 0x2ad   : > { %v4945_v7 = vcombine.low %v12187_v62, %v12189_v4  ;;  %4379 = vmatprep.subr.bf16.mxu1 %v9785_v57  ;;  %v9466_v57 = vcombine.low %v911_v34, %v919_v18  ;;  %v9690_v18 = vcombine.low %v1135_v10, %v1143_v11  ;;  %v12237_v62 = vsub.s32 5, %v12119_v22  ;;  %v928_v4 = vld [vmem:[#allocation11 + $0x330] sm:$0xff] }
 0x2af   : > { %4339 = vmatpush2.bf16.msra.mxu0 %v9528_v63 }
 0x2b0   : > { %4380 = vmatpush2.bf16.msra.mxu1 %v9784_v5  ;;  %4340 = vmatprep.subr.bf16.mxu0 %v9513_v6  ;;  %v9707_v6 = vcombine.high %v1151_v52, %v1159_v53 }
 0x2b1   : > { %4381 = vmatprep.subr.bf16.mxu1 %v9769_v8  ;;  %v879_v8 = vld [vmem:[#allocation11 + $0x1a8] sm:$0xff] }
 0x2b2   : > { %v9434_v34 = vcombine.low %v879_v8, %v887_v9 }
 0x2b3   : > { %4341 = vmatpush2.bf16.msra.mxu0 %v9512_v13 }
 0x2b4   : > { %4382 = vmatpush2.bf16.msra.mxu1 %v9768_v14  ;;  %4392 = vmatprep.subr.bf16.mxu0 %v9499_v15  ;;  %v9450_v14 = vcombine.low %v895_v48, %v903_v49  ;;  %v9706_v15 = vcombine.low %v1151_v52, %v1159_v53  ;;  %v839_v52 = vld [vmem:[#allocation11 + $0x68] sm:$0xff] }
 0x2b5   : > { %4433 = vmatprep.subr.bf16.mxu1 %v9755_v16  ;;  %v9435_v16 = vcombine.high %v879_v8, %v887_v9  ;;  %v1087_v53 = vld [vmem:[#allocation11 + $0x828] sm:$0xff] }
 0x2b6   : > { %v4098_v36 = vpop.f32.mrf.mxu0  ;;  %v4139_v37 = vpop.f32.mrf.mxu1  ;;  %4343 = vmatmul.mubr.bf16.vlgmr.msra.gmra.mxu0 %v12141_v2  ;;  %v1079_v8 = vld [vmem:[#allocation11 + $0x7e8] sm:$0xff] }
 0x2b7   : > { %v4099_v41 = vadd.f32 %v4098_v36, %v1353_v19  ;;  %4384 = vmatmul.mubr.bf16.vlgmr.msra.gmra.mxu1 %v12143_v3  ;;  %4393 = vmatpush1.bf16.msra.mxu0 %v9498_v23  ;;  %v9691_v19 = vcombine.high %v1135_v10, %v1143_v11  ;;  %v863_v23 = vld [vmem:[#allocation11 + $0x128] sm:$0xff] }
 0x2b8   : > { %4424 = vmatprep.mubr.bf16.mxu0 %v12137_v0  ;;  %4434 = vmatpush1.bf16.msra.mxu1 %v9754_v26  ;;  %v4100_v43 = vpop.f32.mrf.mxu0  ;;  %v4141_v56 = vpop.f32.mrf.mxu1  ;;  %v1127_v26 = vld [vmem:[#allocation11 + $0x968] sm:$0xff]  ;;  %v9419_v36 = vcombine.high %v863_v23, %v871_v24 }
 0x2b9   : > { %v12200_v45 = vadd.f32 %v4139_v37, %v4099_v41  ;;  %4465 = vmatprep.mubr.bf16.mxu1 %v12139_v1  ;;  %v4101_v46 = vadd.f32 %v4100_v43, %v1357_v29  ;;  %4394 = vmatprep.subr.bf16.mxu0 %v9483_v31  ;;  %v9675_v39 = vcombine.high %v1119_v25, %v1127_v26  ;;  %v855_v41 = vld [vmem:[#allocation11 + $0xe8] sm:$0xff] }
 0x2ba   : > { %v4102_v50 = vpop.f32.mrf.mxu0  ;;  %v4143_v51 = vpop.f32.mrf.mxu1  ;;  %4435 = vmatprep.subr.bf16.mxu1 %v9739_v38  ;;  %v1111_v43 = vld [vmem:[#allocation11 + $0x8e8] sm:$0xff] }
 0x2bb   : > { %v4650_v54 = vrot.slane %v12200_v45, 4  ;;  %v12204_v55 = vadd.f32 %v4141_v56, %v4101_v46  ;;  %4395 = vmatpush1.bf16.msra.mxu0 %v9482_v42  ;;  %v1103_v42 = vld [vmem:[#allocation11 + $0x8a8] sm:$0xff]  ;;  %v9674_v46 = vcombine.low %v1119_v25, %v1127_v26 }
 0x2bc   : > { %4436 = vmatpush1.bf16.msra.mxu1 %v9738_v44  ;;  %v4103_v58 = vpop.f32.mrf.mxu0  ;;  %v4144_v59 = vpop.f32.mrf.mxu1  ;;  %4396 = vmatprep.subr.bf16.mxu0 %v9467_v35  ;;  %v9418_v35 = vcombine.low %v863_v23, %v871_v24  ;;  %v9659_v50 = vcombine.high %v1103_v42, %v1111_v43  ;;  %v831_v51 = vld [vmem:[#allocation11 + $0x28] sm:$0xff] }
 0x2bd   : > { %v4651_v63 = vadd.f32 %v4650_v54, %v12200_v45  ;;  %v4656_v5 = vrot.slane %v12204_v55, 4  ;;  %4437 = vmatprep.subr.bf16.mxu1 %v9723_v47  ;;  %v9403_v47 = vcombine.high %v847_v40, %v855_v41  ;;  %v1095_v54 = vld [vmem:[#allocation11 + $0x868] sm:$0xff]  ;;  %v9402_v59 = vcombine.low %v847_v40, %v855_v41 }
 0x2be   : > { %v1327_v9 = vld [vmem:[#allocation11 + $0xfa8] sm:$0xff] }
 0x2bf   : > { %v4652_v12 = vrot.slane %v4651_v63, 2  ;;  %v4657_v13 = vadd.f32 %v4656_v5, %v12204_v55  ;;  %4397 = vmatpush1.bf16.msra.mxu0 %v9466_v57  ;;  %v9643_v5 = vcombine.high %v1087_v53, %v1095_v54  ;;  %v1335_v10 = vld [vmem:[#allocation11 + $0xfe8] sm:$0xff] }
 0x2c0   : > { %4438 = vmatpush1.bf16.msra.mxu1 %v9722_v60  ;;  %4398 = vmatprep.subr.bf16.mxu0 %v9451_v61  ;;  %v9658_v60 = vcombine.low %v1103_v42, %v1111_v43  ;;  %v1311_v23 = vld [vmem:[#allocation11 + $0xf28] sm:$0xff] }
 0x2c1   : > { %v4653_v17 = vadd.f32 %v4652_v12, %v4651_v63  ;;  %v4658_v21 = vrot.slane %v4657_v13, 2  ;;  %4439 = vmatprep.subr.bf16.mxu1 %v9707_v6  ;;  %v1071_v6 = vld [vmem:[#allocation11 + $0x7a8] sm:$0xff] }
 0x2c2   : > { %v1319_v24 = vld [vmem:[#allocation11 + $0xf68] sm:$0xff] }
 0x2c3   : > { %v4654_v29 = vrot.slane %v4653_v17, 1  ;;  %v4659_v31 = vadd.f32 %v4658_v21, %v4657_v13  ;;  %4399 = vmatpush1.bf16.msra.mxu0 %v9450_v14  ;;  %v9642_v13 = vcombine.low %v1087_v53, %v1095_v54  ;;  %v9627_v14 = vcombine.high %v1071_v6, %v1079_v8  ;;  %v1055_v21 = vld [vmem:[#allocation11 + $0x728] sm:$0xff] }
 0x2c4   : > { %4440 = vmatpush1.bf16.msra.mxu1 %v9706_v15  ;;  %4400 = vmatprep.subr.bf16.mxu0 %v9435_v16  ;;  %v1295_v40 = vld [vmem:[#allocation11 + $0xea8] sm:$0xff] }
 0x2c5   : > { %v4655_v37 = vadd.f32 %v4654_v29, %v4653_v17  ;;  %v4660_v38 = vrot.slane %v4659_v31, 1  ;;  %4441 = vmatprep.subr.bf16.mxu1 %v9691_v19  ;;  %v9883_v17 = vcombine.high %v1327_v9, %v1335_v10  ;;  %v1063_v19 = vld [vmem:[#allocation11 + $0x768] sm:$0xff]  ;;  %v9626_v29 = vcombine.low %v1071_v6, %v1079_v8 }
 0x2c6   : > { %v1303_v41 = vld [vmem:[#allocation11 + $0xee8] sm:$0xff] }
 0x2c7   : > { %v4737_v56 = vmul.f32 0.125, %v4655_v37  ;;  %v4661_v44 = vadd.f32 %v4660_v38, %v4659_v31  ;;  %4401 = vmatpush1.bf16.msra.mxu0 %v9434_v34  ;;  %v9882_v31 = vcombine.low %v1327_v9, %v1335_v10  ;;  %v9611_v34 = vcombine.high %v1055_v21, %v1063_v19  ;;  %v1039_v38 = vld [vmem:[#allocation11 + $0x6a8] sm:$0xff] }
 0x2c8   : > { %4442 = vmatpush1.bf16.msra.mxu1 %v9690_v18  ;;  %4402 = vmatprep.subr.bf16.mxu0 %v9419_v36  ;;  %v9867_v37 = vcombine.high %v1311_v23, %v1319_v24  ;;  %v1287_v53 = vld [vmem:[#allocation11 + $0xe68] sm:$0xff] }
 0x2c9   : > { %v12210_v48 = vsub.f32 %v12200_v45, %v4737_v56  ;;  %v4738_v49 = vmul.f32 0.125, %v4661_v44  ;;  %4443 = vmatprep.subr.bf16.mxu1 %v9675_v39  ;;  %v9387_v45 = vcombine.high %v831_v51, %v839_v52  ;;  %v1047_v39 = vld [vmem:[#allocation11 + $0x6e8] sm:$0xff]  ;;  %v9610_v56 = vcombine.low %v1055_v21, %v1063_v19 }
 0x2ca   : > { %v9866_v44 = vcombine.low %v1311_v23, %v1319_v24  ;;  %v1015_v6 = vld [vmem:[#allocation11 + $0x5e8] sm:$0xff] }
 0x2cb   : > { %v4769_v57 = vmul.f32 %v12210_v48, %v12210_v48  ;;  %v12215_v58 = vsub.f32 %v12204_v55, %v4738_v49  ;;  %4403 = vmatpush1.bf16.msra.mxu0 %v9418_v35  ;;  %v9386_v55 = vcombine.low %v831_v51, %v839_v52  ;;  %v9595_v35 = vcombine.high %v1039_v38, %v1047_v39  ;;  %v1031_v51 = vld [vmem:[#allocation11 + $0x668] sm:$0xff] }
 0x2cc   : > { %4444 = vmatpush1.bf16.msra.mxu1 %v9674_v46  ;;  %4404 = vmatprep.subr.bf16.mxu0 %v9403_v47  ;;  %v9851_v49 = vcombine.high %v1295_v40, %v1303_v41  ;;  %v1279_v52 = vld [vmem:[#allocation11 + $0xe28] sm:$0xff] }
 0x2cd   : > { %v4795_v61 = vrot.slane %v4769_v57, 4  ;;  %v4770_v63 = vmul.f32 %v12215_v58, %v12215_v58  ;;  %4445 = vmatprep.subr.bf16.mxu1 %v9659_v50  ;;  %v1023_v50 = vld [vmem:[#allocation11 + $0x628] sm:$0xff] }
 0x2ce   : > { %v1263_v8 = vld [vmem:[#allocation11 + $0xda8] sm:$0xff]  ;;  %v9578_v10 = vcombine.low %v1023_v50, %v1031_v51 }
 0x2cf   : > { %v4796_v11 = vadd.f32 %v4795_v61, %v4769_v57  ;;  %v4801_v12 = vrot.slane %v4770_v63, 4  ;;  %4405 = vmatpush1.bf16.msra.mxu0 %v9402_v59  ;;  %v9594_v59 = vcombine.low %v1039_v38, %v1047_v39  ;;  %v1271_v9 = vld [vmem:[#allocation11 + $0xde8] sm:$0xff] }
 0x2d0   : > { %4446 = vmatpush1.bf16.msra.mxu1 %v9658_v60  ;;  %4406 = vmatprep.subr.bf16.mxu0 %v9387_v45  ;;  %v9850_v60 = vcombine.low %v1295_v40, %v1303_v41  ;;  %v9579_v45 = vcombine.high %v1023_v50, %v1031_v51  ;;  %v9818_v23 = vcombine.low %v1263_v8, %v1271_v9  ;;  %v959_v40 = vld [vmem:[#allocation11 + $0x428] sm:$0xff] }
 0x2d1   : > { %v4797_v15 = vrot.slane %v4796_v11, 2  ;;  %v4802_v16 = vadd.f32 %v4801_v12, %v4770_v63  ;;  %4447 = vmatprep.subr.bf16.mxu1 %v9643_v5  ;;  %v9835_v63 = vcombine.high %v1279_v52, %v1287_v53  ;;  %v1007_v5 = vld [vmem:[#allocation11 + $0x5a8] sm:$0xff] }
 0x2d2   : > { %v9563_v12 = vcombine.high %v1007_v5, %v1015_v6  ;;  %v9562_v19 = vcombine.low %v1007_v5, %v1015_v6  ;;  %v967_v41 = vld [vmem:[#allocation11 + $0x468] sm:$0xff] }
 0x2d3   : > { %v4798_v25 = vadd.f32 %v4797_v15, %v4796_v11  ;;  %v4803_v26 = vrot.slane %v4802_v16, 2  ;;  %4407 = vmatpush1.bf16.msra.mxu0 %v9386_v55  ;;  %v9834_v11 = vcombine.low %v1279_v52, %v1287_v53  ;;  %v9819_v55 = vcombine.high %v1263_v8, %v1271_v9  ;;  %v1247_v15 = vld [vmem:[#allocation11 + $0xd28] sm:$0xff]  ;;  %v944_v52 = vld [vmem:[#allocation11 + $0x3b0] sm:$0xff]  ;;  %v12239_v9 = vld [vmem:[#allocation13] sm:$0xff] }
 0x2d4   : > { %4448 = vmatpush1.bf16.msra.mxu1 %v9642_v13  ;;  %4408 = vmatprep.subr.bf16.mxu0 %v9627_v14  ;;  %v991_v13 = vld [vmem:[#allocation11 + $0x528] sm:$0xff]  ;;  %v952_v53 = vld [vmem:[#allocation11 + $0x3f0] sm:$0xff] }
 0x2d5   : > { %v4799_v18 = vrot.slane %v4798_v25, 1  ;;  %v4804_v36 = vadd.f32 %v4803_v26, %v4802_v16  ;;  %4449 = vmatprep.subr.bf16.mxu1 %v9883_v17  ;;  %v999_v14 = vld [vmem:[#allocation11 + $0x568] sm:$0xff]  ;;  %v11779_v17 = vmov 1966171168   ;;  %v9501_v5 = vcombine.high %v944_v52, %v952_v53 }
 0x2d6   : > { %v1255_v16 = vld [vmem:[#allocation11 + $0xd68] sm:$0xff]  ;;  %v4950_v21 = vunpack.c.l.s4 %v11779_v17  ;;  %v9547_v24 = vcombine.high %v991_v13, %v999_v14  ;;  %v920_v17 = vld [vmem:[#allocation11 + $0x2f0] sm:$0xff] }
 0x2d7   : > { %v4800_v42 = vadd.f32 %v4799_v18, %v4798_v25  ;;  %v4805_v43 = vrot.slane %v4804_v36, 1  ;;  %4409 = vmatpush2.bf16.msra.mxu0 %v9626_v29  ;;  %v9803_v25 = vcombine.high %v1247_v15, %v1255_v16  ;;  %v975_v26 = vld [vmem:[#allocation11 + $0x4a8] sm:$0xff] }
 0x2d8   : > { %4450 = vmatpush2.bf16.msra.mxu1 %v9882_v31  ;;  %4410 = vmatprep.subr.bf16.mxu0 %v9611_v34  ;;  %v983_v29 = vld [vmem:[#allocation11 + $0x4e8] sm:$0xff]  ;;  %v4951_v18 = vunpack.c.0.s8 %v4950_v21 }
 0x2d9   : > { %v4881_v46 = vmul.f32 0.125, %v4800_v42  ;;  %v4806_v47 = vadd.f32 %v4805_v43, %v4804_v36  ;;  %4451 = vmatprep.subr.bf16.mxu1 %v9867_v37  ;;  %v1231_v31 = vld [vmem:[#allocation11 + $0xca8] sm:$0xff]  ;;  %v9546_v36 = vcombine.low %v991_v13, %v999_v14  ;;  %v9802_v37 = vcombine.low %v1247_v15, %v1255_v16  ;;  %v912_v16 = vld [vmem:[#allocation11 + $0x2b0] sm:$0xff] }
 0x2da   : > { %v1239_v34 = vld [vmem:[#allocation11 + $0xce8] sm:$0xff]  ;;  %v9531_v38 = vcombine.high %v975_v26, %v983_v29  ;;  %v1365_v14 = vrot.slane %v12239_v9, %v12237_v62 }
 0x2db   : > { %v4899_v54 = vadd.f32 1e-05, %v4881_v46  ;;  %v4882_v57 = vmul.f32 0.125, %v4806_v47  ;;  %4411 = vmatpush2.bf16.msra.mxu0 %v9610_v56  ;;  %v9787_v39 = vcombine.high %v1231_v31, %v1239_v34  ;;  %v1215_v42 = vld [vmem:[#allocation11 + $0xc28] sm:$0xff]  ;;  %v9786_v47 = vcombine.low %v1231_v31, %v1239_v34 }
 0x2dc   : > { %4452 = vmatpush2.bf16.msra.mxu1 %v9866_v44  ;;  %4412 = vmatprep.subr.bf16.mxu0 %v9595_v35  ;;  %v1223_v43 = vld [vmem:[#allocation11 + $0xc68] sm:$0xff]  ;;  %v12220_v44 = vsub.s32 %v4951_v18, %v12119_v22  ;;  %v9530_v35 = vcombine.low %v975_v26, %v983_v29  ;;  %v9469_v18 = vcombine.high %v912_v16, %v920_v17 }
 0x2dd   : > { %v4900_v61 = vadd.f32 1e-05, %v4882_v57  ;;  %4453 = vmatprep.subr.bf16.mxu1 %v9851_v49  ;;  %10594 = vrsqrt.f32 %v4899_v54  ;;  %v9515_v49 = vcombine.high %v959_v40, %v967_v41  ;;  %v9771_v51 = vcombine.high %v1215_v42, %v1223_v43  ;;  %v1200_v54 = vld [vmem:[#allocation11 + $0xbb0] sm:$0xff] }
 0x2de   : > { %v1208_v57 = vld [vmem:[#allocation11 + $0xbf0] sm:$0xff] }
 0x2df   : > { %10596 = vrsqrt.f32 %v4900_v61  ;;  %4413 = vmatpush2.bf16.msra.mxu0 %v9594_v59  ;;  %v12226_v59 = vrot.slane %v4945_v7, %v12220_v44  ;;  %v12232_v61 = vsub.s32 4, %v12119_v22  ;;  %v9757_v8 = vcombine.high %v1200_v54, %v1208_v57  ;;  %v936_v7 = vld [vmem:[#allocation11 + $0x370] sm:$0xff] }
 0x2e0   : > { %4454 = vmatpush2.bf16.msra.mxu1 %v9850_v60  ;;  %4414 = vmatprep.subr.bf16.mxu0 %v9579_v45  ;;  %v9514_v45 = vcombine.low %v959_v40, %v967_v41  ;;  %v9756_v13 = vcombine.low %v1200_v54, %v1208_v57  ;;  %v9485_v15 = vcombine.high %v928_v4, %v936_v7  ;;  %v896_v40 = vld [vmem:[#allocation11 + $0x230] sm:$0xff] }
 0x2e1   : > { %4455 = vmatprep.subr.bf16.mxu1 %v9835_v63  ;;  %v9770_v63 = vcombine.low %v1215_v42, %v1223_v43  ;;  %v9484_v29 = vcombine.low %v928_v4, %v936_v7  ;;  %v904_v41 = vld [vmem:[#allocation11 + $0x270] sm:$0xff] }
 0x2e2   : > { %v1152_v43 = vld [vmem:[#allocation11 + $0xa30] sm:$0xff] }
 0x2e3   : > { %4415 = vmatpush2.bf16.msra.mxu0 %v9578_v10  ;;  %v1361_v10 = vrot.slane %v12239_v9, %v12232_v61  ;;  %v1144_v4 = vld [vmem:[#allocation11 + $0x9f0] sm:$0xff] }
 0x2e4   : > { %4456 = vmatpush2.bf16.msra.mxu1 %v9834_v11  ;;  %4416 = vmatprep.subr.bf16.mxu0 %v9563_v12  ;;  %v9500_v11 = vcombine.low %v944_v52, %v952_v53  ;;  %v1184_v12 = vld [vmem:[#allocation11 + $0xb30] sm:$0xff]  ;;  %v9453_v52 = vcombine.high %v896_v40, %v904_v41 }
 0x2e5   : > { %4457 = vmatprep.subr.bf16.mxu1 %v9819_v55  ;;  %v1192_v55 = vld [vmem:[#allocation11 + $0xb70] sm:$0xff] }
 0x2e6   : > { %v9740_v34 = vcombine.low %v1184_v12, %v1192_v55 }
 0x2e7   : > { %4417 = vmatpush2.bf16.msra.mxu0 %v9562_v19  ;;  %v9741_v19 = vcombine.high %v1184_v12, %v1192_v55 }
 0x2e8   : > { %4458 = vmatpush2.bf16.msra.mxu1 %v9818_v23  ;;  %4418 = vmatprep.subr.bf16.mxu0 %v9547_v24  ;;  %v1168_v23 = vld [vmem:[#allocation11 + $0xab0] sm:$0xff] }
 0x2e9   : > { %4459 = vmatprep.subr.bf16.mxu1 %v9803_v25  ;;  %v1176_v24 = vld [vmem:[#allocation11 + $0xaf0] sm:$0xff] }
 0x2ea   : > { %v10595_v56 = vpop.eup %10594 }
 0x2eb   : > { %4419 = vmatpush2.bf16.msra.mxu0 %v9546_v36 }
 0x2ec   : > { %v10597_v46 = vpop.eup %10596  ;;  %4460 = vmatpush2.bf16.msra.mxu1 %v9802_v37  ;;  %4420 = vmatprep.subr.bf16.mxu0 %v9531_v38 }
 0x2ed   : > { %v4946_v50 = vcombine.low %v10595_v56, %v10597_v46  ;;  %4461 = vmatprep.subr.bf16.mxu1 %v9787_v39  ;;  %v9725_v39 = vcombine.high %v1168_v23, %v1176_v24  ;;  %v1160_v56 = vld [vmem:[#allocation11 + $0xa70] sm:$0xff] }
 0x2ee   : > { %v9708_v12 = vcombine.low %v1152_v43, %v1160_v56 }
 0x2ef   : > { %v12229_v60 = vrot.slane %v4946_v50, %v12220_v44  ;;  %4421 = vmatpush2.bf16.msra.mxu0 %v9530_v35 }
 0x2f0   : > { %4462 = vmatpush2.bf16.msra.mxu1 %v9786_v47  ;;  %4422 = vmatprep.subr.bf16.mxu0 %v9515_v49  ;;  %v9468_v49 = vcombine.low %v912_v16, %v920_v17  ;;  %v864_v16 = vld [vmem:[#allocation11 + $0x130] sm:$0xff] }
 0x2f1   : > { %v4977_v6 = vcombine.low %v12226_v59, %v12229_v60  ;;  %4463 = vmatprep.subr.bf16.mxu1 %v9771_v51  ;;  %v9724_v51 = vcombine.low %v1168_v23, %v1176_v24  ;;  %v872_v17 = vld [vmem:[#allocation11 + $0x170] sm:$0xff] }
 0x2f3   : > { %4423 = vmatpush2.bf16.msra.mxu0 %v9514_v45  ;;  %v9709_v45 = vcombine.high %v1152_v43, %v1160_v56  ;;  %v9420_v43 = vcombine.low %v864_v16, %v872_v17 }
 0x2f4   : > { %4464 = vmatpush2.bf16.msra.mxu1 %v9770_v63  ;;  %4474 = vmatprep.subr.bf16.mxu0 %v9501_v5  ;;  %v880_v63 = vld [vmem:[#allocation11 + $0x1b0] sm:$0xff] }
 0x2f5   : > { %4515 = vmatprep.subr.bf16.mxu1 %v9757_v8  ;;  %v888_v5 = vld [vmem:[#allocation11 + $0x1f0] sm:$0xff] }
 0x2f6   : > { %v4180_v21 = vpop.f32.mrf.mxu0  ;;  %4425 = vmatmul.mubr.bf16.vlgmr.msra.gmra.mxu0 %v12141_v2  ;;  %v1136_v8 = vld [vmem:[#allocation11 + $0x9b0] sm:$0xff]  ;;  %v9437_v55 = vcombine.high %v880_v63, %v888_v5 }
 0x2f7   : > { %v4181_v25 = vadd.f32 %v4180_v21, %v1361_v10  ;;  %v4221_v26 = vpop.f32.mrf.mxu1  ;;  %4466 = vmatmul.mubr.bf16.vlgmr.msra.gmra.mxu1 %v12143_v3  ;;  %4475 = vmatpush1.bf16.msra.mxu0 %v9500_v11  ;;  %v9452_v11 = vcombine.low %v896_v40, %v904_v41  ;;  %v1120_v21 = vld [vmem:[#allocation11 + $0x930] sm:$0xff] }
 0x2f8   : > { %4506 = vmatprep.mubr.bf16.mxu0 %v12137_v0  ;;  %4516 = vmatpush1.bf16.msra.mxu1 %v9756_v13  ;;  %v4182_v31 = vpop.f32.mrf.mxu0  ;;  %v1112_v40 = vld [vmem:[#allocation11 + $0x8f0] sm:$0xff] }
 0x2f9   : > { %v12248_v36 = vadd.f32 %v4221_v26, %v4181_v25  ;;  %4547 = vmatprep.mubr.bf16.mxu1 %v12139_v1  ;;  %v4183_v37 = vadd.f32 %v4182_v31, %v1365_v14  ;;  %v4223_v38 = vpop.f32.mrf.mxu1  ;;  %4476 = vmatprep.subr.bf16.mxu0 %v9485_v15  ;;  %v9693_v15 = vcombine.high %v1136_v8, %v1144_v4 }
 0x2fa   : > { %v4184_v42 = vpop.f32.mrf.mxu0  ;;  %4517 = vmatprep.subr.bf16.mxu1 %v9741_v19  ;;  %v1128_v19 = vld [vmem:[#allocation11 + $0x970] sm:$0xff]  ;;  %v9436_v25 = vcombine.low %v880_v63, %v888_v5  ;;  %v9692_v26 = vcombine.low %v1136_v8, %v1144_v4 }
 0x2fb   : > { %v4662_v35 = vrot.slane %v12248_v36, 4  ;;  %v12252_v46 = vadd.f32 %v4223_v38, %v4183_v37  ;;  %v4225_v47 = vpop.f32.mrf.mxu1  ;;  %4477 = vmatpush1.bf16.msra.mxu0 %v9484_v29  ;;  %v9421_v29 = vcombine.high %v864_v16, %v872_v17  ;;  %v848_v37 = vld [vmem:[#allocation11 + $0xb0] sm:$0xff]  ;;  %v9676_v56 = vcombine.low %v1120_v21, %v1128_v19 }
 0x2fc   : > { %4518 = vmatpush1.bf16.msra.mxu1 %v9740_v34  ;;  %v4185_v50 = vpop.f32.mrf.mxu0  ;;  %4478 = vmatprep.subr.bf16.mxu0 %v9469_v18  ;;  %v9677_v18 = vcombine.high %v1120_v21, %v1128_v19  ;;  %v856_v38 = vld [vmem:[#allocation11 + $0xf0] sm:$0xff] }
 0x2fd   : > { %v4663_v53 = vadd.f32 %v4662_v35, %v12248_v36  ;;  %v4668_v54 = vrot.slane %v12252_v46, 4  ;;  %v4226_v57 = vpop.f32.mrf.mxu1  ;;  %4519 = vmatprep.subr.bf16.mxu1 %v9725_v39  ;;  %v1104_v39 = vld [vmem:[#allocation11 + $0x8b0] sm:$0xff]  ;;  %v9405_v35 = vcombine.high %v848_v37, %v856_v38  ;;  %v9404_v63 = vcombine.low %v848_v37, %v856_v38 }
 0x2fe   : > { %v9661_v50 = vcombine.high %v1104_v39, %v1112_v40  ;;  %v9660_v5 = vcombine.low %v1104_v39, %v1112_v40 }
 0x2ff   : > { %v4664_v7 = vrot.slane %v4663_v53, 2  ;;  %v4669_v10 = vadd.f32 %v4668_v54, %v12252_v46  ;;  %4479 = vmatpush1.bf16.msra.mxu0 %v9468_v49  ;;  %v1096_v54 = vld [vmem:[#allocation11 + $0x870] sm:$0xff] }
 0x300   : > { %4520 = vmatpush1.bf16.msra.mxu1 %v9724_v51  ;;  %4480 = vmatprep.subr.bf16.mxu0 %v9453_v52  ;;  %v832_v51 = vld [vmem:[#allocation11 + $0x30] sm:$0xff] }
 0x301   : > { %v4665_v13 = vadd.f32 %v4664_v7, %v4663_v53  ;;  %v4670_v14 = vrot.slane %v4669_v10, 2  ;;  %4521 = vmatprep.subr.bf16.mxu1 %v9709_v45  ;;  %v840_v52 = vld [vmem:[#allocation11 + $0x70] sm:$0xff] }
 0x302   : > { %v1088_v53 = vld [vmem:[#allocation11 + $0x830] sm:$0xff] }
 0x303   : > { %v4666_v23 = vrot.slane %v4665_v13, 1  ;;  %v4671_v24 = vadd.f32 %v4670_v14, %v4669_v10  ;;  %4481 = vmatpush1.bf16.msra.mxu0 %v9452_v11  ;;  %v9645_v7 = vcombine.high %v1088_v53, %v1096_v54  ;;  %v1072_v10 = vld [vmem:[#allocation11 + $0x7b0] sm:$0xff] }
 0x304   : > { %4522 = vmatpush1.bf16.msra.mxu1 %v9708_v12  ;;  %4482 = vmatprep.subr.bf16.mxu0 %v9437_v55  ;;  %v1080_v11 = vld [vmem:[#allocation11 + $0x7f0] sm:$0xff] }
 0x305   : > { %v4667_v31 = vadd.f32 %v4666_v23, %v4665_v13  ;;  %v4672_v34 = vrot.slane %v4671_v24, 1  ;;  %4523 = vmatprep.subr.bf16.mxu1 %v9693_v15  ;;  %v1328_v12 = vld [vmem:[#allocation11 + $0xfb0] sm:$0xff]  ;;  %v9644_v15 = vcombine.low %v1088_v53, %v1096_v54  ;;  %v9629_v16 = vcombine.high %v1072_v10, %v1080_v11 }
 0x306   : > { %v1336_v55 = vld [vmem:[#allocation11 + $0xff0] sm:$0xff] }
 0x307   : > { %v4739_v41 = vmul.f32 0.125, %v4667_v31  ;;  %v4673_v42 = vadd.f32 %v4672_v34, %v4671_v24  ;;  %4483 = vmatpush1.bf16.msra.mxu0 %v9436_v25  ;;  %v9885_v19 = vcombine.high %v1328_v12, %v1336_v55  ;;  %v1056_v23 = vld [vmem:[#allocation11 + $0x730] sm:$0xff]  ;;  %v9628_v34 = vcombine.low %v1072_v10, %v1080_v11 }
 0x308   : > { %4524 = vmatpush1.bf16.msra.mxu1 %v9692_v26  ;;  %4484 = vmatprep.subr.bf16.mxu0 %v9421_v29  ;;  %v1064_v24 = vld [vmem:[#allocation11 + $0x770] sm:$0xff] }
 0x309   : > { %v12258_v47 = vsub.f32 %v12248_v36, %v4739_v41  ;;  %v4740_v49 = vmul.f32 0.125, %v4673_v42  ;;  %4525 = vmatprep.subr.bf16.mxu1 %v9677_v18  ;;  %v9389_v36 = vcombine.high %v832_v51, %v840_v52  ;;  %v1312_v25 = vld [vmem:[#allocation11 + $0xf30] sm:$0xff]  ;;  %v9884_v18 = vcombine.low %v1328_v12, %v1336_v55 }
 0x30a   : > { %v1320_v26 = vld [vmem:[#allocation11 + $0xf70] sm:$0xff]  ;;  %v9613_v37 = vcombine.high %v1056_v23, %v1064_v24 }
 0x30b   : > { %v4771_v57 = vmul.f32 %v12258_v47, %v12258_v47  ;;  %v12263_v45 = vsub.f32 %v12252_v46, %v4740_v49  ;;  %4485 = vmatpush1.bf16.msra.mxu0 %v9420_v43  ;;  %v9388_v46 = vcombine.low %v832_v51, %v840_v52  ;;  %v9869_v40 = vcombine.high %v1312_v25, %v1320_v26  ;;  %v1040_v41 = vld [vmem:[#allocation11 + $0x6b0] sm:$0xff] }
 0x30c   : > { %4526 = vmatpush1.bf16.msra.mxu1 %v9676_v56  ;;  %4486 = vmatprep.subr.bf16.mxu0 %v9405_v35  ;;  %v1048_v42 = vld [vmem:[#allocation11 + $0x6f0] sm:$0xff]  ;;  %v9868_v51 = vcombine.low %v1312_v25, %v1320_v26 }
 0x30d   : > { %v4807_v8 = vrot.slane %v4771_v57, 4  ;;  %v4772_v4 = vmul.f32 %v12263_v45, %v12263_v45  ;;  %4527 = vmatprep.subr.bf16.mxu1 %v9661_v50  ;;  %v1296_v43 = vld [vmem:[#allocation11 + $0xeb0] sm:$0xff]  ;;  %v9612_v50 = vcombine.low %v1056_v23, %v1064_v24  ;;  %v9597_v52 = vcombine.high %v1040_v41, %v1048_v42 }
 0x30e   : > { %v1304_v56 = vld [vmem:[#allocation11 + $0xef0] sm:$0xff]  ;;  %v9596_v10 = vcombine.low %v1040_v41, %v1048_v42 }
 0x30f   : > { %v4808_v13 = vadd.f32 %v4807_v8, %v4771_v57  ;;  %v4813_v14 = vrot.slane %v4772_v4, 4  ;;  %4487 = vmatpush1.bf16.msra.mxu0 %v9404_v63  ;;  %v9853_v57 = vcombine.high %v1296_v43, %v1304_v56  ;;  %v1024_v63 = vld [vmem:[#allocation11 + $0x630] sm:$0xff]  ;;  %v9852_v11 = vcombine.low %v1296_v43, %v1304_v56 }
 0x310   : > { %4528 = vmatpush1.bf16.msra.mxu1 %v9660_v5  ;;  %4488 = vmatprep.subr.bf16.mxu0 %v9389_v36  ;;  %v1032_v5 = vld [vmem:[#allocation11 + $0x670] sm:$0xff] }
 0x311   : > { %v4809_v17 = vrot.slane %v4808_v13, 2  ;;  %v4814_v21 = vadd.f32 %v4813_v14, %v4772_v4  ;;  %4529 = vmatprep.subr.bf16.mxu1 %v9645_v7  ;;  %v1280_v36 = vld [vmem:[#allocation11 + $0xe30] sm:$0xff]  ;;  %v9581_v12 = vcombine.high %v1024_v63, %v1032_v5 }
 0x312   : > { %v1288_v8 = vld [vmem:[#allocation11 + $0xe70] sm:$0xff] }
 0x313   : > { %v4810_v29 = vadd.f32 %v4809_v17, %v4808_v13  ;;  %v4815_v31 = vrot.slane %v4814_v21, 2  ;;  %4489 = vmatpush1.bf16.msra.mxu0 %v9388_v46  ;;  %v9837_v13 = vcombine.high %v1280_v36, %v1288_v8  ;;  %v1008_v14 = vld [vmem:[#allocation11 + $0x5b0] sm:$0xff]  ;;  %v9580_v17 = vcombine.low %v1024_v63, %v1032_v5 }
 0x314   : > { %4530 = vmatpush1.bf16.msra.mxu1 %v9644_v15  ;;  %4490 = vmatprep.subr.bf16.mxu0 %v9629_v16  ;;  %v1016_v46 = vld [vmem:[#allocation11 + $0x5f0] sm:$0xff] }
 0x315   : > { %v4811_v38 = vrot.slane %v4810_v29, 1  ;;  %v4816_v39 = vadd.f32 %v4815_v31, %v4814_v21  ;;  %4531 = vmatprep.subr.bf16.mxu1 %v9885_v19  ;;  %v1264_v15 = vld [vmem:[#allocation11 + $0xdb0] sm:$0xff]  ;;  %v9836_v21 = vcombine.low %v1280_v36, %v1288_v8  ;;  %v9565_v19 = vcombine.high %v1008_v14, %v1016_v46 }
 0x316   : > { %v1272_v16 = vld [vmem:[#allocation11 + $0xdf0] sm:$0xff]  ;;  %v9564_v31 = vcombine.low %v1008_v14, %v1016_v46 }
 0x317   : > { %v4812_v35 = vadd.f32 %v4811_v38, %v4810_v29  ;;  %v4817_v49 = vrot.slane %v4816_v39, 1  ;;  %4491 = vmatpush2.bf16.msra.mxu0 %v9628_v34  ;;  %v9821_v23 = vcombine.high %v1264_v15, %v1272_v16  ;;  %v992_v24 = vld [vmem:[#allocation11 + $0x530] sm:$0xff]  ;;  %v9820_v34 = vcombine.low %v1264_v15, %v1272_v16  ;;  %v929_v16 = vld [vmem:[#allocation11 + $0x338] sm:$0xff] }
 0x318   : > { %4532 = vmatpush2.bf16.msra.mxu1 %v9884_v18  ;;  %4492 = vmatprep.subr.bf16.mxu0 %v9613_v37  ;;  %v1000_v25 = vld [vmem:[#allocation11 + $0x570] sm:$0xff]  ;;  %v12277_v15 = vsub.s32 7, %v12119_v22 }
 0x319   : > { %v4883_v53 = vmul.f32 0.125, %v4812_v35  ;;  %v4818_v54 = vadd.f32 %v4817_v49, %v4816_v39  ;;  %4533 = vmatprep.subr.bf16.mxu1 %v9869_v40  ;;  %v1248_v26 = vld [vmem:[#allocation11 + $0xd30] sm:$0xff]  ;;  %v9549_v18 = vcombine.high %v992_v24, %v1000_v25  ;;  %v9548_v42 = vcombine.low %v992_v24, %v1000_v25  ;;  %v1193_v24 = vld [vmem:[#allocation11 + $0xb78] sm:$0xff] }
 0x31a   : > { %v1256_v29 = vld [vmem:[#allocation11 + $0xd70] sm:$0xff] }
 0x31b   : > { %v4901_v4 = vadd.f32 1e-05, %v4883_v53  ;;  %v4884_v7 = vmul.f32 0.125, %v4818_v54  ;;  %4493 = vmatpush2.bf16.msra.mxu0 %v9612_v50  ;;  %v9805_v37 = vcombine.high %v1248_v26, %v1256_v29  ;;  %v976_v38 = vld [vmem:[#allocation11 + $0x4b0] sm:$0xff]  ;;  %v9804_v43 = vcombine.low %v1248_v26, %v1256_v29 }
 0x31c   : > { %4534 = vmatpush2.bf16.msra.mxu1 %v9868_v51  ;;  %4494 = vmatprep.subr.bf16.mxu0 %v9597_v52  ;;  %v984_v39 = vld [vmem:[#allocation11 + $0x4f0] sm:$0xff]  ;;  %v1373_v26 = vrot.slane %v12239_v9, %v12277_v15 }
 0x31d   : > { %v4902_v55 = vadd.f32 1e-05, %v4884_v7  ;;  %4535 = vmatprep.subr.bf16.mxu1 %v9853_v57  ;;  %10598 = vrsqrt.f32 %v4901_v4  ;;  %v1232_v40 = vld [vmem:[#allocation11 + $0xcb0] sm:$0xff]  ;;  %v9533_v56 = vcombine.high %v976_v38, %v984_v39  ;;  %v9532_v54 = vcombine.low %v976_v38, %v984_v39  ;;  %v945_v4 = vld [vmem:[#allocation11 + $0x3b8] sm:$0xff] }
 0x31e   : > { %v1240_v41 = vld [vmem:[#allocation11 + $0xcf0] sm:$0xff]  ;;  %v953_v7 = vld [vmem:[#allocation11 + $0x3f8] sm:$0xff] }
 0x31f   : > { %10600 = vrsqrt.f32 %v4902_v55  ;;  %4495 = vmatpush2.bf16.msra.mxu0 %v9596_v10  ;;  %v9789_v35 = vcombine.high %v1232_v40, %v1240_v41  ;;  %v960_v49 = vld [vmem:[#allocation11 + $0x430] sm:$0xff]  ;;  %v9788_v63 = vcombine.low %v1232_v40, %v1240_v41  ;;  %v1201_v10 = vld [vmem:[#allocation11 + $0xbb8] sm:$0xff]  ;;  %v12274_v55 = vsub.s32 6, %v12119_v22 }
 0x320   : > { %4536 = vmatpush2.bf16.msra.mxu1 %v9852_v11  ;;  %4496 = vmatprep.subr.bf16.mxu0 %v9581_v12  ;;  %v968_v50 = vld [vmem:[#allocation11 + $0x470] sm:$0xff]  ;;  %v1209_v11 = vld [vmem:[#allocation11 + $0xbf8] sm:$0xff]  ;;  %v9503_v14 = vcombine.high %v945_v4, %v953_v7 }
 0x321   : > { %4537 = vmatprep.subr.bf16.mxu1 %v9837_v13  ;;  %v1216_v51 = vld [vmem:[#allocation11 + $0xc30] sm:$0xff]  ;;  %v9517_v5 = vcombine.high %v960_v49, %v968_v50  ;;  %v9516_v12 = vcombine.low %v960_v49, %v968_v50  ;;  %v9759_v46 = vcombine.high %v1201_v10, %v1209_v11  ;;  %v9758_v25 = vcombine.low %v1201_v10, %v1209_v11  ;;  %v921_v22 = vld [vmem:[#allocation11 + $0x2f8] sm:$0xff] }
 0x322   : > { %v1224_v52 = vld [vmem:[#allocation11 + $0xc70] sm:$0xff]  ;;  %v1177_v38 = vld [vmem:[#allocation11 + $0xaf8] sm:$0xff] }
 0x323   : > { %4497 = vmatpush2.bf16.msra.mxu0 %v9580_v17  ;;  %v9773_v8 = vcombine.high %v1216_v51, %v1224_v52  ;;  %v9772_v13 = vcombine.low %v1216_v51, %v1224_v52  ;;  %v937_v17 = vld [vmem:[#allocation11 + $0x378] sm:$0xff] }
 0x324   : > { %4538 = vmatpush2.bf16.msra.mxu1 %v9836_v21  ;;  %4498 = vmatprep.subr.bf16.mxu0 %v9565_v19  ;;  %v1369_v21 = vrot.slane %v12239_v9, %v12274_v55  ;;  %v9502_v19 = vcombine.low %v945_v4, %v953_v7  ;;  %v9487_v29 = vcombine.high %v929_v16, %v937_v17  ;;  %v897_v51 = vld [vmem:[#allocation11 + $0x238] sm:$0xff] }
 0x325   : > { %4539 = vmatprep.subr.bf16.mxu1 %v9821_v23  ;;  %v1185_v23 = vld [vmem:[#allocation11 + $0xb38] sm:$0xff]  ;;  %v9486_v41 = vcombine.low %v929_v16, %v937_v17 }
 0x326   : > { %v9742_v9 = vcombine.low %v1185_v23, %v1193_v24  ;;  %v905_v52 = vld [vmem:[#allocation11 + $0x278] sm:$0xff] }
 0x327   : > { %4499 = vmatpush2.bf16.msra.mxu0 %v9564_v31  ;;  %v913_v31 = vld [vmem:[#allocation11 + $0x2b8] sm:$0xff]  ;;  %v9455_v11 = vcombine.high %v897_v51, %v905_v52 }
 0x328   : > { %4540 = vmatpush2.bf16.msra.mxu1 %v9820_v34  ;;  %4500 = vmatprep.subr.bf16.mxu0 %v9549_v18  ;;  %v9743_v18 = vcombine.high %v1185_v23, %v1193_v24  ;;  %v9470_v7 = vcombine.low %v913_v31, %v921_v22  ;;  %v881_v16 = vld [vmem:[#allocation11 + $0x1b8] sm:$0xff] }
 0x329   : > { %4541 = vmatprep.subr.bf16.mxu1 %v9805_v37  ;;  %v1169_v37 = vld [vmem:[#allocation11 + $0xab8] sm:$0xff] }
 0x32a   : > { %v12267_v53 = vpop.eup %10598  ;;  %v9727_v50 = vcombine.high %v1169_v37, %v1177_v38  ;;  %v889_v17 = vld [vmem:[#allocation11 + $0x1f8] sm:$0xff] }
 0x32b   : > { %4501 = vmatpush2.bf16.msra.mxu0 %v9548_v42 }
 0x32c   : > { %v12269_v57 = vpop.eup %10600  ;;  %4542 = vmatpush2.bf16.msra.mxu1 %v9804_v43  ;;  %4502 = vmatprep.subr.bf16.mxu0 %v9533_v56  ;;  %v9471_v43 = vcombine.high %v913_v31, %v921_v22 }
 0x32d   : > { %v4947_v36 = vcombine.low %v12267_v53, %v12269_v57  ;;  %4543 = vmatprep.subr.bf16.mxu1 %v9789_v35  ;;  %v5145_v53 = vld [vmem:[#allocation16] sm:$0xff]  ;;  %v4895_v57 = vld [vmem:[#allocation14] sm:$0xff] }
 0x32e   : > { %v5164_v60 = vrot.slane %v5145_v53, %v12131_v33 }
 0x32f   : > { %4503 = vmatpush2.bf16.msra.mxu0 %v9532_v54 }
 0x330   : > { %4544 = vmatpush2.bf16.msra.mxu1 %v9788_v63  ;;  %4504 = vmatprep.subr.bf16.mxu0 %v9517_v5  ;;  %v1153_v63 = vld [vmem:[#allocation11 + $0xa38] sm:$0xff] }
 0x331   : > { %4545 = vmatprep.subr.bf16.mxu1 %v9773_v8  ;;  %v1161_v5 = vld [vmem:[#allocation11 + $0xa78] sm:$0xff] }
 0x333   : > { %4505 = vmatpush2.bf16.msra.mxu0 %v9516_v12 }
 0x334   : > { %4546 = vmatpush2.bf16.msra.mxu1 %v9772_v13  ;;  %4556 = vmatprep.subr.bf16.mxu0 %v9503_v14 }
 0x335   : > { %4597 = vmatprep.subr.bf16.mxu1 %v9759_v46  ;;  %v9711_v46 = vcombine.high %v1153_v63, %v1161_v5 }
 0x336   : > { %v4262_v34 = vpop.f32.mrf.mxu0  ;;  %4507 = vmatmul.mubr.bf16.vlgmr.msra.gmra.mxu0 %v12141_v2 }
 0x337   : > { %v4263_v39 = vadd.f32 %v4262_v34, %v1369_v21  ;;  %v4303_v40 = vpop.f32.mrf.mxu1  ;;  %4548 = vmatmul.mubr.bf16.vlgmr.msra.gmra.mxu1 %v12143_v3  ;;  %4557 = vmatpush1.bf16.msra.mxu0 %v9502_v19  ;;  %v1137_v21 = vld [vmem:[#allocation11 + $0x9b8] sm:$0xff] }
 0x338   : > { %4588 = vmatprep.mubr.bf16.mxu0 %v12137_v0  ;;  %4598 = vmatpush1.bf16.msra.mxu1 %v9758_v25  ;;  %v4264_v42 = vpop.f32.mrf.mxu0  ;;  %v1145_v19 = vld [vmem:[#allocation11 + $0x9f8] sm:$0xff]  ;;  %v9454_v25 = vcombine.low %v897_v51, %v905_v52 }
 0x339   : > { %v12286_v56 = vadd.f32 %v4303_v40, %v4263_v39  ;;  %4629 = vmatprep.mubr.bf16.mxu1 %v12139_v1  ;;  %v4265_v35 = vadd.f32 %v4264_v42, %v1373_v26  ;;  %v4305_v49 = vpop.f32.mrf.mxu1  ;;  %4558 = vmatprep.subr.bf16.mxu0 %v9487_v29  ;;  %v9726_v1 = vcombine.low %v1169_v37, %v1177_v38  ;;  %v873_v37 = vld [vmem:[#allocation11 + $0x178] sm:$0xff] }
 0x33a   : > { %v4266_v54 = vpop.f32.mrf.mxu0  ;;  %4599 = vmatprep.subr.bf16.mxu1 %v9743_v18  ;;  %v9710_v26 = vcombine.low %v1153_v63, %v1161_v5  ;;  %v9439_v29 = vcombine.high %v881_v16, %v889_v17  ;;  %v9695_v34 = vcombine.high %v1137_v21, %v1145_v19  ;;  %v865_v18 = vld [vmem:[#allocation11 + $0x138] sm:$0xff]  ;;  %v9438_v42 = vcombine.low %v881_v16, %v889_v17 }
 0x33b   : > { %v4674_v0 = vrot.slane %v12286_v56, 4  ;;  %v12290_v8 = vadd.f32 %v4305_v49, %v4265_v35  ;;  %v4307_v4 = vpop.f32.mrf.mxu1  ;;  %4559 = vmatpush1.bf16.msra.mxu0 %v9486_v41  ;;  %v1121_v38 = vld [vmem:[#allocation11 + $0x938] sm:$0xff] }
 0x33c   : > { %4600 = vmatpush1.bf16.msra.mxu1 %v9742_v9  ;;  %v4267_v10 = vpop.f32.mrf.mxu0  ;;  %4560 = vmatprep.subr.bf16.mxu0 %v9471_v43  ;;  %v1129_v39 = vld [vmem:[#allocation11 + $0x978] sm:$0xff]  ;;  %v9694_v9 = vcombine.low %v1137_v21, %v1145_v19  ;;  %v9423_v43 = vcombine.high %v865_v18, %v873_v37  ;;  %v9422_v4 = vcombine.low %v865_v18, %v873_v37 }
 0x33d   : > { %v4675_v12 = vadd.f32 %v4674_v0, %v12286_v56  ;;  %v4680_v13 = vrot.slane %v12290_v8, 4  ;;  %v4308_v14 = vpop.f32.mrf.mxu1  ;;  %4601 = vmatprep.subr.bf16.mxu1 %v9727_v50  ;;  %v9679_v50 = vcombine.high %v1121_v38, %v1129_v39  ;;  %v849_v51 = vld [vmem:[#allocation11 + $0xb8] sm:$0xff] }
 0x33e   : > { %v857_v52 = vld [vmem:[#allocation11 + $0xf8] sm:$0xff] }
 0x33f   : > { %v4676_v23 = vrot.slane %v4675_v12, 2  ;;  %v4681_v24 = vadd.f32 %v4680_v13, %v12290_v8  ;;  %4561 = vmatpush1.bf16.msra.mxu0 %v9470_v7  ;;  %v1105_v54 = vld [vmem:[#allocation11 + $0x8b8] sm:$0xff]  ;;  %v9678_v7 = vcombine.low %v1121_v38, %v1129_v39  ;;  %v9407_v10 = vcombine.high %v849_v51, %v857_v52 }
 0x340   : > { %4602 = vmatpush1.bf16.msra.mxu1 %v9726_v1  ;;  %4562 = vmatprep.subr.bf16.mxu0 %v9455_v11  ;;  %v1113_v63 = vld [vmem:[#allocation11 + $0x8f8] sm:$0xff]  ;;  %v9406_v19 = vcombine.low %v849_v51, %v857_v52 }
 0x341   : > { %v4677_v31 = vadd.f32 %v4676_v23, %v4675_v12  ;;  %v4682_v22 = vrot.slane %v4681_v24, 2  ;;  %4603 = vmatprep.subr.bf16.mxu1 %v9711_v46  ;;  %v9663_v12 = vcombine.high %v1105_v54, %v1113_v63  ;;  %v833_v13 = vld [vmem:[#allocation11 + $0x38] sm:$0xff]  ;;  %v9662_v23 = vcombine.low %v1105_v54, %v1113_v63 }
 0x342   : > { %v841_v14 = vld [vmem:[#allocation11 + $0x78] sm:$0xff] }
 0x343   : > { %v4678_v40 = vrot.slane %v4677_v31, 1  ;;  %v4683_v41 = vadd.f32 %v4682_v22, %v4681_v24  ;;  %4563 = vmatpush1.bf16.msra.mxu0 %v9454_v25  ;;  %v1089_v46 = vld [vmem:[#allocation11 + $0x838] sm:$0xff] }
 0x344   : > { %4604 = vmatpush1.bf16.msra.mxu1 %v9710_v26  ;;  %4564 = vmatprep.subr.bf16.mxu0 %v9439_v29  ;;  %v1097_v16 = vld [vmem:[#allocation11 + $0x878] sm:$0xff] }
 0x345   : > { %v4679_v35 = vadd.f32 %v4678_v40, %v4677_v31  ;;  %v4684_v49 = vrot.slane %v4683_v41, 1  ;;  %4605 = vmatprep.subr.bf16.mxu1 %v9695_v34  ;;  %v9647_v26 = vcombine.high %v1089_v46, %v1097_v16  ;;  %v1073_v29 = vld [vmem:[#allocation11 + $0x7b8] sm:$0xff]  ;;  %v9646_v38 = vcombine.low %v1089_v46, %v1097_v16 }
 0x346   : > { %v1081_v31 = vld [vmem:[#allocation11 + $0x7f8] sm:$0xff] }
 0x347   : > { %v4741_v5 = vmul.f32 0.125, %v4679_v35  ;;  %v4685_v0 = vadd.f32 %v4684_v49, %v4683_v41  ;;  %4565 = vmatpush1.bf16.msra.mxu0 %v9438_v42  ;;  %v1329_v22 = vld [vmem:[#allocation11 + $0xfb8] sm:$0xff]  ;;  %v9631_v39 = vcombine.high %v1073_v29, %v1081_v31  ;;  %v9630_v52 = vcombine.low %v1073_v29, %v1081_v31 }
 0x348   : > { %4606 = vmatpush1.bf16.msra.mxu1 %v9694_v9  ;;  %4566 = vmatprep.subr.bf16.mxu0 %v9423_v43  ;;  %v1337_v34 = vld [vmem:[#allocation11 + $0xff8] sm:$0xff] }
 0x349   : > { %v12296_v1 = vsub.f32 %v12286_v56, %v4741_v5  ;;  %v4742_v11 = vmul.f32 0.125, %v4685_v0  ;;  %4607 = vmatprep.subr.bf16.mxu1 %v9679_v50  ;;  %v9391_v56 = vcombine.high %v833_v13, %v841_v14  ;;  %v9887_v42 = vcombine.high %v1329_v22, %v1337_v34  ;;  %v1057_v9 = vld [vmem:[#allocation11 + $0x738] sm:$0xff] }
 0x34a   : > { %v1065_v43 = vld [vmem:[#allocation11 + $0x778] sm:$0xff]  ;;  %v9886_v54 = vcombine.low %v1329_v22, %v1337_v34 }
 0x34b   : > { %v4773_v17 = vmul.f32 %v12296_v1, %v12296_v1  ;;  %v12301_v21 = vsub.f32 %v12290_v8, %v4742_v11  ;;  %4567 = vmatpush1.bf16.msra.mxu0 %v9422_v4  ;;  %v9390_v8 = vcombine.low %v833_v13, %v841_v14  ;;  %v1313_v35 = vld [vmem:[#allocation11 + $0xf38] sm:$0xff]  ;;  %v9615_v63 = vcombine.high %v1057_v9, %v1065_v43 }
 0x34c   : > { %4608 = vmatpush1.bf16.msra.mxu1 %v9678_v7  ;;  %4568 = vmatprep.subr.bf16.mxu0 %v9407_v10  ;;  %v1321_v49 = vld [vmem:[#allocation11 + $0xf78] sm:$0xff]  ;;  %v9614_v46 = vcombine.low %v1057_v9, %v1065_v43 }
 0x34d   : > { %v4819_v24 = vrot.slane %v4773_v17, 4  ;;  %v4774_v25 = vmul.f32 %v12301_v21, %v12301_v21  ;;  %4609 = vmatprep.subr.bf16.mxu1 %v9663_v12  ;;  %v9871_v4 = vcombine.high %v1313_v35, %v1321_v49  ;;  %v1041_v7 = vld [vmem:[#allocation11 + $0x6b8] sm:$0xff]  ;;  %v9870_v16 = vcombine.low %v1313_v35, %v1321_v49 }
 0x34e   : > { %v1049_v10 = vld [vmem:[#allocation11 + $0x6f8] sm:$0xff] }
 0x34f   : > { %v4820_v18 = vadd.f32 %v4819_v24, %v4773_v17  ;;  %v4825_v37 = vrot.slane %v4774_v25, 4  ;;  %4569 = vmatpush1.bf16.msra.mxu0 %v9406_v19  ;;  %v1297_v11 = vld [vmem:[#allocation11 + $0xeb8] sm:$0xff]  ;;  %v9599_v17 = vcombine.high %v1041_v7, %v1049_v10  ;;  %v9598_v34 = vcombine.low %v1041_v7, %v1049_v10 }
 0x350   : > { %4610 = vmatpush1.bf16.msra.mxu1 %v9662_v23  ;;  %4570 = vmatprep.subr.bf16.mxu0 %v9391_v56  ;;  %v1305_v12 = vld [vmem:[#allocation11 + $0xef8] sm:$0xff] }
 0x351   : > { %v4821_v40 = vrot.slane %v4820_v18, 2  ;;  %v4826_v41 = vadd.f32 %v4825_v37, %v4774_v25  ;;  %4611 = vmatprep.subr.bf16.mxu1 %v9647_v26  ;;  %v9855_v56 = vcombine.high %v1297_v11, %v1305_v12  ;;  %v1025_v24 = vld [vmem:[#allocation11 + $0x638] sm:$0xff] }
 0x352   : > { %v1033_v25 = vld [vmem:[#allocation11 + $0x678] sm:$0xff] }
 0x353   : > { %v4822_v50 = vadd.f32 %v4821_v40, %v4820_v18  ;;  %v4827_v51 = vrot.slane %v4826_v41, 2  ;;  %4571 = vmatpush1.bf16.msra.mxu0 %v9390_v8  ;;  %v1281_v26 = vld [vmem:[#allocation11 + $0xe38] sm:$0xff]  ;;  %v9854_v18 = vcombine.low %v1297_v11, %v1305_v12  ;;  %v9583_v37 = vcombine.high %v1025_v24, %v1033_v25 }
 0x354   : > { %4612 = vmatpush1.bf16.msra.mxu1 %v9646_v38  ;;  %4572 = vmatprep.subr.bf16.mxu0 %v9631_v39  ;;  %v1289_v29 = vld [vmem:[#allocation11 + $0xe78] sm:$0xff]  ;;  %v9582_v9 = vcombine.low %v1025_v24, %v1033_v25 }
 0x355   : > { %v4823_v5 = vrot.slane %v4822_v50, 1  ;;  %v4828_v0 = vadd.f32 %v4827_v51, %v4826_v41  ;;  %4613 = vmatprep.subr.bf16.mxu1 %v9887_v42  ;;  %v9839_v38 = vcombine.high %v1281_v26, %v1289_v29  ;;  %v1009_v39 = vld [vmem:[#allocation11 + $0x5b8] sm:$0xff]  ;;  %v9838_v43 = vcombine.low %v1281_v26, %v1289_v29 }
 0x356   : > { %v1017_v40 = vld [vmem:[#allocation11 + $0x5f8] sm:$0xff] }
 0x357   : > { %v4824_v13 = vadd.f32 %v4823_v5, %v4822_v50  ;;  %v4829_v14 = vrot.slane %v4828_v0, 1  ;;  %4573 = vmatpush2.bf16.msra.mxu0 %v9630_v52  ;;  %v1265_v41 = vld [vmem:[#allocation11 + $0xdb8] sm:$0xff]  ;;  %v9567_v35 = vcombine.high %v1009_v39, %v1017_v40 }
 0x358   : > { %4614 = vmatpush2.bf16.msra.mxu1 %v9886_v54  ;;  %4574 = vmatprep.subr.bf16.mxu0 %v9615_v63  ;;  %v1273_v42 = vld [vmem:[#allocation11 + $0xdf8] sm:$0xff]  ;;  %v9566_v63 = vcombine.low %v1009_v39, %v1017_v40  ;;  %v12310_v40 = vld [vmem:[#allocation13 + $0x8] sm:$0xff] }
 0x359   : > { %v4885_v19 = vmul.f32 0.125, %v4824_v13  ;;  %v4830_v23 = vadd.f32 %v4829_v14, %v4828_v0  ;;  %4615 = vmatprep.subr.bf16.mxu1 %v9871_v4  ;;  %v9823_v49 = vcombine.high %v1265_v41, %v1273_v42  ;;  %v993_v50 = vld [vmem:[#allocation11 + $0x538] sm:$0xff]  ;;  %v9822_v5 = vcombine.low %v1265_v41, %v1273_v42 }
 0x35a   : > { %v1001_v51 = vld [vmem:[#allocation11 + $0x578] sm:$0xff]  ;;  %v4985_v41 = vrot.slane %v4977_v6, %v12220_v44  ;;  %v5168_v6 = vrot.slane %v5145_v53, %v12232_v61 }
 0x35b   : > { %v4903_v31 = vadd.f32 1e-05, %v4885_v19  ;;  %v4886_v22 = vmul.f32 0.125, %v4830_v23  ;;  %4575 = vmatpush2.bf16.msra.mxu0 %v9614_v46  ;;  %v1249_v52 = vld [vmem:[#allocation11 + $0xd38] sm:$0xff]  ;;  %v9551_v0 = vcombine.high %v993_v50, %v1001_v51  ;;  %v9550_v13 = vcombine.low %v993_v50, %v1001_v51 }
 0x35c   : > { %4616 = vmatpush2.bf16.msra.mxu1 %v9870_v16  ;;  %4576 = vmatprep.subr.bf16.mxu0 %v9599_v17  ;;  %v1257_v54 = vld [vmem:[#allocation11 + $0xd78] sm:$0xff]  ;;  %v5172_v51 = vrot.slane %v5145_v53, %v12237_v62 }
 0x35d   : > { %v4904_v8 = vadd.f32 1e-05, %v4886_v22  ;;  %4617 = vmatprep.subr.bf16.mxu1 %v9855_v56  ;;  %10602 = vrsqrt.f32 %v4903_v31  ;;  %v9807_v4 = vcombine.high %v1249_v52, %v1257_v54  ;;  %v977_v7 = vld [vmem:[#allocation11 + $0x4b8] sm:$0xff]  ;;  %v9806_v14 = vcombine.low %v1249_v52, %v1257_v54 }
 0x35e   : > { %v985_v10 = vld [vmem:[#allocation11 + $0x4f8] sm:$0xff]  ;;  %v5176_v54 = vrot.slane %v5145_v53, %v12274_v55 }
 0x35f   : > { %10604 = vrsqrt.f32 %v4904_v8  ;;  %4577 = vmatpush2.bf16.msra.mxu0 %v9598_v34  ;;  %v1233_v11 = vld [vmem:[#allocation11 + $0xcb8] sm:$0xff]  ;;  %v9535_v46 = vcombine.high %v977_v7, %v985_v10  ;;  %v9534_v25 = vcombine.low %v977_v7, %v985_v10 }
 0x360   : > { %4618 = vmatpush2.bf16.msra.mxu1 %v9854_v18  ;;  %4578 = vmatprep.subr.bf16.mxu0 %v9583_v37  ;;  %v1241_v12 = vld [vmem:[#allocation11 + $0xcf8] sm:$0xff]  ;;  %v4969_v18 = vrot.slane %v4947_v36, %v12220_v44  ;;  %v1377_v36 = vrot.slane %v12310_v40, %v12122_v27 }
 0x361   : > { %4619 = vmatprep.subr.bf16.mxu1 %v9839_v38  ;;  %v9791_v16 = vcombine.high %v1233_v11, %v1241_v12  ;;  %v961_v17 = vld [vmem:[#allocation11 + $0x438] sm:$0xff]  ;;  %v9790_v29 = vcombine.low %v1233_v11, %v1241_v12 }
 0x362   : > { %v969_v19 = vld [vmem:[#allocation11 + $0x478] sm:$0xff] }
 0x363   : > { %4579 = vmatpush2.bf16.msra.mxu0 %v9582_v9  ;;  %v1217_v23 = vld [vmem:[#allocation11 + $0xc38] sm:$0xff]  ;;  %v9519_v31 = vcombine.high %v961_v17, %v969_v19  ;;  %v9518_v8 = vcombine.low %v961_v17, %v969_v19 }
 0x364   : > { %4620 = vmatpush2.bf16.msra.mxu1 %v9838_v43  ;;  %4580 = vmatprep.subr.bf16.mxu0 %v9567_v35  ;;  %v1225_v56 = vld [vmem:[#allocation11 + $0xc78] sm:$0xff]  ;;  %v5152_v43 = vrot.slane %v5145_v53, %v12122_v27  ;;  %v5156_v35 = vrot.slane %v5145_v53, %v12128_v32 }
 0x365   : > { %4621 = vmatprep.subr.bf16.mxu1 %v9823_v49  ;;  %v9775_v34 = vcombine.high %v1217_v23, %v1225_v56  ;;  %v9774_v38 = vcombine.low %v1217_v23, %v1225_v56  ;;  %v5160_v49 = vrot.slane %v5145_v53, %v12125_v28 }
 0x367   : > { %4581 = vmatpush2.bf16.msra.mxu0 %v9566_v63  ;;  %v5180_v63 = vrot.slane %v5145_v53, %v12277_v15 }
 0x368   : > { %4622 = vmatpush2.bf16.msra.mxu1 %v9822_v5  ;;  %4582 = vmatprep.subr.bf16.mxu0 %v9551_v0  ;;  %v1381_v0 = vrot.slane %v12310_v40, %v12128_v32 }
 0x369   : > { %4623 = vmatprep.subr.bf16.mxu1 %v9807_v4 }
 0x36a   : > { %v10603_v24 = vpop.eup %10602 }
 0x36b   : > { %4583 = vmatpush2.bf16.msra.mxu0 %v9550_v13 }
 0x36c   : > { %v10605_v26 = vpop.eup %10604  ;;  %4624 = vmatpush2.bf16.msra.mxu1 %v9806_v14  ;;  %4584 = vmatprep.subr.bf16.mxu0 %v9535_v46 }
 0x36d   : > { %v4948_v22 = vcombine.low %v10603_v24, %v10605_v26  ;;  %4625 = vmatprep.subr.bf16.mxu1 %v9791_v16 }
 0x36f   : > { %v4976_v37 = vrot.slane %v4948_v22, %v12220_v44  ;;  %4585 = vmatpush2.bf16.msra.mxu0 %v9534_v25 }
 0x370   : > { %4626 = vmatpush2.bf16.msra.mxu1 %v9790_v29  ;;  %4586 = vmatprep.subr.bf16.mxu0 %v9519_v31 }
 0x371   : > { %v4978_v39 = vcombine.low %v4969_v18, %v4976_v37  ;;  %4627 = vmatprep.subr.bf16.mxu1 %v9775_v34 }
 0x373   : > { %v4992_v42 = vrot.slane %v4978_v39, %v12220_v44  ;;  %4587 = vmatpush2.bf16.msra.mxu0 %v9518_v8 }
 0x374   : > { %4628 = vmatpush2.bf16.msra.mxu1 %v9774_v38 }
 0x375   : > { %v4993_v9 = vcombine.low %v4985_v41, %v4992_v42 }
 0x376   : > { %v4344_v50 = vpop.f32.mrf.mxu0  ;;  %4589 = vmatmul.mubr.bf16.vlgmr.msra.gmra.mxu0 %v12141_v2 }
 0x377   : > { %v5045_v59 = vmul.f32 %v4993_v9, %v4895_v57  ;;  %v4385_v52 = vpop.f32.mrf.mxu1  ;;  %4630 = vmatmul.mubr.bf16.vlgmr.msra.gmra.mxu1 %v12143_v3  ;;  %v4345_v5 = vadd.f32 %v4344_v50, %v1377_v36 }
 0x378   : > { %v4346_v4 = vpop.f32.mrf.mxu0 }
 0x379   : > { %v5052_v2 = vrot.slane %v5045_v59, %v12122_v27  ;;  %v5056_v7 = vrot.slane %v5045_v59, %v12128_v32  ;;  %v5060_v10 = vrot.slane %v5045_v59, %v12125_v28  ;;  %v5064_v11 = vrot.slane %v5045_v59, %v12131_v33  ;;  %v4387_v12 = vpop.f32.mrf.mxu1 }
 0x37a   : > { %v5068_v3 = vrot.slane %v5045_v59, %v12232_v61  ;;  %v5072_v13 = vrot.slane %v5045_v59, %v12237_v62  ;;  %v5076_v14 = vrot.slane %v5045_v59, %v12274_v55  ;;  %v5080_v46 = vrot.slane %v5045_v59, %v12277_v15  ;;  %v4348_v16 = vpop.f32.mrf.mxu0 }
 0x37b   : > { %v5129_v17 = vmul.f32 %v5052_v2, %v12178_v20  ;;  %v5130_v19 = vmul.f32 %v5056_v7, %v12183_v30  ;;  %v5131_v23 = vmul.f32 %v5060_v10, %v12210_v48  ;;  %v5132_v56 = vmul.f32 %v5064_v11, %v12215_v58  ;;  %v4389_v24 = vpop.f32.mrf.mxu1 }
 0x37c   : > { %v5133_v25 = vmul.f32 %v5068_v3, %v12258_v47  ;;  %v5134_v26 = vmul.f32 %v5072_v13, %v12263_v45  ;;  %v5135_v29 = vmul.f32 %v5076_v14, %v12296_v1  ;;  %v5136_v31 = vmul.f32 %v5080_v46, %v12301_v21  ;;  %v4349_v22 = vpop.f32.mrf.mxu0 }
 0x37d   : > { %v5229_v34 = vadd.f32 %v5152_v43, %v5129_v17  ;;  %v5230_v18 = vadd.f32 %v5156_v35, %v5130_v19  ;;  %v5231_v37 = vadd.f32 %v5160_v49, %v5131_v23  ;;  %v5232_v20 = vadd.f32 %v5164_v60, %v5132_v56  ;;  %v4390_v8 = vpop.f32.mrf.mxu1 }
 0x37e   : > { %v5233_v30 = vadd.f32 %v5168_v6, %v5133_v25  ;;  %v5234_v38 = vadd.f32 %v5172_v51, %v5134_v26  ;;  %v5235_v48 = vadd.f32 %v5176_v54, %v5135_v29  ;;  %v5236_v39 = vadd.f32 %v5180_v63, %v5136_v31 }
 0x37f   : > { %v5245_v58 = vmax.f32 %v5229_v34, 0.0  ;;  %v5246_v41 = vmax.f32 %v5230_v18, 0.0  ;;  %v5247_v42 = vmax.f32 %v5231_v37, 0.0  ;;  %v5248_v47 = vmax.f32 %v5232_v20, 0.0 }
 0x380   : > { %v5249_v53 = vmax.f32 %v5233_v30, 0.0  ;;  %v5250_v45 = vmax.f32 %v5234_v38, 0.0  ;;  %v5251_v57 = vmax.f32 %v5235_v48, 0.0  ;;  %v5252_v1 = vmax.f32 %v5236_v39, 0.0 }
 0x381   : > { %v10428_v36 = vpack.c.bf16 %v5246_v41, %v5245_v58  ;;  %v10429_v21 = vpack.c.bf16 %v5248_v47, %v5247_v42  ;;  %v4386_v9 = vadd.f32 %v4385_v52, %v4345_v5  ;;  %v4347_v43 = vadd.f32 %v4346_v4, %v1381_v0 }
 0x382   : > { %v10430_v35 = vpack.c.bf16 %v5250_v45, %v5249_v53  ;;  %v10431_v49 = vpack.c.bf16 %v5252_v1, %v5251_v57  ;;  %v1385_v30 = vrot.slane %v12310_v40, %v12125_v28  ;;  %v1389_v39 = vrot.slane %v12310_v40, %v12131_v33 }
 0x383   : > { %5325 = vst [vmem:[#allocation2 + $0x30] sm:$0xff] %v10428_v36  ;;  %5326 = vst [vmem:[#allocation2] sm:$0xff] %v10429_v21  ;;  %v4686_v50 = vrot.slane %v4386_v9, 4  ;;  %v4388_v59 = vadd.f32 %v4387_v12, %v4347_v43 }
 0x384   : > { %5327 = vst [vmem:[#allocation2 + $0x18] sm:$0xff] %v10430_v35  ;;  %5328 = vst [vmem:[#allocation2 + $0x10] sm:$0xff] %v10431_v49 }
 0x385   : > { %v4687_v60 = vadd.f32 %v4686_v50, %v4386_v9  ;;  %v4692_v6 = vrot.slane %v4388_v59, 4 }
 0x387   : > { %v4688_v51 = vrot.slane %v4687_v60, 2  ;;  %v4693_v54 = vadd.f32 %v4692_v6, %v4388_v59 }
 0x389   : > { %v4689_v63 = vadd.f32 %v4688_v51, %v4687_v60  ;;  %v4694_v2 = vrot.slane %v4693_v54, 2 }
 0x38b   : > { %v4690_v7 = vrot.slane %v4689_v63, 1  ;;  %v4695_v10 = vadd.f32 %v4694_v2, %v4693_v54 }
 0x38d   : > { %v4691_v11 = vadd.f32 %v4690_v7, %v4689_v63  ;;  %v4696_v3 = vrot.slane %v4695_v10, 1 }
 0x38f   : > { %v4743_v52 = vmul.f32 0.125, %v4691_v11  ;;  %v4697_v5 = vadd.f32 %v4696_v3, %v4695_v10 }
 0x391   : > { %v12347_v0 = vsub.f32 %v4386_v9, %v4743_v52  ;;  %v4744_v4 = vmul.f32 0.125, %v4697_v5 }
 0x393   : > { %v4775_v12 = vmul.f32 %v12347_v0, %v12347_v0  ;;  %v12351_v13 = vsub.f32 %v4388_v59, %v4744_v4 }
 0x395   : > { %v4831_v14 = vrot.slane %v4775_v12, 4  ;;  %v4776_v46 = vmul.f32 %v12351_v13, %v12351_v13 }
 0x397   : > { %v4832_v16 = vadd.f32 %v4831_v14, %v4775_v12  ;;  %v4837_v17 = vrot.slane %v4776_v46, 4 }
 0x399   : > { %v4833_v19 = vrot.slane %v4832_v16, 2  ;;  %v4838_v23 = vadd.f32 %v4837_v17, %v4776_v46 }
 0x39b   : > { %v4834_v56 = vadd.f32 %v4833_v19, %v4832_v16  ;;  %v4839_v24 = vrot.slane %v4838_v23, 2 }
 0x39d   : > { %v4835_v25 = vrot.slane %v4834_v56, 1  ;;  %v4840_v26 = vadd.f32 %v4839_v24, %v4838_v23 }
 0x39f   : > { %v4836_v29 = vadd.f32 %v4835_v25, %v4834_v56  ;;  %v4841_v31 = vrot.slane %v4840_v26, 1 }
 0x3a1   : > { %v4887_v22 = vmul.f32 0.125, %v4836_v29  ;;  %v4842_v34 = vadd.f32 %v4841_v31, %v4840_v26 }
 0x3a3   : > { %v4905_v18 = vadd.f32 1e-05, %v4887_v22  ;;  %v4888_v37 = vmul.f32 0.125, %v4842_v34 }
 0x3a5   : > { %v4906_v20 = vadd.f32 1e-05, %v4888_v37  ;;  %10606 = vrsqrt.f32 %v4905_v18 }
 0x3a7   : > { %10608 = vrsqrt.f32 %v4906_v20 }
 0x3b2   : > { %v10607_v8 = vpop.eup %10606 }
 0x3b4   : > { %v10609_v38 = vpop.eup %10608 }
 0x3b5   : > { %v4994_v48 = vcombine.low %v10607_v8, %v10609_v38 }
 0x3b6   : > { %v4426_v58 = vpop.f32.mrf.mxu0 }
 0x3b7   : > { %v4427_v41 = vadd.f32 %v4426_v58, %v1385_v30  ;;  %v4467_v42 = vpop.f32.mrf.mxu1  ;;  %v12368_v38 = vrot.slane %v4994_v48, %v12220_v44 }
 0x3b8   : > { %v4428_v47 = vpop.f32.mrf.mxu0 }
 0x3b9   : > { %v4468_v53 = vadd.f32 %v4467_v42, %v4427_v41  ;;  %v4429_v45 = vadd.f32 %v4428_v47, %v1389_v39  ;;  %v4469_v57 = vpop.f32.mrf.mxu1  ;;  %v1393_v41 = vrot.slane %v12310_v40, %v12232_v61  ;;  %v1397_v42 = vrot.slane %v12310_v40, %v12237_v62 }
 0x3ba   : > { %v4430_v1 = vpop.f32.mrf.mxu0 }
 0x3bb   : > { %v4698_v36 = vrot.slane %v4468_v53, 4  ;;  %v4470_v21 = vadd.f32 %v4469_v57, %v4429_v45  ;;  %v4471_v9 = vpop.f32.mrf.mxu1 }
 0x3bc   : > { %v4431_v43 = vpop.f32.mrf.mxu0 }
 0x3bd   : > { %v4699_v35 = vadd.f32 %v4698_v36, %v4468_v53  ;;  %v4704_v49 = vrot.slane %v4470_v21, 4  ;;  %v4472_v50 = vpop.f32.mrf.mxu1 }
 0x3bf   : > { %v4700_v59 = vrot.slane %v4699_v35, 2  ;;  %v4705_v60 = vadd.f32 %v4704_v49, %v4470_v21 }
 0x3c1   : > { %v4701_v6 = vadd.f32 %v4700_v59, %v4699_v35  ;;  %v4706_v51 = vrot.slane %v4705_v60, 2 }
 0x3c3   : > { %v4702_v54 = vrot.slane %v4701_v6, 1  ;;  %v4707_v63 = vadd.f32 %v4706_v51, %v4705_v60 }
 0x3c5   : > { %v4703_v2 = vadd.f32 %v4702_v54, %v4701_v6  ;;  %v4708_v7 = vrot.slane %v4707_v63, 1 }
 0x3c7   : > { %v4745_v10 = vmul.f32 0.125, %v4703_v2  ;;  %v4709_v11 = vadd.f32 %v4708_v7, %v4707_v63 }
 0x3c9   : > { %v12359_v3 = vsub.f32 %v4468_v53, %v4745_v10  ;;  %v4746_v52 = vmul.f32 0.125, %v4709_v11 }
 0x3cb   : > { %v4777_v5 = vmul.f32 %v12359_v3, %v12359_v3  ;;  %v12363_v4 = vsub.f32 %v4470_v21, %v4746_v52 }
 0x3cd   : > { %v4843_v12 = vrot.slane %v4777_v5, 4  ;;  %v4778_v14 = vmul.f32 %v12363_v4, %v12363_v4 }
 0x3cf   : > { %v4844_v46 = vadd.f32 %v4843_v12, %v4777_v5  ;;  %v4849_v16 = vrot.slane %v4778_v14, 4 }
 0x3d1   : > { %v4845_v17 = vrot.slane %v4844_v46, 2  ;;  %v4850_v19 = vadd.f32 %v4849_v16, %v4778_v14 }
 0x3d3   : > { %v4846_v23 = vadd.f32 %v4845_v17, %v4844_v46  ;;  %v4851_v56 = vrot.slane %v4850_v19, 2 }
 0x3d5   : > { %v4847_v24 = vrot.slane %v4846_v23, 1  ;;  %v4852_v25 = vadd.f32 %v4851_v56, %v4850_v19 }
 0x3d7   : > { %v4848_v26 = vadd.f32 %v4847_v24, %v4846_v23  ;;  %v4853_v29 = vrot.slane %v4852_v25, 1 }
 0x3d9   : > { %v4889_v31 = vmul.f32 0.125, %v4848_v26  ;;  %v4854_v22 = vadd.f32 %v4853_v29, %v4852_v25 }
 0x3db   : > { %v4907_v34 = vadd.f32 1e-05, %v4889_v31  ;;  %v4890_v18 = vmul.f32 0.125, %v4854_v22 }
 0x3dd   : > { %v4908_v37 = vadd.f32 1e-05, %v4890_v18  ;;  %10610 = vrsqrt.f32 %v4907_v34 }
 0x3df   : > { %10612 = vrsqrt.f32 %v4908_v37 }
 0x3ea   : > { %v10611_v20 = vpop.eup %10610 }
 0x3ec   : > { %v10613_v8 = vpop.eup %10612 }
 0x3ed   : > { %v4995_v30 = vcombine.low %v10611_v20, %v10613_v8 }
 0x3ef   : > { %v12371_v39 = vrot.slane %v4995_v30, %v12220_v44 }
 0x3f1   : > { %v5026_v58 = vcombine.low %v12368_v38, %v12371_v39 }
 0x3f6   : > { %v4508_v47 = vpop.f32.mrf.mxu0 }
 0x3f7   : > { %v4509_v53 = vadd.f32 %v4508_v47, %v1393_v41  ;;  %v4549_v45 = vpop.f32.mrf.mxu1 }
 0x3f8   : > { %v4510_v57 = vpop.f32.mrf.mxu0 }
 0x3f9   : > { %v4550_v1 = vadd.f32 %v4549_v45, %v4509_v53  ;;  %v4511_v36 = vadd.f32 %v4510_v57, %v1397_v42  ;;  %v4551_v48 = vpop.f32.mrf.mxu1  ;;  %v1401_v45 = vrot.slane %v12310_v40, %v12274_v55  ;;  %v1405_v57 = vrot.slane %v12310_v40, %v12277_v15 }
 0x3fa   : > { %v4512_v21 = vpop.f32.mrf.mxu0 }
 0x3fb   : > { %v4710_v9 = vrot.slane %v4550_v1, 4  ;;  %v4552_v43 = vadd.f32 %v4551_v48, %v4511_v36  ;;  %v4553_v35 = vpop.f32.mrf.mxu1 }
 0x3fc   : > { %v4513_v49 = vpop.f32.mrf.mxu0 }
 0x3fd   : > { %v4711_v50 = vadd.f32 %v4710_v9, %v4550_v1  ;;  %v4716_v59 = vrot.slane %v4552_v43, 4  ;;  %v4554_v60 = vpop.f32.mrf.mxu1 }
 0x3ff   : > { %v4712_v6 = vrot.slane %v4711_v50, 2  ;;  %v4717_v51 = vadd.f32 %v4716_v59, %v4552_v43 }
 0x401   : > { %v4713_v54 = vadd.f32 %v4712_v6, %v4711_v50  ;;  %v4718_v63 = vrot.slane %v4717_v51, 2 }
 0x403   : > { %v4714_v2 = vrot.slane %v4713_v54, 1  ;;  %v4719_v7 = vadd.f32 %v4718_v63, %v4717_v51 }
 0x405   : > { %v4715_v10 = vadd.f32 %v4714_v2, %v4713_v54  ;;  %v4720_v11 = vrot.slane %v4719_v7, 1 }
 0x407   : > { %v4747_v52 = vmul.f32 0.125, %v4715_v10  ;;  %v4721_v5 = vadd.f32 %v4720_v11, %v4719_v7 }
 0x409   : > { %v12379_v12 = vsub.f32 %v4550_v1, %v4747_v52  ;;  %v4748_v14 = vmul.f32 0.125, %v4721_v5 }
 0x40b   : > { %v4779_v46 = vmul.f32 %v12379_v12, %v12379_v12  ;;  %v12383_v16 = vsub.f32 %v4552_v43, %v4748_v14 }
 0x40d   : > { %v4855_v17 = vrot.slane %v4779_v46, 4  ;;  %v4780_v19 = vmul.f32 %v12383_v16, %v12383_v16 }
 0x40f   : > { %v4856_v23 = vadd.f32 %v4855_v17, %v4779_v46  ;;  %v4861_v56 = vrot.slane %v4780_v19, 4 }
 0x411   : > { %v4857_v24 = vrot.slane %v4856_v23, 2  ;;  %v4862_v25 = vadd.f32 %v4861_v56, %v4780_v19 }
 0x413   : > { %v4858_v26 = vadd.f32 %v4857_v24, %v4856_v23  ;;  %v4863_v29 = vrot.slane %v4862_v25, 2 }
 0x415   : > { %v4859_v31 = vrot.slane %v4858_v26, 1  ;;  %v4864_v22 = vadd.f32 %v4863_v29, %v4862_v25 }
 0x417   : > { %v4860_v34 = vadd.f32 %v4859_v31, %v4858_v26  ;;  %v4865_v18 = vrot.slane %v4864_v22, 1 }
 0x419   : > { %v4891_v37 = vmul.f32 0.125, %v4860_v34  ;;  %v4866_v20 = vadd.f32 %v4865_v18, %v4864_v22 }
 0x41b   : > { %v4909_v8 = vadd.f32 1e-05, %v4891_v37  ;;  %v4892_v30 = vmul.f32 0.125, %v4866_v20 }
 0x41d   : > { %v4910_v41 = vadd.f32 1e-05, %v4892_v30  ;;  %10614 = vrsqrt.f32 %v4909_v8 }
 0x41f   : > { %10616 = vrsqrt.f32 %v4910_v41 }
 0x42a   : > { %v10615_v42 = vpop.eup %10614 }
 0x42c   : > { %v10617_v47 = vpop.eup %10616 }
 0x42d   : > { %v4996_v53 = vcombine.low %v10615_v42, %v10617_v47 }
 0x436   : > { %v4590_v1 = vpop.f32.mrf.mxu0 }
 0x437   : > { %v4591_v36 = vadd.f32 %v4590_v1, %v1401_v45  ;;  %v4631_v48 = vpop.f32.mrf.mxu1 }
 0x438   : > { %v4592_v21 = vpop.f32.mrf.mxu0 }
 0x439   : > { %v4632_v9 = vadd.f32 %v4631_v48, %v4591_v36  ;;  %v4593_v43 = vadd.f32 %v4592_v21, %v1405_v57  ;;  %v4633_v35 = vpop.f32.mrf.mxu1 }
 0x43a   : > { %v4594_v49 = vpop.f32.mrf.mxu0 }
 0x43b   : > { %v4722_v50 = vrot.slane %v4632_v9, 4  ;;  %v4634_v59 = vadd.f32 %v4633_v35, %v4593_v43  ;;  %v4635_v60 = vpop.f32.mrf.mxu1  ;;  %v5034_v49 = vrot.slane %v5026_v58, %v12220_v44 }
 0x43c   : > { %v4595_v6 = vpop.f32.mrf.mxu0  ;;  %v4896_v60 = vld [vmem:[#allocation14 + $0x8] sm:$0xff] }
 0x43d   : > { %v4723_v51 = vadd.f32 %v4722_v50, %v4632_v9  ;;  %v4728_v54 = vrot.slane %v4634_v59, 4  ;;  %v4636_v63 = vpop.f32.mrf.mxu1 }
 0x43f   : > { %v4724_v2 = vrot.slane %v4723_v51, 2  ;;  %v4729_v7 = vadd.f32 %v4728_v54, %v4634_v59 }
 0x441   : > { %v4725_v10 = vadd.f32 %v4724_v2, %v4723_v51  ;;  %v4730_v11 = vrot.slane %v4729_v7, 2 }
 0x443   : > { %v4726_v40 = vrot.slane %v4725_v10, 1  ;;  %v4731_v52 = vadd.f32 %v4730_v11, %v4729_v7 }
 0x445   : > { %v4727_v5 = vadd.f32 %v4726_v40, %v4725_v10  ;;  %v4732_v14 = vrot.slane %v4731_v52, 1 }
 0x447   : > { %v4749_v46 = vmul.f32 0.125, %v4727_v5  ;;  %v4733_v17 = vadd.f32 %v4732_v14, %v4731_v52 }
 0x449   : > { %v4765_v19 = vsub.f32 %v4632_v9, %v4749_v46  ;;  %v4750_v23 = vmul.f32 0.125, %v4733_v17  ;;  %v5018_v9 = vrot.slane %v4996_v53, %v12220_v44 }
 0x44b   : > { %v4781_v56 = vmul.f32 %v4765_v19, %v4765_v19  ;;  %v4766_v24 = vsub.f32 %v4634_v59, %v4750_v23  ;;  %v5146_v59 = vld [vmem:[#allocation16 + $0x8] sm:$0xff] }
 0x44c   : > { %v5184_v51 = vrot.slane %v5146_v59, %v12122_v27  ;;  %v5188_v63 = vrot.slane %v5146_v59, %v12128_v32  ;;  %v5192_v53 = vrot.slane %v5146_v59, %v12125_v28  ;;  %v5196_v2 = vrot.slane %v5146_v59, %v12131_v33 }
 0x44d   : > { %v4867_v25 = vrot.slane %v4781_v56, 4  ;;  %v4782_v26 = vmul.f32 %v4766_v24, %v4766_v24  ;;  %v5200_v7 = vrot.slane %v5146_v59, %v12232_v61  ;;  %v5204_v10 = vrot.slane %v5146_v59, %v12237_v62 }
 0x44e   : > { %v5208_v38 = vrot.slane %v5146_v59, %v12274_v55 }
 0x44f   : > { %v4868_v29 = vadd.f32 %v4867_v25, %v4781_v56  ;;  %v4873_v31 = vrot.slane %v4782_v26, 4 }
 0x451   : > { %v4869_v22 = vrot.slane %v4868_v29, 2  ;;  %v4874_v34 = vadd.f32 %v4873_v31, %v4782_v26 }
 0x453   : > { %v4870_v18 = vadd.f32 %v4869_v22, %v4868_v29  ;;  %v4875_v37 = vrot.slane %v4874_v34, 2 }
 0x455   : > { %v4871_v20 = vrot.slane %v4870_v18, 1  ;;  %v4876_v8 = vadd.f32 %v4875_v37, %v4874_v34 }
 0x457   : > { %v4872_v30 = vadd.f32 %v4871_v20, %v4870_v18  ;;  %v4877_v41 = vrot.slane %v4876_v8, 1 }
 0x459   : > { %v4893_v42 = vmul.f32 0.125, %v4872_v30  ;;  %v4878_v47 = vadd.f32 %v4877_v41, %v4876_v8 }
 0x45b   : > { %v4911_v45 = vadd.f32 1e-05, %v4893_v42  ;;  %v4894_v57 = vmul.f32 0.125, %v4878_v47 }
 0x45d   : > { %v4912_v1 = vadd.f32 1e-05, %v4894_v57  ;;  %10618 = vrsqrt.f32 %v4911_v45 }
 0x45f   : > { %10620 = vrsqrt.f32 %v4912_v1 }
 0x46a   : > { %v10619_v36 = vpop.eup %10618 }
 0x46c   : > { %v10621_v48 = vpop.eup %10620 }
 0x46d   : > { %v4997_v21 = vcombine.low %v10619_v36, %v10621_v48 }
 0x46f   : > { %v5025_v43 = vrot.slane %v4997_v21, %v12220_v44 }
 0x471   : > { %v5027_v35 = vcombine.low %v5018_v9, %v5025_v43 }
 0x473   : > { %v5041_v50 = vrot.slane %v5027_v35, %v12220_v44  ;;  %v5212_v44 = vrot.slane %v5146_v59, %v12277_v15 }
 0x475   : > { %v5042_v6 = vcombine.low %v5034_v49, %v5041_v50 }
 0x477   : > { %v5046_v54 = vmul.f32 %v5042_v6, %v4896_v60 }
 0x479   : > { %v5084_v39 = vrot.slane %v5046_v54, %v12122_v27  ;;  %v5088_v58 = vrot.slane %v5046_v54, %v12128_v32  ;;  %v5092_v11 = vrot.slane %v5046_v54, %v12125_v28  ;;  %v5096_v40 = vrot.slane %v5046_v54, %v12131_v33 }
 0x47a   : > { %v5100_v52 = vrot.slane %v5046_v54, %v12232_v61  ;;  %v5104_v5 = vrot.slane %v5046_v54, %v12237_v62  ;;  %v5108_v14 = vrot.slane %v5046_v54, %v12274_v55  ;;  %v5112_v46 = vrot.slane %v5046_v54, %v12277_v15 }
 0x47b   : > { %v5137_v17 = vmul.f32 %v5084_v39, %v12347_v0  ;;  %v5138_v23 = vmul.f32 %v5088_v58, %v12351_v13  ;;  %v5139_v27 = vmul.f32 %v5092_v11, %v12359_v3  ;;  %v5140_v32 = vmul.f32 %v5096_v40, %v12363_v4 }
 0x47c   : > { %v5141_v28 = vmul.f32 %v5100_v52, %v12379_v12  ;;  %v5142_v33 = vmul.f32 %v5104_v5, %v12383_v16  ;;  %v5143_v56 = vmul.f32 %v5108_v14, %v4765_v19  ;;  %v5144_v61 = vmul.f32 %v5112_v46, %v4766_v24 }
 0x47d   : > { %v5237_v25 = vadd.f32 %v5184_v51, %v5137_v17  ;;  %v5238_v62 = vadd.f32 %v5188_v63, %v5138_v23  ;;  %v5239_v26 = vadd.f32 %v5192_v53, %v5139_v27  ;;  %v5240_v55 = vadd.f32 %v5196_v2, %v5140_v32 }
 0x47e   : > { %v5241_v29 = vadd.f32 %v5200_v7, %v5141_v28  ;;  %v5242_v15 = vadd.f32 %v5204_v10, %v5142_v33  ;;  %v5243_v31 = vadd.f32 %v5208_v38, %v5143_v56  ;;  %v5244_v0 = vadd.f32 %v5212_v44, %v5144_v61 }
 0x47f   : > { %v5253_v22 = vmax.f32 %v5237_v25, 0.0  ;;  %v5254_v13 = vmax.f32 %v5238_v62, 0.0  ;;  %v5255_v34 = vmax.f32 %v5239_v26, 0.0  ;;  %v5256_v3 = vmax.f32 %v5240_v55, 0.0 }
 0x480   : > { %v5257_v18 = vmax.f32 %v5241_v29, 0.0  ;;  %v5258_v4 = vmax.f32 %v5242_v15, 0.0  ;;  %v5259_v37 = vmax.f32 %v5243_v31, 0.0  ;;  %v5260_v12 = vmax.f32 %v5244_v0, 0.0 }
 0x481   : > { %v10432_v20 = vpack.c.bf16 %v5254_v13, %v5253_v22  ;;  %v10433_v16 = vpack.c.bf16 %v5256_v3, %v5255_v34 }
 0x482   : > { %v10434_v19 = vpack.c.bf16 %v5258_v4, %v5257_v18  ;;  %v10435_v24 = vpack.c.bf16 %v5260_v12, %v5259_v37 }
 0x483   : > { %5329 = vst [vmem:[#allocation2 + $0x8] sm:$0xff] %v10432_v20  ;;  %5330 = vst [vmem:[#allocation2 + $0x20] sm:$0xff] %v10433_v16 }
 0x484   : > { %5331 = vst [vmem:[#allocation2 + $0x28] sm:$0xff] %v10434_v19  ;;  %5332 = vst [vmem:[#allocation2 + $0x38] sm:$0xff] %v10435_v24 }
 0x485 PF: > { %v10623_v8 = vld [vmem:[%s12082_s30 + $0xe4] ss:$16 sps:$4 sm:$0xff]   ;;  %v10627_v41 = vld [vmem:[%s12082_s30 + $0xe0] ss:$16 sps:$4 sm:$0xff]  }
 0x486   : > { %v10625_v30 = vld [vmem:[%s12082_s30 + $0x2e4] ss:$16 sps:$4 sm:$0xff]   ;;  %8491 = vmatprep.subr.bf16.mxu0 %v10623_v8  ;;  %v10628_v42 = vld [vmem:[%s12082_s30 + $0x2e0] ss:$16 sps:$4 sm:$0xff]  }
 0x487   : > { %8532 = vmatprep.subr.bf16.mxu1 %v10625_v30  ;;  %v10629_v47 = vld [vmem:[%s12082_s30 + $0xc4] ss:$16 sps:$4 sm:$0xff]   ;;  %8492 = vmatpush1.bf16.msra.mxu0 %v10627_v41  ;;  %v10633_v57 = vld [vmem:[%s12082_s30 + $0xc0] ss:$16 sps:$4 sm:$0xff]  }
 0x488   : > { %8533 = vmatpush1.bf16.msra.mxu1 %v10628_v42  ;;  %v10631_v45 = vld [vmem:[%s12082_s30 + $0x2c4] ss:$16 sps:$4 sm:$0xff]   ;;  %8493 = vmatprep.subr.bf16.mxu0 %v10629_v47  ;;  %v10634_v1 = vld [vmem:[%s12082_s30 + $0x2c0] ss:$16 sps:$4 sm:$0xff]  }
 0x489   : > { %8534 = vmatprep.subr.bf16.mxu1 %v10631_v45  ;;  %v10635_v36 = vld [vmem:[%s12082_s30 + $0xa4] ss:$16 sps:$4 sm:$0xff]   ;;  %v10639_v21 = vld [vmem:[%s12082_s30 + $0xa0] ss:$16 sps:$4 sm:$0xff]  }
 0x48a   : > { %v10637_v48 = vld [vmem:[%s12082_s30 + $0x2a4] ss:$16 sps:$4 sm:$0xff]   ;;  %v10640_v9 = vld [vmem:[%s12082_s30 + $0x2a0] ss:$16 sps:$4 sm:$0xff]  }
 0x48b   : > { %8494 = vmatpush1.bf16.msra.mxu0 %v10633_v57  ;;  %v10641_v43 = vld [vmem:[%s12082_s30 + $0x84] ss:$16 sps:$4 sm:$0xff]   ;;  %v10645_v49 = vld [vmem:[%s12082_s30 + $0x80] ss:$16 sps:$4 sm:$0xff]  }
 0x48c   : > { %8535 = vmatpush1.bf16.msra.mxu1 %v10634_v1  ;;  %8495 = vmatprep.subr.bf16.mxu0 %v10635_v36  ;;  %v10643_v35 = vld [vmem:[%s12082_s30 + $0x284] ss:$16 sps:$4 sm:$0xff]   ;;  %v10646_v50 = vld [vmem:[%s12082_s30 + $0x280] ss:$16 sps:$4 sm:$0xff]  }
 0x48d   : > { %8536 = vmatprep.subr.bf16.mxu1 %v10637_v48  ;;  %v10647_v59 = vld [vmem:[%s12082_s30 + $0x64] ss:$16 sps:$4 sm:$0xff]   ;;  %v10651_v6 = vld [vmem:[%s12082_s30 + $0x60] ss:$16 sps:$4 sm:$0xff]  }
 0x48e   : > { %v10649_v60 = vld [vmem:[%s12082_s30 + $0x264] ss:$16 sps:$4 sm:$0xff]   ;;  %v10652_v51 = vld [vmem:[%s12082_s30 + $0x260] ss:$16 sps:$4 sm:$0xff]  }
 0x48f   : > { %8496 = vmatpush1.bf16.msra.mxu0 %v10639_v21  ;;  %v10653_v54 = vld [vmem:[%s12082_s30 + $0x44] ss:$16 sps:$4 sm:$0xff]   ;;  %v10657_v53 = vld [vmem:[%s12082_s30 + $0x40] ss:$16 sps:$4 sm:$0xff]  }
 0x490   : > { %8537 = vmatpush1.bf16.msra.mxu1 %v10640_v9  ;;  %8497 = vmatprep.subr.bf16.mxu0 %v10641_v43  ;;  %v10655_v63 = vld [vmem:[%s12082_s30 + $0x244] ss:$16 sps:$4 sm:$0xff]   ;;  %v10658_v2 = vld [vmem:[%s12082_s30 + $0x240] ss:$16 sps:$4 sm:$0xff]  }
 0x491   : > { %8538 = vmatprep.subr.bf16.mxu1 %v10643_v35  ;;  %v10659_v7 = vld [vmem:[%s12082_s30 + $0x24] ss:$16 sps:$4 sm:$0xff]   ;;  %v10663_v38 = vld [vmem:[%s12082_s30 + $0x20] ss:$16 sps:$4 sm:$0xff]  }
 0x492   : > { %v10661_v10 = vld [vmem:[%s12082_s30 + $0x224] ss:$16 sps:$4 sm:$0xff]   ;;  %v10664_v44 = vld [vmem:[%s12082_s30 + $0x220] ss:$16 sps:$4 sm:$0xff]  }
 0x493   : > { %8498 = vmatpush1.bf16.msra.mxu0 %v10645_v49  ;;  %v10665_v39 = vld [vmem:[%s12082_s30 + $0x4] ss:$16 sps:$4 sm:$0xff]   ;;  %v10669_v11 = vld [vmem:[%s12082_s30] ss:$16 sps:$4 sm:$0xff]  }
 0x494   : > { %8539 = vmatpush1.bf16.msra.mxu1 %v10646_v50  ;;  %8499 = vmatprep.subr.bf16.mxu0 %v10647_v59  ;;  %v10667_v58 = vld [vmem:[%s12082_s30 + $0x204] ss:$16 sps:$4 sm:$0xff]   ;;  %v10670_v40 = vld [vmem:[%s12082_s30 + $0x200] ss:$16 sps:$4 sm:$0xff]  }
 0x495   : > { %8540 = vmatprep.subr.bf16.mxu1 %v10649_v60  ;;  %v10671_v52 = vld [vmem:[%s12082_s30 + $0x1e4] ss:$16 sps:$4 sm:$0xff]   ;;  %v10675_v14 = vld [vmem:[%s12082_s30 + $0x1e0] ss:$16 sps:$4 sm:$0xff]  }
 0x496   : > { %v10673_v5 = vld [vmem:[%s12082_s30 + $0x3e4] ss:$16 sps:$4 sm:$0xff]   ;;  %v10676_v46 = vld [vmem:[%s12082_s30 + $0x3e0] ss:$16 sps:$4 sm:$0xff]  }
 0x497   : > { %8500 = vmatpush1.bf16.msra.mxu0 %v10651_v6  ;;  %v10677_v17 = vld [vmem:[%s12082_s30 + $0x1c4] ss:$16 sps:$4 sm:$0xff]   ;;  %v10681_v27 = vld [vmem:[%s12082_s30 + $0x1c0] ss:$16 sps:$4 sm:$0xff]  }
 0x498   : > { %8541 = vmatpush1.bf16.msra.mxu1 %v10652_v51  ;;  %8501 = vmatprep.subr.bf16.mxu0 %v10653_v54  ;;  %v10679_v23 = vld [vmem:[%s12082_s30 + $0x3c4] ss:$16 sps:$4 sm:$0xff]   ;;  %v10682_v32 = vld [vmem:[%s12082_s30 + $0x3c0] ss:$16 sps:$4 sm:$0xff]  }
 0x499   : > { %8542 = vmatprep.subr.bf16.mxu1 %v10655_v63  ;;  %v10683_v28 = vld [vmem:[%s12082_s30 + $0x1a4] ss:$16 sps:$4 sm:$0xff]   ;;  %v10687_v56 = vld [vmem:[%s12082_s30 + $0x1a0] ss:$16 sps:$4 sm:$0xff]  }
 0x49a   : > { %v10685_v33 = vld [vmem:[%s12082_s30 + $0x3a4] ss:$16 sps:$4 sm:$0xff]   ;;  %v10688_v61 = vld [vmem:[%s12082_s30 + $0x3a0] ss:$16 sps:$4 sm:$0xff]  }
 0x49b   : > { %8502 = vmatpush1.bf16.msra.mxu0 %v10657_v53  ;;  %v10689_v25 = vld [vmem:[%s12082_s30 + $0x184] ss:$16 sps:$4 sm:$0xff]   ;;  %v5333_v26 = vld [vmem:[#allocation2 + $0x30] sm:$0xff]  ;;  %v5334_v29 = vld [vmem:[#allocation2] sm:$0xff] }
 0x49c   : > { %8543 = vmatpush1.bf16.msra.mxu1 %v10658_v2  ;;  %8503 = vmatprep.subr.bf16.mxu0 %v10659_v7  ;;  %v10691_v62 = vld [vmem:[%s12082_s30 + $0x384] ss:$16 sps:$4 sm:$0xff]   ;;  %v12466_v55 = vcombine.high %v5333_v26, %v5333_v26  ;;  %v10693_v15 = vld [vmem:[%s12082_s30 + $0x180] ss:$16 sps:$4 sm:$0xff]   ;;  %v12470_v0 = vcombine.high %v5334_v29, %v5334_v29  ;;  %v12492_v57 = vcombine.low %v5333_v26, %v5333_v26 }
 0x49d   : > { %8544 = vmatprep.subr.bf16.mxu1 %v10661_v10  ;;  %v10694_v31 = vld [vmem:[%s12082_s30 + $0x380] ss:$16 sps:$4 sm:$0xff]   ;;  %v10695_v22 = vld [vmem:[%s12082_s30 + $0x164] ss:$16 sps:$4 sm:$0xff]   ;;  %v12494_v1 = vcombine.low %v5334_v29, %v5334_v29 }
 0x49e   : > { %v10697_v13 = vld [vmem:[%s12082_s30 + $0x364] ss:$16 sps:$4 sm:$0xff]   ;;  %8523 = vmatprep.mubr.bf16.mxu0 %v12466_v55  ;;  %8564 = vmatprep.mubr.bf16.mxu1 %v12470_v0  ;;  %v10699_v34 = vld [vmem:[%s12082_s30 + $0x160] ss:$16 sps:$4 sm:$0xff]  }
 0x49f   : > { %8504 = vmatpush1.bf16.msra.mxu0 %v10663_v38  ;;  %v10700_v3 = vld [vmem:[%s12082_s30 + $0x360] ss:$16 sps:$4 sm:$0xff]   ;;  %v10701_v18 = vld [vmem:[%s12082_s30 + $0x144] ss:$16 sps:$4 sm:$0xff]  }
 0x4a0   : > { %8545 = vmatpush1.bf16.msra.mxu1 %v10664_v44  ;;  %8505 = vmatprep.subr.bf16.mxu0 %v10665_v39  ;;  %v10703_v4 = vld [vmem:[%s12082_s30 + $0x344] ss:$16 sps:$4 sm:$0xff]   ;;  %v10705_v37 = vld [vmem:[%s12082_s30 + $0x140] ss:$16 sps:$4 sm:$0xff]  }
 0x4a1   : > { %8546 = vmatprep.subr.bf16.mxu1 %v10667_v58  ;;  %v10706_v12 = vld [vmem:[%s12082_s30 + $0x340] ss:$16 sps:$4 sm:$0xff]   ;;  %v10707_v20 = vld [vmem:[%s12082_s30 + $0x124] ss:$16 sps:$4 sm:$0xff]  }
 0x4a2   : > { %v10709_v16 = vld [vmem:[%s12082_s30 + $0x324] ss:$16 sps:$4 sm:$0xff]   ;;  %v10711_v19 = vld [vmem:[%s12082_s30 + $0x120] ss:$16 sps:$4 sm:$0xff]  }
 0x4a3   : > { %8506 = vmatpush1.bf16.msra.mxu0 %v10669_v11  ;;  %v10712_v24 = vld [vmem:[%s12082_s30 + $0x320] ss:$16 sps:$4 sm:$0xff]   ;;  %v10713_v8 = vld [vmem:[%s12082_s30 + $0x104] ss:$16 sps:$4 sm:$0xff]  }
 0x4a4   : > { %8547 = vmatpush1.bf16.msra.mxu1 %v10670_v40  ;;  %8507 = vmatprep.subr.bf16.mxu0 %v10671_v52  ;;  %v10715_v30 = vld [vmem:[%s12082_s30 + $0x304] ss:$16 sps:$4 sm:$0xff]   ;;  %v10717_v41 = vld [vmem:[%s12082_s30 + $0x100] ss:$16 sps:$4 sm:$0xff]  }
 0x4a5   : > { %8548 = vmatprep.subr.bf16.mxu1 %v10673_v5  ;;  %v10718_v42 = vld [vmem:[%s12082_s30 + $0x300] ss:$16 sps:$4 sm:$0xff]   ;;  %v10725_v47 = vld [vmem:[%s12082_s30 + $0x4e4] ss:$16 sps:$4 sm:$0xff]  }
 0x4a6   : > { %v10728_v45 = vld [vmem:[%s12082_s30 + $0x6e4] ss:$16 sps:$4 sm:$0xff]   ;;  %v10723_v36 = vld [vmem:[%s12082_s30 + $0x4e0] ss:$16 sps:$4 sm:$0xff]  }
 0x4a7   : > { %8508 = vmatpush2.bf16.msra.mxu0 %v10675_v14  ;;  %v10726_v48 = vld [vmem:[%s12082_s30 + $0x6e0] ss:$16 sps:$4 sm:$0xff]   ;;  %v10731_v21 = vld [vmem:[%s12082_s30 + $0x4c4] ss:$16 sps:$4 sm:$0xff]  }
 0x4a8   : > { %8549 = vmatpush2.bf16.msra.mxu1 %v10676_v46  ;;  %8509 = vmatprep.subr.bf16.mxu0 %v10677_v17  ;;  %v10734_v9 = vld [vmem:[%s12082_s30 + $0x6c4] ss:$16 sps:$4 sm:$0xff]   ;;  %v10729_v43 = vld [vmem:[%s12082_s30 + $0x4c0] ss:$16 sps:$4 sm:$0xff]  }
 0x4a9   : > { %8550 = vmatprep.subr.bf16.mxu1 %v10679_v23  ;;  %v10732_v35 = vld [vmem:[%s12082_s30 + $0x6c0] ss:$16 sps:$4 sm:$0xff]   ;;  %v10737_v49 = vld [vmem:[%s12082_s30 + $0x4a4] ss:$16 sps:$4 sm:$0xff]  }
 0x4aa   : > { %v10740_v50 = vld [vmem:[%s12082_s30 + $0x6a4] ss:$16 sps:$4 sm:$0xff]   ;;  %v10735_v59 = vld [vmem:[%s12082_s30 + $0x4a0] ss:$16 sps:$4 sm:$0xff]  }
 0x4ab   : > { %8510 = vmatpush2.bf16.msra.mxu0 %v10681_v27  ;;  %v10738_v60 = vld [vmem:[%s12082_s30 + $0x6a0] ss:$16 sps:$4 sm:$0xff]   ;;  %v10743_v6 = vld [vmem:[%s12082_s30 + $0x484] ss:$16 sps:$4 sm:$0xff]  }
 0x4ac   : > { %8551 = vmatpush2.bf16.msra.mxu1 %v10682_v32  ;;  %8511 = vmatprep.subr.bf16.mxu0 %v10683_v28  ;;  %v10746_v51 = vld [vmem:[%s12082_s30 + $0x684] ss:$16 sps:$4 sm:$0xff]   ;;  %v10741_v54 = vld [vmem:[%s12082_s30 + $0x480] ss:$16 sps:$4 sm:$0xff]  }
 0x4ad   : > { %8552 = vmatprep.subr.bf16.mxu1 %v10685_v33  ;;  %v10744_v63 = vld [vmem:[%s12082_s30 + $0x680] ss:$16 sps:$4 sm:$0xff]   ;;  %v10749_v53 = vld [vmem:[%s12082_s30 + $0x464] ss:$16 sps:$4 sm:$0xff]  }
 0x4ae   : > { %v10752_v2 = vld [vmem:[%s12082_s30 + $0x664] ss:$16 sps:$4 sm:$0xff]   ;;  %v10747_v7 = vld [vmem:[%s12082_s30 + $0x460] ss:$16 sps:$4 sm:$0xff]  }
 0x4af   : > { %8512 = vmatpush2.bf16.msra.mxu0 %v10687_v56  ;;  %v10750_v10 = vld [vmem:[%s12082_s30 + $0x660] ss:$16 sps:$4 sm:$0xff]   ;;  %v10755_v38 = vld [vmem:[%s12082_s30 + $0x444] ss:$16 sps:$4 sm:$0xff]  }
 0x4b0   : > { %8553 = vmatpush2.bf16.msra.mxu1 %v10688_v61  ;;  %8513 = vmatprep.subr.bf16.mxu0 %v10689_v25  ;;  %v10758_v44 = vld [vmem:[%s12082_s30 + $0x644] ss:$16 sps:$4 sm:$0xff]   ;;  %v10753_v39 = vld [vmem:[%s12082_s30 + $0x440] ss:$16 sps:$4 sm:$0xff]  }
 0x4b1   : > { %8554 = vmatprep.subr.bf16.mxu1 %v10691_v62  ;;  %v10756_v58 = vld [vmem:[%s12082_s30 + $0x640] ss:$16 sps:$4 sm:$0xff]   ;;  %v10761_v11 = vld [vmem:[%s12082_s30 + $0x424] ss:$16 sps:$4 sm:$0xff]  }
 0x4b2   : > { %v10764_v40 = vld [vmem:[%s12082_s30 + $0x624] ss:$16 sps:$4 sm:$0xff]   ;;  %v12524_v5 = vld [vmem:[#allocation2 + $0x10] sm:$0xff] }
 0x4b3   : > { %8514 = vmatpush2.bf16.msra.mxu0 %v10693_v15  ;;  %v12522_v52 = vld [vmem:[#allocation2 + $0x18] sm:$0xff]  ;;  %v10759_v14 = vld [vmem:[%s12082_s30 + $0x420] ss:$16 sps:$4 sm:$0xff]   ;;  %v12534_v23 = vcombine.high %v12524_v5, %v12524_v5 }
 0x4b4   : > { %8555 = vmatpush2.bf16.msra.mxu1 %v10694_v31  ;;  %8515 = vmatprep.subr.bf16.mxu0 %v10695_v22  ;;  %v10762_v46 = vld [vmem:[%s12082_s30 + $0x620] ss:$16 sps:$4 sm:$0xff]   ;;  %v12530_v17 = vcombine.high %v12522_v52, %v12522_v52  ;;  %v10767_v27 = vld [vmem:[%s12082_s30 + $0x404] ss:$16 sps:$4 sm:$0xff]  }
 0x4b5   : > { %8556 = vmatprep.subr.bf16.mxu1 %v10697_v13  ;;  %v10770_v32 = vld [vmem:[%s12082_s30 + $0x604] ss:$16 sps:$4 sm:$0xff]   ;;  %v10765_v28 = vld [vmem:[%s12082_s30 + $0x400] ss:$16 sps:$4 sm:$0xff]  }
 0x4b6   : > { %v10768_v33 = vld [vmem:[%s12082_s30 + $0x600] ss:$16 sps:$4 sm:$0xff]   ;;  %v10773_v56 = vld [vmem:[%s12082_s30 + $0x5e4] ss:$16 sps:$4 sm:$0xff]  }
 0x4b7   : > { %8516 = vmatpush2.bf16.msra.mxu0 %v10699_v34  ;;  %v10776_v61 = vld [vmem:[%s12082_s30 + $0x7e4] ss:$16 sps:$4 sm:$0xff]   ;;  %v10771_v25 = vld [vmem:[%s12082_s30 + $0x5e0] ss:$16 sps:$4 sm:$0xff]  }
 0x4b8   : > { %8557 = vmatpush2.bf16.msra.mxu1 %v10700_v3  ;;  %8517 = vmatprep.subr.bf16.mxu0 %v10701_v18  ;;  %v10774_v62 = vld [vmem:[%s12082_s30 + $0x7e0] ss:$16 sps:$4 sm:$0xff]   ;;  %v10779_v26 = vld [vmem:[%s12082_s30 + $0x5c4] ss:$16 sps:$4 sm:$0xff]  }
 0x4b9   : > { %8558 = vmatprep.subr.bf16.mxu1 %v10703_v4  ;;  %v10782_v29 = vld [vmem:[%s12082_s30 + $0x7c4] ss:$16 sps:$4 sm:$0xff]   ;;  %v10777_v15 = vld [vmem:[%s12082_s30 + $0x5c0] ss:$16 sps:$4 sm:$0xff]  }
 0x4ba   : > { %v10780_v31 = vld [vmem:[%s12082_s30 + $0x7c0] ss:$16 sps:$4 sm:$0xff]   ;;  %v10785_v22 = vld [vmem:[%s12082_s30 + $0x5a4] ss:$16 sps:$4 sm:$0xff]  }
 0x4bb   : > { %8518 = vmatpush2.bf16.msra.mxu0 %v10705_v37  ;;  %v10788_v13 = vld [vmem:[%s12082_s30 + $0x7a4] ss:$16 sps:$4 sm:$0xff]   ;;  %v10783_v34 = vld [vmem:[%s12082_s30 + $0x5a0] ss:$16 sps:$4 sm:$0xff]  }
 0x4bc   : > { %8559 = vmatpush2.bf16.msra.mxu1 %v10706_v12  ;;  %8519 = vmatprep.subr.bf16.mxu0 %v10707_v20  ;;  %v10786_v3 = vld [vmem:[%s12082_s30 + $0x7a0] ss:$16 sps:$4 sm:$0xff]   ;;  %v10791_v18 = vld [vmem:[%s12082_s30 + $0x584] ss:$16 sps:$4 sm:$0xff]  }
 0x4bd   : > { %8560 = vmatprep.subr.bf16.mxu1 %v10709_v16  ;;  %v10794_v4 = vld [vmem:[%s12082_s30 + $0x784] ss:$16 sps:$4 sm:$0xff]   ;;  %v10789_v37 = vld [vmem:[%s12082_s30 + $0x580] ss:$16 sps:$4 sm:$0xff]  }
 0x4be   : > { %v10792_v12 = vld [vmem:[%s12082_s30 + $0x780] ss:$16 sps:$4 sm:$0xff]   ;;  %v10797_v20 = vld [vmem:[%s12082_s30 + $0x564] ss:$16 sps:$4 sm:$0xff]  }
 0x4bf   : > { %8520 = vmatpush2.bf16.msra.mxu0 %v10711_v19  ;;  %v10800_v16 = vld [vmem:[%s12082_s30 + $0x764] ss:$16 sps:$4 sm:$0xff]   ;;  %v10795_v19 = vld [vmem:[%s12082_s30 + $0x560] ss:$16 sps:$4 sm:$0xff]  }
 0x4c0   : > { %8561 = vmatpush2.bf16.msra.mxu1 %v10712_v24  ;;  %8521 = vmatprep.subr.bf16.mxu0 %v10713_v8  ;;  %v10798_v24 = vld [vmem:[%s12082_s30 + $0x760] ss:$16 sps:$4 sm:$0xff]   ;;  %v10803_v8 = vld [vmem:[%s12082_s30 + $0x544] ss:$16 sps:$4 sm:$0xff]  }
 0x4c1   : > { %8562 = vmatprep.subr.bf16.mxu1 %v10715_v30  ;;  %v10806_v30 = vld [vmem:[%s12082_s30 + $0x744] ss:$16 sps:$4 sm:$0xff]  }
 0x4c3   : > { %8522 = vmatpush2.bf16.msra.mxu0 %v10717_v41  ;;  %v10801_v41 = vld [vmem:[%s12082_s30 + $0x540] ss:$16 sps:$4 sm:$0xff]  }
 0x4c4   : > { %8563 = vmatpush2.bf16.msra.mxu1 %v10718_v42  ;;  %8573 = vmatprep.subr.bf16.mxu0 %v10725_v47  ;;  %v10804_v42 = vld [vmem:[%s12082_s30 + $0x740] ss:$16 sps:$4 sm:$0xff]   ;;  %v10809_v47 = vld [vmem:[%s12082_s30 + $0x524] ss:$16 sps:$4 sm:$0xff]  }
 0x4c5   : > { %8614 = vmatprep.subr.bf16.mxu1 %v10728_v45  ;;  %v10812_v45 = vld [vmem:[%s12082_s30 + $0x724] ss:$16 sps:$4 sm:$0xff]  }
 0x4c6   : > { %8524 = vmatmul.mubr.bf16.vlgmr.msra.gmra.mxu0 %v12492_v57 }
 0x4c7   : > { %8565 = vmatmul.mubr.bf16.vlgmr.msra.gmra.mxu1 %v12494_v1  ;;  %8574 = vmatpush1.bf16.msra.mxu0 %v10723_v36  ;;  %v10807_v36 = vld [vmem:[%s12082_s30 + $0x520] ss:$16 sps:$4 sm:$0xff]  }
 0x4c8   : > { %8615 = vmatpush1.bf16.msra.mxu1 %v10726_v48  ;;  %8575 = vmatprep.subr.bf16.mxu0 %v10731_v21  ;;  %v10810_v48 = vld [vmem:[%s12082_s30 + $0x720] ss:$16 sps:$4 sm:$0xff]   ;;  %v10815_v21 = vld [vmem:[%s12082_s30 + $0x504] ss:$16 sps:$4 sm:$0xff]  }
 0x4c9   : > { %8616 = vmatprep.subr.bf16.mxu1 %v10734_v9  ;;  %8605 = vmatprep.mubr.bf16.mxu0 %v12530_v17  ;;  %v10818_v9 = vld [vmem:[%s12082_s30 + $0x704] ss:$16 sps:$4 sm:$0xff]  }
 0x4ca   : > { %8646 = vmatprep.mubr.bf16.mxu1 %v12534_v23 }
 0x4cb   : > { %8576 = vmatpush1.bf16.msra.mxu0 %v10729_v43  ;;  %v10813_v43 = vld [vmem:[%s12082_s30 + $0x500] ss:$16 sps:$4 sm:$0xff]  }
 0x4cc   : > { %8617 = vmatpush1.bf16.msra.mxu1 %v10732_v35  ;;  %8577 = vmatprep.subr.bf16.mxu0 %v10737_v49  ;;  %v10816_v35 = vld [vmem:[%s12082_s30 + $0x700] ss:$16 sps:$4 sm:$0xff]   ;;  %v10825_v49 = vld [vmem:[%s12082_s30 + $0x8e4] ss:$16 sps:$4 sm:$0xff]  }
 0x4cd   : > { %8618 = vmatprep.subr.bf16.mxu1 %v10740_v50  ;;  %v10828_v50 = vld [vmem:[%s12082_s30 + $0xae4] ss:$16 sps:$4 sm:$0xff]  }
 0x4cf   : > { %8578 = vmatpush1.bf16.msra.mxu0 %v10735_v59  ;;  %v12578_v59 = vcombine.low %v12522_v52, %v12522_v52  ;;  %v10843_v52 = vld [vmem:[%s12082_s30 + $0x884] ss:$16 sps:$4 sm:$0xff]  }
 0x4d0   : > { %8619 = vmatpush1.bf16.msra.mxu1 %v10738_v60  ;;  %8579 = vmatprep.subr.bf16.mxu0 %v10743_v6  ;;  %v12582_v60 = vcombine.low %v12524_v5, %v12524_v5  ;;  %v10823_v6 = vld [vmem:[%s12082_s30 + $0x8e0] ss:$16 sps:$4 sm:$0xff]   ;;  %v10846_v5 = vld [vmem:[%s12082_s30 + $0xa84] ss:$16 sps:$4 sm:$0xff]  }
 0x4d1   : > { %8620 = vmatprep.subr.bf16.mxu1 %v10746_v51  ;;  %v10826_v51 = vld [vmem:[%s12082_s30 + $0xae0] ss:$16 sps:$4 sm:$0xff]  }
 0x4d3   : > { %8580 = vmatpush1.bf16.msra.mxu0 %v10741_v54  ;;  %v10831_v54 = vld [vmem:[%s12082_s30 + $0x8c4] ss:$16 sps:$4 sm:$0xff]  }
 0x4d4   : > { %8621 = vmatpush1.bf16.msra.mxu1 %v10744_v63  ;;  %8581 = vmatprep.subr.bf16.mxu0 %v10749_v53  ;;  %v10834_v63 = vld [vmem:[%s12082_s30 + $0xac4] ss:$16 sps:$4 sm:$0xff]  }
 0x4d5   : > { %8622 = vmatprep.subr.bf16.mxu1 %v10752_v2  ;;  %v12588_v53 = vld [vmem:[#allocation2 + $0x8] sm:$0xff]  ;;  %v12590_v2 = vld [vmem:[#allocation2 + $0x20] sm:$0xff] }
 0x4d7   : > { %8582 = vmatpush1.bf16.msra.mxu0 %v10747_v7  ;;  %v12594_v7 = vcombine.high %v12588_v53, %v12588_v53 }
 0x4d8   : > { %8623 = vmatpush1.bf16.msra.mxu1 %v10750_v10  ;;  %8583 = vmatprep.subr.bf16.mxu0 %v10755_v38  ;;  %v12598_v10 = vcombine.high %v12590_v2, %v12590_v2  ;;  %v10829_v38 = vld [vmem:[%s12082_s30 + $0x8c0] ss:$16 sps:$4 sm:$0xff]  }
 0x4d9   : > { %8624 = vmatprep.subr.bf16.mxu1 %v10758_v44  ;;  %v10832_v44 = vld [vmem:[%s12082_s30 + $0xac0] ss:$16 sps:$4 sm:$0xff]  }
 0x4db   : > { %8584 = vmatpush1.bf16.msra.mxu0 %v10753_v39  ;;  %v10837_v39 = vld [vmem:[%s12082_s30 + $0x8a4] ss:$16 sps:$4 sm:$0xff]  }
 0x4dc   : > { %8625 = vmatpush1.bf16.msra.mxu1 %v10756_v58  ;;  %8585 = vmatprep.subr.bf16.mxu0 %v10761_v11  ;;  %v10840_v58 = vld [vmem:[%s12082_s30 + $0xaa4] ss:$16 sps:$4 sm:$0xff]   ;;  %v10835_v11 = vld [vmem:[%s12082_s30 + $0x8a0] ss:$16 sps:$4 sm:$0xff]  }
 0x4dd   : > { %8626 = vmatprep.subr.bf16.mxu1 %v10764_v40  ;;  %v10838_v40 = vld [vmem:[%s12082_s30 + $0xaa0] ss:$16 sps:$4 sm:$0xff]  }
 0x4df   : > { %8586 = vmatpush1.bf16.msra.mxu0 %v10759_v14  ;;  %v10841_v14 = vld [vmem:[%s12082_s30 + $0x880] ss:$16 sps:$4 sm:$0xff]  }
 0x4e0   : > { %8627 = vmatpush1.bf16.msra.mxu1 %v10762_v46  ;;  %8587 = vmatprep.subr.bf16.mxu0 %v10767_v27  ;;  %v10844_v46 = vld [vmem:[%s12082_s30 + $0xa80] ss:$16 sps:$4 sm:$0xff]   ;;  %v10849_v27 = vld [vmem:[%s12082_s30 + $0x864] ss:$16 sps:$4 sm:$0xff]  }
 0x4e1   : > { %8628 = vmatprep.subr.bf16.mxu1 %v10770_v32  ;;  %v10852_v32 = vld [vmem:[%s12082_s30 + $0xa64] ss:$16 sps:$4 sm:$0xff]  }
 0x4e3   : > { %8588 = vmatpush1.bf16.msra.mxu0 %v10765_v28  ;;  %v10847_v28 = vld [vmem:[%s12082_s30 + $0x860] ss:$16 sps:$4 sm:$0xff]  }
 0x4e4   : > { %8629 = vmatpush1.bf16.msra.mxu1 %v10768_v33  ;;  %8589 = vmatprep.subr.bf16.mxu0 %v10773_v56  ;;  %v10850_v33 = vld [vmem:[%s12082_s30 + $0xa60] ss:$16 sps:$4 sm:$0xff]   ;;  %v10855_v56 = vld [vmem:[%s12082_s30 + $0x844] ss:$16 sps:$4 sm:$0xff]  }
 0x4e5   : > { %8630 = vmatprep.subr.bf16.mxu1 %v10776_v61  ;;  %v10858_v61 = vld [vmem:[%s12082_s30 + $0xa44] ss:$16 sps:$4 sm:$0xff]  }
 0x4e7   : > { %8590 = vmatpush2.bf16.msra.mxu0 %v10771_v25  ;;  %v10853_v25 = vld [vmem:[%s12082_s30 + $0x840] ss:$16 sps:$4 sm:$0xff]  }
 0x4e8   : > { %8631 = vmatpush2.bf16.msra.mxu1 %v10774_v62  ;;  %8591 = vmatprep.subr.bf16.mxu0 %v10779_v26  ;;  %v10856_v62 = vld [vmem:[%s12082_s30 + $0xa40] ss:$16 sps:$4 sm:$0xff]   ;;  %v10861_v26 = vld [vmem:[%s12082_s30 + $0x824] ss:$16 sps:$4 sm:$0xff]  }
 0x4e9   : > { %8632 = vmatprep.subr.bf16.mxu1 %v10782_v29  ;;  %v10864_v29 = vld [vmem:[%s12082_s30 + $0xa24] ss:$16 sps:$4 sm:$0xff]  }
 0x4eb   : > { %8592 = vmatpush2.bf16.msra.mxu0 %v10777_v15  ;;  %v10859_v15 = vld [vmem:[%s12082_s30 + $0x820] ss:$16 sps:$4 sm:$0xff]  }
 0x4ec   : > { %8633 = vmatpush2.bf16.msra.mxu1 %v10780_v31  ;;  %8593 = vmatprep.subr.bf16.mxu0 %v10785_v22  ;;  %v10862_v31 = vld [vmem:[%s12082_s30 + $0xa20] ss:$16 sps:$4 sm:$0xff]   ;;  %v10867_v22 = vld [vmem:[%s12082_s30 + $0x804] ss:$16 sps:$4 sm:$0xff]  }
 0x4ed   : > { %8634 = vmatprep.subr.bf16.mxu1 %v10788_v13  ;;  %v10870_v13 = vld [vmem:[%s12082_s30 + $0xa04] ss:$16 sps:$4 sm:$0xff]  }
 0x4ef   : > { %8594 = vmatpush2.bf16.msra.mxu0 %v10783_v34  ;;  %v10865_v34 = vld [vmem:[%s12082_s30 + $0x800] ss:$16 sps:$4 sm:$0xff]  }
 0x4f0   : > { %8635 = vmatpush2.bf16.msra.mxu1 %v10786_v3  ;;  %8595 = vmatprep.subr.bf16.mxu0 %v10791_v18  ;;  %v10868_v3 = vld [vmem:[%s12082_s30 + $0xa00] ss:$16 sps:$4 sm:$0xff]   ;;  %v10873_v18 = vld [vmem:[%s12082_s30 + $0x9e4] ss:$16 sps:$4 sm:$0xff]  }
 0x4f1   : > { %8636 = vmatprep.subr.bf16.mxu1 %v10794_v4  ;;  %v10876_v4 = vld [vmem:[%s12082_s30 + $0xbe4] ss:$16 sps:$4 sm:$0xff]  }
 0x4f3   : > { %8596 = vmatpush2.bf16.msra.mxu0 %v10789_v37  ;;  %v10871_v37 = vld [vmem:[%s12082_s30 + $0x9e0] ss:$16 sps:$4 sm:$0xff]  }
 0x4f4   : > { %8637 = vmatpush2.bf16.msra.mxu1 %v10792_v12  ;;  %8597 = vmatprep.subr.bf16.mxu0 %v10797_v20  ;;  %v10874_v12 = vld [vmem:[%s12082_s30 + $0xbe0] ss:$16 sps:$4 sm:$0xff]   ;;  %v10879_v20 = vld [vmem:[%s12082_s30 + $0x9c4] ss:$16 sps:$4 sm:$0xff]  }
 0x4f5   : > { %8638 = vmatprep.subr.bf16.mxu1 %v10800_v16  ;;  %v10882_v16 = vld [vmem:[%s12082_s30 + $0xbc4] ss:$16 sps:$4 sm:$0xff]  }
 0x4f7   : > { %8598 = vmatpush2.bf16.msra.mxu0 %v10795_v19  ;;  %v10877_v19 = vld [vmem:[%s12082_s30 + $0x9c0] ss:$16 sps:$4 sm:$0xff]  }
 0x4f8   : > { %8639 = vmatpush2.bf16.msra.mxu1 %v10798_v24  ;;  %8599 = vmatprep.subr.bf16.mxu0 %v10803_v8  ;;  %v10880_v24 = vld [vmem:[%s12082_s30 + $0xbc0] ss:$16 sps:$4 sm:$0xff]   ;;  %v10885_v8 = vld [vmem:[%s12082_s30 + $0x9a4] ss:$16 sps:$4 sm:$0xff]  }
 0x4f9   : > { %8640 = vmatprep.subr.bf16.mxu1 %v10806_v30  ;;  %v10888_v30 = vld [vmem:[%s12082_s30 + $0xba4] ss:$16 sps:$4 sm:$0xff]  }
 0x4fb   : > { %8600 = vmatpush2.bf16.msra.mxu0 %v10801_v41  ;;  %v10883_v41 = vld [vmem:[%s12082_s30 + $0x9a0] ss:$16 sps:$4 sm:$0xff]  }
 0x4fc   : > { %8641 = vmatpush2.bf16.msra.mxu1 %v10804_v42  ;;  %8601 = vmatprep.subr.bf16.mxu0 %v10809_v47  ;;  %v10886_v42 = vld [vmem:[%s12082_s30 + $0xba0] ss:$16 sps:$4 sm:$0xff]   ;;  %v10891_v47 = vld [vmem:[%s12082_s30 + $0x984] ss:$16 sps:$4 sm:$0xff]  }
 0x4fd   : > { %8642 = vmatprep.subr.bf16.mxu1 %v10812_v45  ;;  %v10894_v45 = vld [vmem:[%s12082_s30 + $0xb84] ss:$16 sps:$4 sm:$0xff]  }
 0x4ff   : > { %8602 = vmatpush2.bf16.msra.mxu0 %v10807_v36  ;;  %v10889_v36 = vld [vmem:[%s12082_s30 + $0x980] ss:$16 sps:$4 sm:$0xff]  }
 0x500   : > { %8643 = vmatpush2.bf16.msra.mxu1 %v10810_v48  ;;  %8603 = vmatprep.subr.bf16.mxu0 %v10815_v21  ;;  %v10892_v48 = vld [vmem:[%s12082_s30 + $0xb80] ss:$16 sps:$4 sm:$0xff]   ;;  %v10897_v21 = vld [vmem:[%s12082_s30 + $0x964] ss:$16 sps:$4 sm:$0xff]  }
 0x501   : > { %8644 = vmatprep.subr.bf16.mxu1 %v10818_v9  ;;  %v10900_v9 = vld [vmem:[%s12082_s30 + $0xb64] ss:$16 sps:$4 sm:$0xff]  }
 0x503   : > { %8604 = vmatpush2.bf16.msra.mxu0 %v10813_v43  ;;  %v10895_v43 = vld [vmem:[%s12082_s30 + $0x960] ss:$16 sps:$4 sm:$0xff]  }
 0x504   : > { %8645 = vmatpush2.bf16.msra.mxu1 %v10816_v35  ;;  %8655 = vmatprep.subr.bf16.mxu0 %v10825_v49  ;;  %v10898_v35 = vld [vmem:[%s12082_s30 + $0xb60] ss:$16 sps:$4 sm:$0xff]   ;;  %v10903_v49 = vld [vmem:[%s12082_s30 + $0x944] ss:$16 sps:$4 sm:$0xff]  }
 0x505   : > { %8696 = vmatprep.subr.bf16.mxu1 %v10828_v50  ;;  %v10906_v50 = vld [vmem:[%s12082_s30 + $0xb44] ss:$16 sps:$4 sm:$0xff]  }
 0x506   : > { %8606 = vmatmul.mubr.bf16.vlgmr.msra.gmra.mxu0 %v12578_v59 }
 0x507   : > { %8647 = vmatmul.mubr.bf16.vlgmr.msra.gmra.mxu1 %v12582_v60  ;;  %8656 = vmatpush1.bf16.msra.mxu0 %v10823_v6  ;;  %v10901_v6 = vld [vmem:[%s12082_s30 + $0x940] ss:$16 sps:$4 sm:$0xff]  }
 0x508   : > { %8697 = vmatpush1.bf16.msra.mxu1 %v10826_v51  ;;  %8657 = vmatprep.subr.bf16.mxu0 %v10831_v54  ;;  %v10904_v51 = vld [vmem:[%s12082_s30 + $0xb40] ss:$16 sps:$4 sm:$0xff]   ;;  %v10909_v54 = vld [vmem:[%s12082_s30 + $0x924] ss:$16 sps:$4 sm:$0xff]  }
 0x509   : > { %8698 = vmatprep.subr.bf16.mxu1 %v10834_v63  ;;  %8687 = vmatprep.mubr.bf16.mxu0 %v12594_v7  ;;  %v10912_v63 = vld [vmem:[%s12082_s30 + $0xb24] ss:$16 sps:$4 sm:$0xff]  }
 0x50a   : > { %8728 = vmatprep.mubr.bf16.mxu1 %v12598_v10 }
 0x50b   : > { %8658 = vmatpush1.bf16.msra.mxu0 %v10829_v38  ;;  %v10907_v38 = vld [vmem:[%s12082_s30 + $0x920] ss:$16 sps:$4 sm:$0xff]  }
 0x50c   : > { %8699 = vmatpush1.bf16.msra.mxu1 %v10832_v44  ;;  %8659 = vmatprep.subr.bf16.mxu0 %v10837_v39  ;;  %v10910_v44 = vld [vmem:[%s12082_s30 + $0xb20] ss:$16 sps:$4 sm:$0xff]   ;;  %v10915_v39 = vld [vmem:[%s12082_s30 + $0x904] ss:$16 sps:$4 sm:$0xff]  }
 0x50d   : > { %8700 = vmatprep.subr.bf16.mxu1 %v10840_v58  ;;  %v10918_v58 = vld [vmem:[%s12082_s30 + $0xb04] ss:$16 sps:$4 sm:$0xff]  }
 0x50f   : > { %8660 = vmatpush1.bf16.msra.mxu0 %v10835_v11  ;;  %v10913_v11 = vld [vmem:[%s12082_s30 + $0x900] ss:$16 sps:$4 sm:$0xff]  }
 0x510   : > { %8701 = vmatpush1.bf16.msra.mxu1 %v10838_v40  ;;  %8661 = vmatprep.subr.bf16.mxu0 %v10843_v52  ;;  %v10916_v40 = vld [vmem:[%s12082_s30 + $0xb00] ss:$16 sps:$4 sm:$0xff]   ;;  %v10925_v52 = vld [vmem:[%s12082_s30 + $0xce4] ss:$16 sps:$4 sm:$0xff]  }
 0x511   : > { %8702 = vmatprep.subr.bf16.mxu1 %v10846_v5  ;;  %v10928_v5 = vld [vmem:[%s12082_s30 + $0xee4] ss:$16 sps:$4 sm:$0xff]  }
 0x513   : > { %8662 = vmatpush1.bf16.msra.mxu0 %v10841_v14  ;;  %v10923_v14 = vld [vmem:[%s12082_s30 + $0xce0] ss:$16 sps:$4 sm:$0xff]  }
 0x514   : > { %8703 = vmatpush1.bf16.msra.mxu1 %v10844_v46  ;;  %8663 = vmatprep.subr.bf16.mxu0 %v10849_v27  ;;  %v12665_v46 = vld [vmem:[#allocation2 + $0x28] sm:$0xff]  ;;  %v12669_v27 = vcombine.low %v12588_v53, %v12588_v53 }
 0x515   : > { %8704 = vmatprep.subr.bf16.mxu1 %v10852_v32  ;;  %v12673_v32 = vcombine.low %v12590_v2, %v12590_v2  ;;  %v12682_v53 = vcombine.high %v12665_v46, %v12665_v46 }
 0x517   : > { %8664 = vmatpush1.bf16.msra.mxu0 %v10847_v28  ;;  %v12675_v28 = vld [vmem:[#allocation2 + $0x38] sm:$0xff] }
 0x518   : > { %8705 = vmatpush1.bf16.msra.mxu1 %v10850_v33  ;;  %8665 = vmatprep.subr.bf16.mxu0 %v10855_v56  ;;  %v10926_v33 = vld [vmem:[%s12082_s30 + $0xee0] ss:$16 sps:$4 sm:$0xff]   ;;  %v10931_v56 = vld [vmem:[%s12082_s30 + $0xcc4] ss:$16 sps:$4 sm:$0xff]   ;;  %v12686_v2 = vcombine.high %v12675_v28, %v12675_v28 }
 0x519   : > { %8706 = vmatprep.subr.bf16.mxu1 %v10858_v61  ;;  %v10934_v61 = vld [vmem:[%s12082_s30 + $0xec4] ss:$16 sps:$4 sm:$0xff]  }
 0x51b   : > { %8666 = vmatpush1.bf16.msra.mxu0 %v10853_v25  ;;  %v10929_v25 = vld [vmem:[%s12082_s30 + $0xcc0] ss:$16 sps:$4 sm:$0xff]  }
 0x51c   : > { %8707 = vmatpush1.bf16.msra.mxu1 %v10856_v62  ;;  %8667 = vmatprep.subr.bf16.mxu0 %v10861_v26  ;;  %v10932_v62 = vld [vmem:[%s12082_s30 + $0xec0] ss:$16 sps:$4 sm:$0xff]   ;;  %v10937_v26 = vld [vmem:[%s12082_s30 + $0xca4] ss:$16 sps:$4 sm:$0xff]  }
 0x51d   : > { %8708 = vmatprep.subr.bf16.mxu1 %v10864_v29  ;;  %v10940_v29 = vld [vmem:[%s12082_s30 + $0xea4] ss:$16 sps:$4 sm:$0xff]  }
 0x51f   : > { %8668 = vmatpush1.bf16.msra.mxu0 %v10859_v15  ;;  %v10935_v15 = vld [vmem:[%s12082_s30 + $0xca0] ss:$16 sps:$4 sm:$0xff]  }
 0x520   : > { %8709 = vmatpush1.bf16.msra.mxu1 %v10862_v31  ;;  %8669 = vmatprep.subr.bf16.mxu0 %v10867_v22  ;;  %v10938_v31 = vld [vmem:[%s12082_s30 + $0xea0] ss:$16 sps:$4 sm:$0xff]   ;;  %v10943_v22 = vld [vmem:[%s12082_s30 + $0xc84] ss:$16 sps:$4 sm:$0xff]  }
 0x521   : > { %8710 = vmatprep.subr.bf16.mxu1 %v10870_v13  ;;  %v10946_v13 = vld [vmem:[%s12082_s30 + $0xe84] ss:$16 sps:$4 sm:$0xff]  }
 0x523   : > { %8670 = vmatpush1.bf16.msra.mxu0 %v10865_v34  ;;  %v10941_v34 = vld [vmem:[%s12082_s30 + $0xc80] ss:$16 sps:$4 sm:$0xff]  }
 0x524   : > { %8711 = vmatpush1.bf16.msra.mxu1 %v10868_v3  ;;  %8671 = vmatprep.subr.bf16.mxu0 %v10873_v18  ;;  %v10944_v3 = vld [vmem:[%s12082_s30 + $0xe80] ss:$16 sps:$4 sm:$0xff]   ;;  %v10949_v18 = vld [vmem:[%s12082_s30 + $0xc64] ss:$16 sps:$4 sm:$0xff]  }
 0x525   : > { %8712 = vmatprep.subr.bf16.mxu1 %v10876_v4  ;;  %v10952_v4 = vld [vmem:[%s12082_s30 + $0xe64] ss:$16 sps:$4 sm:$0xff]  }
 0x527   : > { %8672 = vmatpush2.bf16.msra.mxu0 %v10871_v37  ;;  %v10947_v37 = vld [vmem:[%s12082_s30 + $0xc60] ss:$16 sps:$4 sm:$0xff]  }
 0x528   : > { %8713 = vmatpush2.bf16.msra.mxu1 %v10874_v12  ;;  %8673 = vmatprep.subr.bf16.mxu0 %v10879_v20  ;;  %v10950_v12 = vld [vmem:[%s12082_s30 + $0xe60] ss:$16 sps:$4 sm:$0xff]   ;;  %v10955_v20 = vld [vmem:[%s12082_s30 + $0xc44] ss:$16 sps:$4 sm:$0xff]  }
 0x529   : > { %8714 = vmatprep.subr.bf16.mxu1 %v10882_v16  ;;  %v10958_v16 = vld [vmem:[%s12082_s30 + $0xe44] ss:$16 sps:$4 sm:$0xff]  }
 0x52b   : > { %8674 = vmatpush2.bf16.msra.mxu0 %v10877_v19  ;;  %v10953_v19 = vld [vmem:[%s12082_s30 + $0xc40] ss:$16 sps:$4 sm:$0xff]  }
 0x52c   : > { %8715 = vmatpush2.bf16.msra.mxu1 %v10880_v24  ;;  %8675 = vmatprep.subr.bf16.mxu0 %v10885_v8  ;;  %v10956_v24 = vld [vmem:[%s12082_s30 + $0xe40] ss:$16 sps:$4 sm:$0xff]   ;;  %v10961_v8 = vld [vmem:[%s12082_s30 + $0xc24] ss:$16 sps:$4 sm:$0xff]  }
 0x52d   : > { %8716 = vmatprep.subr.bf16.mxu1 %v10888_v30  ;;  %v10964_v30 = vld [vmem:[%s12082_s30 + $0xe24] ss:$16 sps:$4 sm:$0xff]  }
 0x52f   : > { %8676 = vmatpush2.bf16.msra.mxu0 %v10883_v41  ;;  %v10959_v41 = vld [vmem:[%s12082_s30 + $0xc20] ss:$16 sps:$4 sm:$0xff]  }
 0x530   : > { %8717 = vmatpush2.bf16.msra.mxu1 %v10886_v42  ;;  %8677 = vmatprep.subr.bf16.mxu0 %v10891_v47  ;;  %v10962_v42 = vld [vmem:[%s12082_s30 + $0xe20] ss:$16 sps:$4 sm:$0xff]   ;;  %v10967_v47 = vld [vmem:[%s12082_s30 + $0xc04] ss:$16 sps:$4 sm:$0xff]  }
 0x531   : > { %8718 = vmatprep.subr.bf16.mxu1 %v10894_v45  ;;  %v10970_v45 = vld [vmem:[%s12082_s30 + $0xe04] ss:$16 sps:$4 sm:$0xff]  }
 0x533   : > { %8678 = vmatpush2.bf16.msra.mxu0 %v10889_v36  ;;  %v10965_v36 = vld [vmem:[%s12082_s30 + $0xc00] ss:$16 sps:$4 sm:$0xff]  }
 0x534   : > { %8719 = vmatpush2.bf16.msra.mxu1 %v10892_v48  ;;  %8679 = vmatprep.subr.bf16.mxu0 %v10897_v21  ;;  %v10968_v48 = vld [vmem:[%s12082_s30 + $0xe00] ss:$16 sps:$4 sm:$0xff]   ;;  %v10973_v21 = vld [vmem:[%s12082_s30 + $0xde4] ss:$16 sps:$4 sm:$0xff]  }
 0x535   : > { %8720 = vmatprep.subr.bf16.mxu1 %v10900_v9  ;;  %v10976_v9 = vld [vmem:[%s12082_s30 + $0xfe4] ss:$16 sps:$4 sm:$0xff]  }
 0x537   : > { %8680 = vmatpush2.bf16.msra.mxu0 %v10895_v43  ;;  %v10971_v43 = vld [vmem:[%s12082_s30 + $0xde0] ss:$16 sps:$4 sm:$0xff]  }
 0x538   : > { %8721 = vmatpush2.bf16.msra.mxu1 %v10898_v35  ;;  %8681 = vmatprep.subr.bf16.mxu0 %v10903_v49  ;;  %v10974_v35 = vld [vmem:[%s12082_s30 + $0xfe0] ss:$16 sps:$4 sm:$0xff]   ;;  %v10979_v49 = vld [vmem:[%s12082_s30 + $0xdc4] ss:$16 sps:$4 sm:$0xff]  }
 0x539   : > { %8722 = vmatprep.subr.bf16.mxu1 %v10906_v50  ;;  %v10982_v50 = vld [vmem:[%s12082_s30 + $0xfc4] ss:$16 sps:$4 sm:$0xff]  }
 0x53b   : > { %8682 = vmatpush2.bf16.msra.mxu0 %v10901_v6  ;;  %v10977_v6 = vld [vmem:[%s12082_s30 + $0xdc0] ss:$16 sps:$4 sm:$0xff]  }
 0x53c   : > { %8723 = vmatpush2.bf16.msra.mxu1 %v10904_v51  ;;  %8683 = vmatprep.subr.bf16.mxu0 %v10909_v54  ;;  %v10980_v51 = vld [vmem:[%s12082_s30 + $0xfc0] ss:$16 sps:$4 sm:$0xff]   ;;  %v10985_v54 = vld [vmem:[%s12082_s30 + $0xda4] ss:$16 sps:$4 sm:$0xff]  }
 0x53d   : > { %8724 = vmatprep.subr.bf16.mxu1 %v10912_v63  ;;  %v10988_v63 = vld [vmem:[%s12082_s30 + $0xfa4] ss:$16 sps:$4 sm:$0xff]  }
 0x53f   : > { %8684 = vmatpush2.bf16.msra.mxu0 %v10907_v38  ;;  %v10983_v38 = vld [vmem:[%s12082_s30 + $0xda0] ss:$16 sps:$4 sm:$0xff]  }
 0x540   : > { %8725 = vmatpush2.bf16.msra.mxu1 %v10910_v44  ;;  %8685 = vmatprep.subr.bf16.mxu0 %v10915_v39  ;;  %v10986_v44 = vld [vmem:[%s12082_s30 + $0xfa0] ss:$16 sps:$4 sm:$0xff]   ;;  %v10991_v39 = vld [vmem:[%s12082_s30 + $0xd84] ss:$16 sps:$4 sm:$0xff]  }
 0x541   : > { %8726 = vmatprep.subr.bf16.mxu1 %v10918_v58  ;;  %v10994_v58 = vld [vmem:[%s12082_s30 + $0xf84] ss:$16 sps:$4 sm:$0xff]  }
 0x543   : > { %8686 = vmatpush2.bf16.msra.mxu0 %v10913_v11  ;;  %v10989_v11 = vld [vmem:[%s12082_s30 + $0xd80] ss:$16 sps:$4 sm:$0xff]  }
 0x544   : > { %8727 = vmatpush2.bf16.msra.mxu1 %v10916_v40  ;;  %8737 = vmatprep.subr.bf16.mxu0 %v10925_v52  ;;  %v10992_v40 = vld [vmem:[%s12082_s30 + $0xf80] ss:$16 sps:$4 sm:$0xff]   ;;  %v10997_v52 = vld [vmem:[%s12082_s30 + $0xd64] ss:$16 sps:$4 sm:$0xff]  }
 0x545   : > { %8778 = vmatprep.subr.bf16.mxu1 %v10928_v5  ;;  %v11000_v5 = vld [vmem:[%s12082_s30 + $0xf64] ss:$16 sps:$4 sm:$0xff]  }
 0x546   : > { %8688 = vmatmul.mubr.bf16.vlgmr.msra.gmra.mxu0 %v12669_v27 }
 0x547   : > { %8729 = vmatmul.mubr.bf16.vlgmr.msra.gmra.mxu1 %v12673_v32  ;;  %8738 = vmatpush1.bf16.msra.mxu0 %v10923_v14  ;;  %v10995_v14 = vld [vmem:[%s12082_s30 + $0xd60] ss:$16 sps:$4 sm:$0xff]  }
 0x548   : > { %8779 = vmatpush1.bf16.msra.mxu1 %v10926_v33  ;;  %8739 = vmatprep.subr.bf16.mxu0 %v10931_v56  ;;  %v10998_v33 = vld [vmem:[%s12082_s30 + $0xf60] ss:$16 sps:$4 sm:$0xff]   ;;  %v11003_v56 = vld [vmem:[%s12082_s30 + $0xd44] ss:$16 sps:$4 sm:$0xff]  }
 0x549   : > { %8780 = vmatprep.subr.bf16.mxu1 %v10934_v61  ;;  %8769 = vmatprep.mubr.bf16.mxu0 %v12682_v53  ;;  %v11006_v61 = vld [vmem:[%s12082_s30 + $0xf44] ss:$16 sps:$4 sm:$0xff]  }
 0x54a   : > { %8810 = vmatprep.mubr.bf16.mxu1 %v12686_v2 }
 0x54b   : > { %8740 = vmatpush1.bf16.msra.mxu0 %v10929_v25  ;;  %v11001_v25 = vld [vmem:[%s12082_s30 + $0xd40] ss:$16 sps:$4 sm:$0xff]  }
 0x54c   : > { %8781 = vmatpush1.bf16.msra.mxu1 %v10932_v62  ;;  %8741 = vmatprep.subr.bf16.mxu0 %v10937_v26  ;;  %v11004_v62 = vld [vmem:[%s12082_s30 + $0xf40] ss:$16 sps:$4 sm:$0xff]   ;;  %v5855_v26 = vlaneseq }
 0x54d   : > { %8782 = vmatprep.subr.bf16.mxu1 %v10940_v29  ;;  %v11009_v29 = vld [vmem:[%s12082_s30 + $0xd24] ss:$16 sps:$4 sm:$0xff]  }
 0x54f   : > { %8742 = vmatpush1.bf16.msra.mxu0 %v10935_v15  ;;  %v11012_v15 = vld [vmem:[%s12082_s30 + $0xf24] ss:$16 sps:$4 sm:$0xff]  }
 0x550   : > { %8783 = vmatpush1.bf16.msra.mxu1 %v10938_v31  ;;  %8743 = vmatprep.subr.bf16.mxu0 %v10943_v22  ;;  %v11007_v31 = vld [vmem:[%s12082_s30 + $0xd20] ss:$16 sps:$4 sm:$0xff]  }
 0x551   : > { %8784 = vmatprep.subr.bf16.mxu1 %v10946_v13  ;;  %v11010_v22 = vld [vmem:[%s12082_s30 + $0xf20] ss:$16 sps:$4 sm:$0xff]   ;;  %v12746_v13 = vshrl.u32 %v5855_v26, 7  ;;  %v11056_v26 = vld [vmem:[%s12082_s30 + $0x248] ss:$16 sps:$4 sm:$0xff]  }
 0x553   : > { %8744 = vmatpush1.bf16.msra.mxu0 %v10941_v34  ;;  %v11015_v34 = vld [vmem:[%s12082_s30 + $0xd04] ss:$16 sps:$4 sm:$0xff]  }
 0x554   : > { %8785 = vmatpush1.bf16.msra.mxu1 %v10944_v3  ;;  %8745 = vmatprep.subr.bf16.mxu0 %v10949_v18  ;;  %v11018_v3 = vld [vmem:[%s12082_s30 + $0xf04] ss:$16 sps:$4 sm:$0xff]   ;;  %v11013_v18 = vld [vmem:[%s12082_s30 + $0xd00] ss:$16 sps:$4 sm:$0xff]  }
 0x555   : > { %8786 = vmatprep.subr.bf16.mxu1 %v10952_v4  ;;  %v11016_v4 = vld [vmem:[%s12082_s30 + $0xf00] ss:$16 sps:$4 sm:$0xff]  }
 0x557   : > { %8746 = vmatpush1.bf16.msra.mxu0 %v10947_v37  ;;  %v5853_v37 = vld [vmem:[%s512_s16] sm:$0xf] }
 0x558   : > { %8787 = vmatpush1.bf16.msra.mxu1 %v10950_v12  ;;  %8747 = vmatprep.subr.bf16.mxu0 %v10955_v20  ;;  %v5857_v12 = vsub.s32 0, %v12746_v13  ;;  %v11025_v20 = vld [vmem:[%s12082_s30 + $0xec] ss:$16 sps:$4 sm:$0xff]  }
 0x559   : > { %8788 = vmatprep.subr.bf16.mxu1 %v10958_v16  ;;  %v11028_v16 = vld [vmem:[%s12082_s30 + $0x2ec] ss:$16 sps:$4 sm:$0xff]  }
 0x55b   : > { %8748 = vmatpush1.bf16.msra.mxu0 %v10953_v19  ;;  %v5861_v19 = vsub.s32 1, %v12746_v13 }
 0x55c   : > { %8789 = vmatpush1.bf16.msra.mxu1 %v10956_v24  ;;  %8749 = vmatprep.subr.bf16.mxu0 %v10961_v8  ;;  %v12760_v24 = vcombine.low %v12665_v46, %v12665_v46  ;;  %v12764_v8 = vcombine.low %v12675_v28, %v12675_v28  ;;  %v11029_v28 = vld [vmem:[%s12082_s30 + $0xc8] ss:$16 sps:$4 sm:$0xff]  }
 0x55d   : > { %8790 = vmatprep.subr.bf16.mxu1 %v10964_v30  ;;  %v11023_v30 = vld [vmem:[%s12082_s30 + $0xe8] ss:$16 sps:$4 sm:$0xff]  }
 0x55f   : > { %8750 = vmatpush1.bf16.msra.mxu0 %v10959_v41  ;;  %v5858_v41 = vrot.slane %v5853_v37, %v5857_v12  ;;  %v11076_v12 = vld [vmem:[%s12082_s30 + $0x3ec] ss:$16 sps:$4 sm:$0xff]  }
 0x560   : > { %8791 = vmatpush1.bf16.msra.mxu1 %v10962_v42  ;;  %8751 = vmatprep.subr.bf16.mxu0 %v10967_v47  ;;  %v11026_v42 = vld [vmem:[%s12082_s30 + $0x2e8] ss:$16 sps:$4 sm:$0xff]   ;;  %v11031_v47 = vld [vmem:[%s12082_s30 + $0xcc] ss:$16 sps:$4 sm:$0xff]  }
 0x561   : > { %8792 = vmatprep.subr.bf16.mxu1 %v10970_v45  ;;  %v11034_v45 = vld [vmem:[%s12082_s30 + $0x2cc] ss:$16 sps:$4 sm:$0xff]  }
 0x563   : > { %8752 = vmatpush1.bf16.msra.mxu0 %v10965_v36  ;;  %v5862_v36 = vrot.slane %v5853_v37, %v5861_v19  ;;  %v11073_v37 = vld [vmem:[%s12082_s30 + $0x1ec] ss:$16 sps:$4 sm:$0xff]  }
 0x564   : > { %8793 = vmatpush1.bf16.msra.mxu1 %v10968_v48  ;;  %8753 = vmatprep.subr.bf16.mxu0 %v10973_v21  ;;  %v11079_v19 = vld [vmem:[%s12082_s30 + $0x1cc] ss:$16 sps:$4 sm:$0xff]  }
 0x565   : > { %8794 = vmatprep.subr.bf16.mxu1 %v10976_v9  ;;  %v11032_v9 = vld [vmem:[%s12082_s30 + $0x2c8] ss:$16 sps:$4 sm:$0xff]  }
 0x567   : > { %8754 = vmatpush2.bf16.msra.mxu0 %v10971_v43 }
 0x568   : > { %8795 = vmatpush2.bf16.msra.mxu1 %v10974_v35  ;;  %8755 = vmatprep.subr.bf16.mxu0 %v10979_v49  ;;  %v11037_v49 = vld [vmem:[%s12082_s30 + $0xac] ss:$16 sps:$4 sm:$0xff]  }
 0x569   : > { %8796 = vmatprep.subr.bf16.mxu1 %v10982_v50  ;;  %v11040_v50 = vld [vmem:[%s12082_s30 + $0x2ac] ss:$16 sps:$4 sm:$0xff]  }
 0x56b   : > { %8756 = vmatpush2.bf16.msra.mxu0 %v10977_v6 }
 0x56c   : > { %8797 = vmatpush2.bf16.msra.mxu1 %v10980_v51  ;;  %8757 = vmatprep.subr.bf16.mxu0 %v10985_v54 }
 0x56d   : > { %8798 = vmatprep.subr.bf16.mxu1 %v10988_v63 }
 0x56f   : > { %8758 = vmatpush2.bf16.msra.mxu0 %v10983_v38  ;;  %v11035_v38 = vld [vmem:[%s12082_s30 + $0xa8] ss:$16 sps:$4 sm:$0xff]  }
 0x570   : > { %8799 = vmatpush2.bf16.msra.mxu1 %v10986_v44  ;;  %8759 = vmatprep.subr.bf16.mxu0 %v10991_v39  ;;  %v11038_v39 = vld [vmem:[%s12082_s30 + $0x2a8] ss:$16 sps:$4 sm:$0xff]  }
 0x571   : > { %8800 = vmatprep.subr.bf16.mxu1 %v10994_v58 }
 0x573   : > { %8760 = vmatpush2.bf16.msra.mxu0 %v10989_v11 }
 0x574   : > { %8801 = vmatpush2.bf16.msra.mxu1 %v10992_v40  ;;  %8761 = vmatprep.subr.bf16.mxu0 %v10997_v52  ;;  %v11041_v40 = vld [vmem:[%s12082_s30 + $0x88] ss:$16 sps:$4 sm:$0xff]  }
 0x575   : > { %8802 = vmatprep.subr.bf16.mxu1 %v11000_v5  ;;  %v11044_v52 = vld [vmem:[%s12082_s30 + $0x288] ss:$16 sps:$4 sm:$0xff]   ;;  %v11049_v5 = vld [vmem:[%s12082_s30 + $0x6c] ss:$16 sps:$4 sm:$0xff]  }
 0x577   : > { %8762 = vmatpush2.bf16.msra.mxu0 %v10995_v14  ;;  %v11052_v14 = vld [vmem:[%s12082_s30 + $0x26c] ss:$16 sps:$4 sm:$0xff]  }
 0x578   : > { %8803 = vmatpush2.bf16.msra.mxu1 %v10998_v33  ;;  %8763 = vmatprep.subr.bf16.mxu0 %v11003_v56  ;;  %v11047_v33 = vld [vmem:[%s12082_s30 + $0x68] ss:$16 sps:$4 sm:$0xff]  }
 0x579   : > { %8804 = vmatprep.subr.bf16.mxu1 %v11006_v61  ;;  %v11050_v56 = vld [vmem:[%s12082_s30 + $0x268] ss:$16 sps:$4 sm:$0xff]   ;;  %v11055_v61 = vld [vmem:[%s12082_s30 + $0x4c] ss:$16 sps:$4 sm:$0xff]  }
 0x57b   : > { %8764 = vmatpush2.bf16.msra.mxu0 %v11001_v25  ;;  %v11058_v25 = vld [vmem:[%s12082_s30 + $0x24c] ss:$16 sps:$4 sm:$0xff]  }
 0x57c   : > { %8805 = vmatpush2.bf16.msra.mxu1 %v11004_v62  ;;  %8765 = vmatprep.subr.bf16.mxu0 %v11009_v29  ;;  %v11053_v62 = vld [vmem:[%s12082_s30 + $0x48] ss:$16 sps:$4 sm:$0xff]   ;;  %v11061_v29 = vld [vmem:[%s12082_s30 + $0x2c] ss:$16 sps:$4 sm:$0xff]  }
 0x57d   : > { %8806 = vmatprep.subr.bf16.mxu1 %v11012_v15  ;;  %v11064_v15 = vld [vmem:[%s12082_s30 + $0x22c] ss:$16 sps:$4 sm:$0xff]  }
 0x57f   : > { %8766 = vmatpush2.bf16.msra.mxu0 %v11007_v31  ;;  %v11059_v31 = vld [vmem:[%s12082_s30 + $0x28] ss:$16 sps:$4 sm:$0xff]  }
 0x580   : > { %8807 = vmatpush2.bf16.msra.mxu1 %v11010_v22  ;;  %8767 = vmatprep.subr.bf16.mxu0 %v11015_v34  ;;  %v11062_v22 = vld [vmem:[%s12082_s30 + $0x228] ss:$16 sps:$4 sm:$0xff]   ;;  %v11067_v34 = vld [vmem:[%s12082_s30 + $0xc] ss:$16 sps:$4 sm:$0xff]  }
 0x581   : > { %8808 = vmatprep.subr.bf16.mxu1 %v11018_v3  ;;  %v11070_v3 = vld [vmem:[%s12082_s30 + $0x20c] ss:$16 sps:$4 sm:$0xff]  }
 0x583   : > { %8768 = vmatpush2.bf16.msra.mxu0 %v11013_v18  ;;  %v11065_v18 = vld [vmem:[%s12082_s30 + $0x8] ss:$16 sps:$4 sm:$0xff]  }
 0x584   : > { %8809 = vmatpush2.bf16.msra.mxu1 %v11016_v4  ;;  %8819 = vmatprep.subr.bf16.mxu0 %v11025_v20  ;;  %v11068_v4 = vld [vmem:[%s12082_s30 + $0x208] ss:$16 sps:$4 sm:$0xff]  }
 0x585   : > { %8860 = vmatprep.subr.bf16.mxu1 %v11028_v16  ;;  %v11071_v20 = vld [vmem:[%s12082_s30 + $0x1e8] ss:$16 sps:$4 sm:$0xff]  }
 0x586   : > { %v8525_v46 = vpop.f32.mrf.mxu0  ;;  %8770 = vmatmul.mubr.bf16.vlgmr.msra.gmra.mxu0 %v12760_v24  ;;  %v11074_v16 = vld [vmem:[%s12082_s30 + $0x3e8] ss:$16 sps:$4 sm:$0xff]  }
 0x587   : > { %v8566_v48 = vpop.f32.mrf.mxu1  ;;  %8811 = vmatmul.mubr.bf16.vlgmr.msra.gmra.mxu1 %v12764_v8  ;;  %v8526_v21 = vadd.f32 %v8525_v46, %v5858_v41  ;;  %8820 = vmatpush1.bf16.msra.mxu0 %v11023_v30  ;;  %v11082_v30 = vld [vmem:[%s12082_s30 + $0x3cc] ss:$16 sps:$4 sm:$0xff]   ;;  %v11077_v41 = vld [vmem:[%s12082_s30 + $0x1c8] ss:$16 sps:$4 sm:$0xff]  }
 0x588   : > { %8861 = vmatpush1.bf16.msra.mxu1 %v11026_v42  ;;  %v8527_v43 = vpop.f32.mrf.mxu0  ;;  %8821 = vmatprep.subr.bf16.mxu0 %v11031_v47  ;;  %v11080_v42 = vld [vmem:[%s12082_s30 + $0x3c8] ss:$16 sps:$4 sm:$0xff]   ;;  %v11085_v47 = vld [vmem:[%s12082_s30 + $0x1ac] ss:$16 sps:$4 sm:$0xff]  }
 0x589   : > { %v8568_v35 = vpop.f32.mrf.mxu1  ;;  %8862 = vmatprep.subr.bf16.mxu1 %v11034_v45  ;;  %v12776_v6 = vadd.f32 %v8566_v48, %v8526_v21  ;;  %v8528_v51 = vadd.f32 %v8527_v43, %v5862_v36  ;;  %8851 = vmatprep.mubr.bf16.mxu0 %v12466_v55  ;;  %v11043_v55 = vld [vmem:[%s12082_s30 + $0x8c] ss:$16 sps:$4 sm:$0xff]   ;;  %v11083_v36 = vld [vmem:[%s12082_s30 + $0x1a8] ss:$16 sps:$4 sm:$0xff]  }
 0x58a   : > { %8892 = vmatprep.mubr.bf16.mxu1 %v12470_v0  ;;  %v8529_v54 = vpop.f32.mrf.mxu0  ;;  %v11046_v0 = vld [vmem:[%s12082_s30 + $0x28c] ss:$16 sps:$4 sm:$0xff]   ;;  %v11086_v46 = vld [vmem:[%s12082_s30 + $0x3a8] ss:$16 sps:$4 sm:$0xff]  }
 0x58b   : > { %v8570_v63 = vpop.f32.mrf.mxu1  ;;  %v12781_v44 = vadd.f32 %v8568_v35, %v8528_v51  ;;  %8822 = vmatpush1.bf16.msra.mxu0 %v11029_v28  ;;  %v11088_v45 = vld [vmem:[%s12082_s30 + $0x3ac] ss:$16 sps:$4 sm:$0xff]   ;;  %v11089_v21 = vld [vmem:[%s12082_s30 + $0x188] ss:$16 sps:$4 sm:$0xff]  }
 0x58c   : > { %8863 = vmatpush1.bf16.msra.mxu1 %v11032_v9  ;;  %v8530_v58 = vpop.f32.mrf.mxu0  ;;  %8823 = vmatprep.subr.bf16.mxu0 %v11037_v49  ;;  %v11091_v48 = vld [vmem:[%s12082_s30 + $0x18c] ss:$16 sps:$4 sm:$0xff]   ;;  %v11092_v9 = vld [vmem:[%s12082_s30 + $0x388] ss:$16 sps:$4 sm:$0xff]  }
 0x58d   : > { %v8571_v11 = vpop.f32.mrf.mxu1  ;;  %8864 = vmatprep.subr.bf16.mxu1 %v11040_v50  ;;  %v11094_v28 = vld [vmem:[%s12082_s30 + $0x38c] ss:$16 sps:$4 sm:$0xff]   ;;  %v11095_v49 = vld [vmem:[%s12082_s30 + $0x168] ss:$16 sps:$4 sm:$0xff]  }
 0x58e   : > { %v11097_v43 = vld [vmem:[%s12082_s30 + $0x16c] ss:$16 sps:$4 sm:$0xff]   ;;  %v11098_v50 = vld [vmem:[%s12082_s30 + $0x368] ss:$16 sps:$4 sm:$0xff]  }
 0x58f   : > { %8824 = vmatpush1.bf16.msra.mxu0 %v11035_v38  ;;  %v11100_v35 = vld [vmem:[%s12082_s30 + $0x36c] ss:$16 sps:$4 sm:$0xff]   ;;  %v11101_v63 = vld [vmem:[%s12082_s30 + $0x148] ss:$16 sps:$4 sm:$0xff]  }
 0x590   : > { %8865 = vmatpush1.bf16.msra.mxu1 %v11038_v39  ;;  %8825 = vmatprep.subr.bf16.mxu0 %v11043_v55  ;;  %v11103_v51 = vld [vmem:[%s12082_s30 + $0x14c] ss:$16 sps:$4 sm:$0xff]   ;;  %v11104_v38 = vld [vmem:[%s12082_s30 + $0x348] ss:$16 sps:$4 sm:$0xff]  }
 0x591   : > { %8866 = vmatprep.subr.bf16.mxu1 %v11046_v0  ;;  %v11106_v54 = vld [vmem:[%s12082_s30 + $0x34c] ss:$16 sps:$4 sm:$0xff]   ;;  %v11107_v11 = vld [vmem:[%s12082_s30 + $0x128] ss:$16 sps:$4 sm:$0xff]  }
 0x592   : > { %v11109_v39 = vld [vmem:[%s12082_s30 + $0x12c] ss:$16 sps:$4 sm:$0xff]   ;;  %v11110_v55 = vld [vmem:[%s12082_s30 + $0x328] ss:$16 sps:$4 sm:$0xff]  }
 0x593   : > { %8826 = vmatpush1.bf16.msra.mxu0 %v11041_v40  ;;  %v11112_v58 = vld [vmem:[%s12082_s30 + $0x32c] ss:$16 sps:$4 sm:$0xff]  }
 0x594   : > { %8867 = vmatpush1.bf16.msra.mxu1 %v11044_v52  ;;  %8827 = vmatprep.subr.bf16.mxu0 %v11049_v5  ;;  %v11115_v0 = vld [vmem:[%s12082_s30 + $0x10c] ss:$16 sps:$4 sm:$0xff]   ;;  %v11113_v52 = vld [vmem:[%s12082_s30 + $0x108] ss:$16 sps:$4 sm:$0xff]  }
 0x595   : > { %8868 = vmatprep.subr.bf16.mxu1 %v11052_v14  ;;  %v11118_v40 = vld [vmem:[%s12082_s30 + $0x30c] ss:$16 sps:$4 sm:$0xff]   ;;  %v11116_v5 = vld [vmem:[%s12082_s30 + $0x308] ss:$16 sps:$4 sm:$0xff]  }
 0x596   : > { %v11121_v14 = vld [vmem:[%s12082_s30 + $0x4ec] ss:$16 sps:$4 sm:$0xff]  }
 0x597   : > { %8828 = vmatpush1.bf16.msra.mxu0 %v11047_v33  ;;  %v11124_v33 = vld [vmem:[%s12082_s30 + $0x6ec] ss:$16 sps:$4 sm:$0xff]  }
 0x598   : > { %8869 = vmatpush1.bf16.msra.mxu1 %v11050_v56  ;;  %8829 = vmatprep.subr.bf16.mxu0 %v11055_v61  ;;  %v11119_v56 = vld [vmem:[%s12082_s30 + $0x4e8] ss:$16 sps:$4 sm:$0xff]  }
 0x599   : > { %8870 = vmatprep.subr.bf16.mxu1 %v11058_v25  ;;  %v11122_v61 = vld [vmem:[%s12082_s30 + $0x6e8] ss:$16 sps:$4 sm:$0xff]   ;;  %v11127_v25 = vld [vmem:[%s12082_s30 + $0x4cc] ss:$16 sps:$4 sm:$0xff]  }
 0x59b   : > { %8830 = vmatpush1.bf16.msra.mxu0 %v11053_v62  ;;  %v11130_v62 = vld [vmem:[%s12082_s30 + $0x6cc] ss:$16 sps:$4 sm:$0xff]  }
 0x59c   : > { %8871 = vmatpush1.bf16.msra.mxu1 %v11056_v26  ;;  %8831 = vmatprep.subr.bf16.mxu0 %v11061_v29 }
 0x59d   : > { %8872 = vmatprep.subr.bf16.mxu1 %v11064_v15 }
 0x59f   : > { %8832 = vmatpush1.bf16.msra.mxu0 %v11059_v31  ;;  %v11125_v31 = vld [vmem:[%s12082_s30 + $0x4c8] ss:$16 sps:$4 sm:$0xff]  }
 0x5a0   : > { %8873 = vmatpush1.bf16.msra.mxu1 %v11062_v22  ;;  %8833 = vmatprep.subr.bf16.mxu0 %v11067_v34  ;;  %v11128_v22 = vld [vmem:[%s12082_s30 + $0x6c8] ss:$16 sps:$4 sm:$0xff]  }
 0x5a1   : > { %8874 = vmatprep.subr.bf16.mxu1 %v11070_v3 }
 0x5a3   : > { %8834 = vmatpush1.bf16.msra.mxu0 %v11065_v18  ;;  %v11133_v18 = vld [vmem:[%s12082_s30 + $0x4ac] ss:$16 sps:$4 sm:$0xff]  }
 0x5a4   : > { %8875 = vmatpush1.bf16.msra.mxu1 %v11068_v4  ;;  %8835 = vmatprep.subr.bf16.mxu0 %v11073_v37  ;;  %v11136_v4 = vld [vmem:[%s12082_s30 + $0x6ac] ss:$16 sps:$4 sm:$0xff]  }
 0x5a5   : > { %8876 = vmatprep.subr.bf16.mxu1 %v11076_v12 }
 0x5a7   : > { %8836 = vmatpush2.bf16.msra.mxu0 %v11071_v20  ;;  %v11131_v20 = vld [vmem:[%s12082_s30 + $0x4a8] ss:$16 sps:$4 sm:$0xff]  }
 0x5a8   : > { %8877 = vmatpush2.bf16.msra.mxu1 %v11074_v16  ;;  %8837 = vmatprep.subr.bf16.mxu0 %v11079_v19  ;;  %v11134_v16 = vld [vmem:[%s12082_s30 + $0x6a8] ss:$16 sps:$4 sm:$0xff]  }
 0x5a9   : > { %8878 = vmatprep.subr.bf16.mxu1 %v11082_v30 }
 0x5ab   : > { %8838 = vmatpush2.bf16.msra.mxu0 %v11077_v41  ;;  %v11140_v41 = vld [vmem:[%s12082_s30 + $0x688] ss:$16 sps:$4 sm:$0xff]  }
 0x5ac   : > { %8879 = vmatpush2.bf16.msra.mxu1 %v11080_v42  ;;  %8839 = vmatprep.subr.bf16.mxu0 %v11085_v47  ;;  %v11145_v42 = vld [vmem:[%s12082_s30 + $0x46c] ss:$16 sps:$4 sm:$0xff]  }
 0x5ad   : > { %8880 = vmatprep.subr.bf16.mxu1 %v11088_v45  ;;  %v11148_v47 = vld [vmem:[%s12082_s30 + $0x66c] ss:$16 sps:$4 sm:$0xff]   ;;  %v11143_v45 = vld [vmem:[%s12082_s30 + $0x468] ss:$16 sps:$4 sm:$0xff]  }
 0x5af   : > { %8840 = vmatpush2.bf16.msra.mxu0 %v11083_v36  ;;  %v11146_v36 = vld [vmem:[%s12082_s30 + $0x668] ss:$16 sps:$4 sm:$0xff]  }
 0x5b0   : > { %8881 = vmatpush2.bf16.msra.mxu1 %v11086_v46  ;;  %8841 = vmatprep.subr.bf16.mxu0 %v11091_v48  ;;  %v11151_v46 = vld [vmem:[%s12082_s30 + $0x44c] ss:$16 sps:$4 sm:$0xff]  }
 0x5b1   : > { %8882 = vmatprep.subr.bf16.mxu1 %v11094_v28  ;;  %v11154_v48 = vld [vmem:[%s12082_s30 + $0x64c] ss:$16 sps:$4 sm:$0xff]   ;;  %v11149_v28 = vld [vmem:[%s12082_s30 + $0x448] ss:$16 sps:$4 sm:$0xff]  }
 0x5b3   : > { %8842 = vmatpush2.bf16.msra.mxu0 %v11089_v21  ;;  %v11152_v21 = vld [vmem:[%s12082_s30 + $0x648] ss:$16 sps:$4 sm:$0xff]  }
 0x5b4   : > { %8883 = vmatpush2.bf16.msra.mxu1 %v11092_v9  ;;  %8843 = vmatprep.subr.bf16.mxu0 %v11097_v43  ;;  %v11157_v9 = vld [vmem:[%s12082_s30 + $0x42c] ss:$16 sps:$4 sm:$0xff]  }
 0x5b5   : > { %8884 = vmatprep.subr.bf16.mxu1 %v11100_v35  ;;  %v11160_v43 = vld [vmem:[%s12082_s30 + $0x62c] ss:$16 sps:$4 sm:$0xff]   ;;  %v11155_v35 = vld [vmem:[%s12082_s30 + $0x428] ss:$16 sps:$4 sm:$0xff]  }
 0x5b7   : > { %8844 = vmatpush2.bf16.msra.mxu0 %v11095_v49  ;;  %v11158_v49 = vld [vmem:[%s12082_s30 + $0x628] ss:$16 sps:$4 sm:$0xff]  }
 0x5b8   : > { %8885 = vmatpush2.bf16.msra.mxu1 %v11098_v50  ;;  %8845 = vmatprep.subr.bf16.mxu0 %v11103_v51  ;;  %v11163_v50 = vld [vmem:[%s12082_s30 + $0x40c] ss:$16 sps:$4 sm:$0xff]  }
 0x5b9   : > { %8886 = vmatprep.subr.bf16.mxu1 %v11106_v54  ;;  %v11166_v51 = vld [vmem:[%s12082_s30 + $0x60c] ss:$16 sps:$4 sm:$0xff]   ;;  %v11161_v54 = vld [vmem:[%s12082_s30 + $0x408] ss:$16 sps:$4 sm:$0xff]  }
 0x5bb   : > { %8846 = vmatpush2.bf16.msra.mxu0 %v11101_v63  ;;  %v11164_v63 = vld [vmem:[%s12082_s30 + $0x608] ss:$16 sps:$4 sm:$0xff]  }
 0x5bc   : > { %8887 = vmatpush2.bf16.msra.mxu1 %v11104_v38  ;;  %8847 = vmatprep.subr.bf16.mxu0 %v11109_v39  ;;  %v11169_v38 = vld [vmem:[%s12082_s30 + $0x5ec] ss:$16 sps:$4 sm:$0xff]  }
 0x5bd   : > { %8888 = vmatprep.subr.bf16.mxu1 %v11112_v58  ;;  %v11172_v39 = vld [vmem:[%s12082_s30 + $0x7ec] ss:$16 sps:$4 sm:$0xff]   ;;  %v11167_v58 = vld [vmem:[%s12082_s30 + $0x5e8] ss:$16 sps:$4 sm:$0xff]  }
 0x5bf   : > { %8848 = vmatpush2.bf16.msra.mxu0 %v11107_v11  ;;  %v11170_v11 = vld [vmem:[%s12082_s30 + $0x7e8] ss:$16 sps:$4 sm:$0xff]  }
 0x5c0   : > { %8889 = vmatpush2.bf16.msra.mxu1 %v11110_v55  ;;  %8849 = vmatprep.subr.bf16.mxu0 %v11115_v0  ;;  %v11175_v55 = vld [vmem:[%s12082_s30 + $0x5cc] ss:$16 sps:$4 sm:$0xff]  }
 0x5c1   : > { %8890 = vmatprep.subr.bf16.mxu1 %v11118_v40  ;;  %v11178_v0 = vld [vmem:[%s12082_s30 + $0x7cc] ss:$16 sps:$4 sm:$0xff]   ;;  %v11173_v40 = vld [vmem:[%s12082_s30 + $0x5c8] ss:$16 sps:$4 sm:$0xff]  }
 0x5c3   : > { %8850 = vmatpush2.bf16.msra.mxu0 %v11113_v52  ;;  %v11176_v52 = vld [vmem:[%s12082_s30 + $0x7c8] ss:$16 sps:$4 sm:$0xff]  }
 0x5c4   : > { %8891 = vmatpush2.bf16.msra.mxu1 %v11116_v5  ;;  %8901 = vmatprep.subr.bf16.mxu0 %v11121_v14  ;;  %v11181_v5 = vld [vmem:[%s12082_s30 + $0x5ac] ss:$16 sps:$4 sm:$0xff]  }
 0x5c5   : > { %8942 = vmatprep.subr.bf16.mxu1 %v11124_v33  ;;  %v11184_v14 = vld [vmem:[%s12082_s30 + $0x7ac] ss:$16 sps:$4 sm:$0xff]   ;;  %v11179_v33 = vld [vmem:[%s12082_s30 + $0x5a8] ss:$16 sps:$4 sm:$0xff]  }
 0x5c6   : > { %v8607_v26 = vpop.f32.mrf.mxu0  ;;  %8852 = vmatmul.mubr.bf16.vlgmr.msra.gmra.mxu0 %v12492_v57 }
 0x5c7   : > { %v8648_v29 = vpop.f32.mrf.mxu1  ;;  %8893 = vmatmul.mubr.bf16.vlgmr.msra.gmra.mxu1 %v12494_v1  ;;  %v8608_v15 = vadd.f32 %v8607_v26, %v12776_v6  ;;  %8902 = vmatpush1.bf16.msra.mxu0 %v11119_v56  ;;  %v11182_v56 = vld [vmem:[%s12082_s30 + $0x7a8] ss:$16 sps:$4 sm:$0xff]  }
 0x5c8   : > { %8943 = vmatpush1.bf16.msra.mxu1 %v11122_v61  ;;  %v8609_v34 = vpop.f32.mrf.mxu0  ;;  %8903 = vmatprep.subr.bf16.mxu0 %v11127_v25  ;;  %v11187_v61 = vld [vmem:[%s12082_s30 + $0x58c] ss:$16 sps:$4 sm:$0xff]   ;;  %v11188_v26 = vld [vmem:[%s12082_s30 + $0x788] ss:$16 sps:$4 sm:$0xff]  }
 0x5c9   : > { %v8650_v3 = vpop.f32.mrf.mxu1  ;;  %8944 = vmatprep.subr.bf16.mxu1 %v11130_v62  ;;  %v12849_v37 = vadd.f32 %v8648_v29, %v8608_v15  ;;  %v8610_v57 = vadd.f32 %v8609_v34, %v12781_v44  ;;  %8933 = vmatprep.mubr.bf16.mxu0 %v12530_v17  ;;  %v11139_v17 = vld [vmem:[%s12082_s30 + $0x48c] ss:$16 sps:$4 sm:$0xff]   ;;  %v11137_v44 = vld [vmem:[%s12082_s30 + $0x488] ss:$16 sps:$4 sm:$0xff]  }
 0x5ca   : > { %8974 = vmatprep.mubr.bf16.mxu1 %v12534_v23  ;;  %v8611_v1 = vpop.f32.mrf.mxu0  ;;  %v11142_v23 = vld [vmem:[%s12082_s30 + $0x68c] ss:$16 sps:$4 sm:$0xff]   ;;  %v11185_v62 = vld [vmem:[%s12082_s30 + $0x588] ss:$16 sps:$4 sm:$0xff]  }
 0x5cb   : > { %v8652_v6 = vpop.f32.mrf.mxu1  ;;  %v12854_v12 = vadd.f32 %v8650_v3, %v8610_v57  ;;  %8904 = vmatpush1.bf16.msra.mxu0 %v11125_v31  ;;  %v11190_v25 = vld [vmem:[%s12082_s30 + $0x78c] ss:$16 sps:$4 sm:$0xff]   ;;  %v11191_v31 = vld [vmem:[%s12082_s30 + $0x568] ss:$16 sps:$4 sm:$0xff]  }
 0x5cc   : > { %8945 = vmatpush1.bf16.msra.mxu1 %v11128_v22  ;;  %v8612_v19 = vpop.f32.mrf.mxu0  ;;  %8905 = vmatprep.subr.bf16.mxu0 %v11133_v18  ;;  %v11193_v29 = vld [vmem:[%s12082_s30 + $0x56c] ss:$16 sps:$4 sm:$0xff]   ;;  %v11194_v22 = vld [vmem:[%s12082_s30 + $0x768] ss:$16 sps:$4 sm:$0xff]  }
 0x5cd   : > { %v8653_v30 = vpop.f32.mrf.mxu1  ;;  %8946 = vmatprep.subr.bf16.mxu1 %v11136_v4  ;;  %v11196_v15 = vld [vmem:[%s12082_s30 + $0x76c] ss:$16 sps:$4 sm:$0xff]   ;;  %v11197_v18 = vld [vmem:[%s12082_s30 + $0x548] ss:$16 sps:$4 sm:$0xff]  }
 0x5ce   : > { %v11199_v34 = vld [vmem:[%s12082_s30 + $0x54c] ss:$16 sps:$4 sm:$0xff]   ;;  %v11200_v4 = vld [vmem:[%s12082_s30 + $0x748] ss:$16 sps:$4 sm:$0xff]  }
 0x5cf   : > { %8906 = vmatpush1.bf16.msra.mxu0 %v11131_v20  ;;  %v11202_v3 = vld [vmem:[%s12082_s30 + $0x74c] ss:$16 sps:$4 sm:$0xff]   ;;  %v11203_v6 = vld [vmem:[%s12082_s30 + $0x528] ss:$16 sps:$4 sm:$0xff]  }
 0x5d0   : > { %8947 = vmatpush1.bf16.msra.mxu1 %v11134_v16  ;;  %8907 = vmatprep.subr.bf16.mxu0 %v11139_v17  ;;  %v11205_v57 = vld [vmem:[%s12082_s30 + $0x52c] ss:$16 sps:$4 sm:$0xff]   ;;  %v11206_v20 = vld [vmem:[%s12082_s30 + $0x728] ss:$16 sps:$4 sm:$0xff]  }
 0x5d1   : > { %8948 = vmatprep.subr.bf16.mxu1 %v11142_v23  ;;  %v11208_v1 = vld [vmem:[%s12082_s30 + $0x72c] ss:$16 sps:$4 sm:$0xff]   ;;  %v11209_v30 = vld [vmem:[%s12082_s30 + $0x508] ss:$16 sps:$4 sm:$0xff]  }
 0x5d2   : > { %v11211_v16 = vld [vmem:[%s12082_s30 + $0x50c] ss:$16 sps:$4 sm:$0xff]   ;;  %v11212_v17 = vld [vmem:[%s12082_s30 + $0x708] ss:$16 sps:$4 sm:$0xff]  }
 0x5d3   : > { %8908 = vmatpush1.bf16.msra.mxu0 %v11137_v44  ;;  %v11214_v19 = vld [vmem:[%s12082_s30 + $0x70c] ss:$16 sps:$4 sm:$0xff]  }
 0x5d4   : > { %8949 = vmatpush1.bf16.msra.mxu1 %v11140_v41  ;;  %8909 = vmatprep.subr.bf16.mxu0 %v11145_v42  ;;  %v11217_v23 = vld [vmem:[%s12082_s30 + $0x8ec] ss:$16 sps:$4 sm:$0xff]   ;;  %v11215_v41 = vld [vmem:[%s12082_s30 + $0x8e8] ss:$16 sps:$4 sm:$0xff]  }
 0x5d5   : > { %8950 = vmatprep.subr.bf16.mxu1 %v11148_v47  ;;  %v11220_v44 = vld [vmem:[%s12082_s30 + $0xaec] ss:$16 sps:$4 sm:$0xff]   ;;  %v11218_v42 = vld [vmem:[%s12082_s30 + $0xae8] ss:$16 sps:$4 sm:$0xff]  }
 0x5d6   : > { %v11223_v47 = vld [vmem:[%s12082_s30 + $0x8cc] ss:$16 sps:$4 sm:$0xff]  }
 0x5d7   : > { %8910 = vmatpush1.bf16.msra.mxu0 %v11143_v45  ;;  %v11226_v45 = vld [vmem:[%s12082_s30 + $0xacc] ss:$16 sps:$4 sm:$0xff]  }
 0x5d8   : > { %8951 = vmatpush1.bf16.msra.mxu1 %v11146_v36  ;;  %8911 = vmatprep.subr.bf16.mxu0 %v11151_v46 }
 0x5d9   : > { %8952 = vmatprep.subr.bf16.mxu1 %v11154_v48  ;;  %v11221_v48 = vld [vmem:[%s12082_s30 + $0x8c8] ss:$16 sps:$4 sm:$0xff]  }
 0x5db   : > { %8912 = vmatpush1.bf16.msra.mxu0 %v11149_v28  ;;  %v11224_v28 = vld [vmem:[%s12082_s30 + $0xac8] ss:$16 sps:$4 sm:$0xff]  }
 0x5dc   : > { %8953 = vmatpush1.bf16.msra.mxu1 %v11152_v21  ;;  %8913 = vmatprep.subr.bf16.mxu0 %v11157_v9 }
 0x5dd   : > { %8954 = vmatprep.subr.bf16.mxu1 %v11160_v43  ;;  %v11229_v43 = vld [vmem:[%s12082_s30 + $0x8ac] ss:$16 sps:$4 sm:$0xff]  }
 0x5df   : > { %8914 = vmatpush1.bf16.msra.mxu0 %v11155_v35  ;;  %v11232_v35 = vld [vmem:[%s12082_s30 + $0xaac] ss:$16 sps:$4 sm:$0xff]  }
 0x5e0   : > { %8955 = vmatpush1.bf16.msra.mxu1 %v11158_v49  ;;  %8915 = vmatprep.subr.bf16.mxu0 %v11163_v50  ;;  %v11227_v49 = vld [vmem:[%s12082_s30 + $0x8a8] ss:$16 sps:$4 sm:$0xff]  }
 0x5e1   : > { %8956 = vmatprep.subr.bf16.mxu1 %v11166_v51  ;;  %v11230_v50 = vld [vmem:[%s12082_s30 + $0xaa8] ss:$16 sps:$4 sm:$0xff]  }
 0x5e3   : > { %8916 = vmatpush1.bf16.msra.mxu0 %v11161_v54 }
 0x5e4   : > { %8957 = vmatpush1.bf16.msra.mxu1 %v11164_v63  ;;  %8917 = vmatprep.subr.bf16.mxu0 %v11169_v38  ;;  %v11235_v63 = vld [vmem:[%s12082_s30 + $0x88c] ss:$16 sps:$4 sm:$0xff]   ;;  %v11236_v38 = vld [vmem:[%s12082_s30 + $0xa88] ss:$16 sps:$4 sm:$0xff]  }
 0x5e5   : > { %8958 = vmatprep.subr.bf16.mxu1 %v11172_v39  ;;  %v11241_v39 = vld [vmem:[%s12082_s30 + $0x86c] ss:$16 sps:$4 sm:$0xff]  }
 0x5e7   : > { %8918 = vmatpush2.bf16.msra.mxu0 %v11167_v58  ;;  %v11244_v58 = vld [vmem:[%s12082_s30 + $0xa6c] ss:$16 sps:$4 sm:$0xff]  }
 0x5e8   : > { %8959 = vmatpush2.bf16.msra.mxu1 %v11170_v11  ;;  %8919 = vmatprep.subr.bf16.mxu0 %v11175_v55  ;;  %v11239_v11 = vld [vmem:[%s12082_s30 + $0x868] ss:$16 sps:$4 sm:$0xff]  }
 0x5e9   : > { %8960 = vmatprep.subr.bf16.mxu1 %v11178_v0  ;;  %v11242_v55 = vld [vmem:[%s12082_s30 + $0xa68] ss:$16 sps:$4 sm:$0xff]   ;;  %v11247_v0 = vld [vmem:[%s12082_s30 + $0x84c] ss:$16 sps:$4 sm:$0xff]  }
 0x5eb   : > { %8920 = vmatpush2.bf16.msra.mxu0 %v11173_v40  ;;  %v11250_v40 = vld [vmem:[%s12082_s30 + $0xa4c] ss:$16 sps:$4 sm:$0xff]  }
 0x5ec   : > { %8961 = vmatpush2.bf16.msra.mxu1 %v11176_v52  ;;  %8921 = vmatprep.subr.bf16.mxu0 %v11181_v5  ;;  %v11245_v52 = vld [vmem:[%s12082_s30 + $0x848] ss:$16 sps:$4 sm:$0xff]  }
 0x5ed   : > { %8962 = vmatprep.subr.bf16.mxu1 %v11184_v14  ;;  %v11248_v5 = vld [vmem:[%s12082_s30 + $0xa48] ss:$16 sps:$4 sm:$0xff]   ;;  %v11253_v14 = vld [vmem:[%s12082_s30 + $0x82c] ss:$16 sps:$4 sm:$0xff]  }
 0x5ef   : > { %8922 = vmatpush2.bf16.msra.mxu0 %v11179_v33  ;;  %v11256_v33 = vld [vmem:[%s12082_s30 + $0xa2c] ss:$16 sps:$4 sm:$0xff]  }
 0x5f0   : > { %8963 = vmatpush2.bf16.msra.mxu1 %v11182_v56  ;;  %8923 = vmatprep.subr.bf16.mxu0 %v11187_v61  ;;  %v11251_v56 = vld [vmem:[%s12082_s30 + $0x828] ss:$16 sps:$4 sm:$0xff]  }
 0x5f1   : > { %8964 = vmatprep.subr.bf16.mxu1 %v11190_v25  ;;  %v11254_v61 = vld [vmem:[%s12082_s30 + $0xa28] ss:$16 sps:$4 sm:$0xff]   ;;  %v11259_v25 = vld [vmem:[%s12082_s30 + $0x80c] ss:$16 sps:$4 sm:$0xff]  }
 0x5f3   : > { %8924 = vmatpush2.bf16.msra.mxu0 %v11185_v62  ;;  %v11262_v62 = vld [vmem:[%s12082_s30 + $0xa0c] ss:$16 sps:$4 sm:$0xff]  }
 0x5f4   : > { %8965 = vmatpush2.bf16.msra.mxu1 %v11188_v26  ;;  %8925 = vmatprep.subr.bf16.mxu0 %v11193_v29  ;;  %v11257_v26 = vld [vmem:[%s12082_s30 + $0x808] ss:$16 sps:$4 sm:$0xff]  }
 0x5f5   : > { %8966 = vmatprep.subr.bf16.mxu1 %v11196_v15  ;;  %v11260_v29 = vld [vmem:[%s12082_s30 + $0xa08] ss:$16 sps:$4 sm:$0xff]   ;;  %v11265_v15 = vld [vmem:[%s12082_s30 + $0x9ec] ss:$16 sps:$4 sm:$0xff]  }
 0x5f7   : > { %8926 = vmatpush2.bf16.msra.mxu0 %v11191_v31  ;;  %v11268_v31 = vld [vmem:[%s12082_s30 + $0xbec] ss:$16 sps:$4 sm:$0xff]  }
 0x5f8   : > { %8967 = vmatpush2.bf16.msra.mxu1 %v11194_v22  ;;  %8927 = vmatprep.subr.bf16.mxu0 %v11199_v34  ;;  %v11263_v22 = vld [vmem:[%s12082_s30 + $0x9e8] ss:$16 sps:$4 sm:$0xff]  }
 0x5f9   : > { %8968 = vmatprep.subr.bf16.mxu1 %v11202_v3  ;;  %v11266_v34 = vld [vmem:[%s12082_s30 + $0xbe8] ss:$16 sps:$4 sm:$0xff]   ;;  %v11271_v3 = vld [vmem:[%s12082_s30 + $0x9cc] ss:$16 sps:$4 sm:$0xff]  }
 0x5fb   : > { %8928 = vmatpush2.bf16.msra.mxu0 %v11197_v18  ;;  %v11274_v18 = vld [vmem:[%s12082_s30 + $0xbcc] ss:$16 sps:$4 sm:$0xff]  }
 0x5fc   : > { %8969 = vmatpush2.bf16.msra.mxu1 %v11200_v4  ;;  %8929 = vmatprep.subr.bf16.mxu0 %v11205_v57  ;;  %v11269_v4 = vld [vmem:[%s12082_s30 + $0x9c8] ss:$16 sps:$4 sm:$0xff]  }
 0x5fd   : > { %8970 = vmatprep.subr.bf16.mxu1 %v11208_v1  ;;  %v11272_v57 = vld [vmem:[%s12082_s30 + $0xbc8] ss:$16 sps:$4 sm:$0xff]   ;;  %v11277_v1 = vld [vmem:[%s12082_s30 + $0x9ac] ss:$16 sps:$4 sm:$0xff]  }
 0x5ff   : > { %8930 = vmatpush2.bf16.msra.mxu0 %v11203_v6  ;;  %v11280_v6 = vld [vmem:[%s12082_s30 + $0xbac] ss:$16 sps:$4 sm:$0xff]  }
 0x600   : > { %8971 = vmatpush2.bf16.msra.mxu1 %v11206_v20  ;;  %8931 = vmatprep.subr.bf16.mxu0 %v11211_v16  ;;  %v11275_v20 = vld [vmem:[%s12082_s30 + $0x9a8] ss:$16 sps:$4 sm:$0xff]  }
 0x601   : > { %8972 = vmatprep.subr.bf16.mxu1 %v11214_v19  ;;  %v11278_v16 = vld [vmem:[%s12082_s30 + $0xba8] ss:$16 sps:$4 sm:$0xff]   ;;  %v11283_v19 = vld [vmem:[%s12082_s30 + $0x98c] ss:$16 sps:$4 sm:$0xff]  }
 0x603   : > { %8932 = vmatpush2.bf16.msra.mxu0 %v11209_v30  ;;  %v11286_v30 = vld [vmem:[%s12082_s30 + $0xb8c] ss:$16 sps:$4 sm:$0xff]  }
 0x604   : > { %8973 = vmatpush2.bf16.msra.mxu1 %v11212_v17  ;;  %8983 = vmatprep.subr.bf16.mxu0 %v11217_v23  ;;  %v11281_v17 = vld [vmem:[%s12082_s30 + $0x988] ss:$16 sps:$4 sm:$0xff]  }
 0x605   : > { %9024 = vmatprep.subr.bf16.mxu1 %v11220_v44  ;;  %v11284_v23 = vld [vmem:[%s12082_s30 + $0xb88] ss:$16 sps:$4 sm:$0xff]   ;;  %v11289_v44 = vld [vmem:[%s12082_s30 + $0x96c] ss:$16 sps:$4 sm:$0xff]  }
 0x606   : > { %v12916_v36 = vpop.f32.mrf.mxu0  ;;  %8934 = vmatmul.mubr.bf16.vlgmr.msra.gmra.mxu0 %v12578_v59 }
 0x607   : > { %v12918_v46 = vpop.f32.mrf.mxu1  ;;  %8975 = vmatmul.mubr.bf16.vlgmr.msra.gmra.mxu1 %v12582_v60  ;;  %8984 = vmatpush1.bf16.msra.mxu0 %v11215_v41  ;;  %v11292_v41 = vld [vmem:[%s12082_s30 + $0xb6c] ss:$16 sps:$4 sm:$0xff]  }
 0x608   : > { %9025 = vmatpush1.bf16.msra.mxu1 %v11218_v42  ;;  %v12924_v21 = vpop.f32.mrf.mxu0  ;;  %8985 = vmatprep.subr.bf16.mxu0 %v11223_v47  ;;  %v11287_v42 = vld [vmem:[%s12082_s30 + $0x968] ss:$16 sps:$4 sm:$0xff]  }
 0x609   : > { %v12926_v9 = vpop.f32.mrf.mxu1  ;;  %9026 = vmatprep.subr.bf16.mxu1 %v11226_v45  ;;  %9015 = vmatprep.mubr.bf16.mxu0 %v12594_v7  ;;  %v11238_v7 = vld [vmem:[%s12082_s30 + $0xa8c] ss:$16 sps:$4 sm:$0xff]   ;;  %v11290_v47 = vld [vmem:[%s12082_s30 + $0xb68] ss:$16 sps:$4 sm:$0xff]  }
 0x60a   : > { %9056 = vmatprep.mubr.bf16.mxu1 %v12598_v10  ;;  %v8693_v59 = vpop.f32.mrf.mxu0  ;;  %v11233_v10 = vld [vmem:[%s12082_s30 + $0x888] ss:$16 sps:$4 sm:$0xff]   ;;  %v11295_v45 = vld [vmem:[%s12082_s30 + $0x94c] ss:$16 sps:$4 sm:$0xff]  }
 0x60b   : > { %v8734_v60 = vpop.f32.mrf.mxu1  ;;  %8986 = vmatpush1.bf16.msra.mxu0 %v11221_v48  ;;  %v11298_v48 = vld [vmem:[%s12082_s30 + $0xb4c] ss:$16 sps:$4 sm:$0xff]  }
 0x60c   : > { %9027 = vmatpush1.bf16.msra.mxu1 %v11224_v28  ;;  %v8694_v51 = vpop.f32.mrf.mxu0  ;;  %8987 = vmatprep.subr.bf16.mxu0 %v11229_v43  ;;  %v11293_v28 = vld [vmem:[%s12082_s30 + $0x948] ss:$16 sps:$4 sm:$0xff]   ;;  %v11304_v59 = vld [vmem:[%s12082_s30 + $0xb2c] ss:$16 sps:$4 sm:$0xff]  }
 0x60d   : > { %v8735_v54 = vpop.f32.mrf.mxu1  ;;  %9028 = vmatprep.subr.bf16.mxu1 %v11232_v35  ;;  %v11296_v43 = vld [vmem:[%s12082_s30 + $0xb48] ss:$16 sps:$4 sm:$0xff]   ;;  %v11301_v35 = vld [vmem:[%s12082_s30 + $0x92c] ss:$16 sps:$4 sm:$0xff]  }
 0x60e   : > { %v11299_v60 = vld [vmem:[%s12082_s30 + $0x928] ss:$16 sps:$4 sm:$0xff]   ;;  %v11310_v51 = vld [vmem:[%s12082_s30 + $0xb0c] ss:$16 sps:$4 sm:$0xff]  }
 0x60f   : > { %8988 = vmatpush1.bf16.msra.mxu0 %v11227_v49  ;;  %v11302_v49 = vld [vmem:[%s12082_s30 + $0xb28] ss:$16 sps:$4 sm:$0xff]  }
 0x610   : > { %9029 = vmatpush1.bf16.msra.mxu1 %v11230_v50  ;;  %8989 = vmatprep.subr.bf16.mxu0 %v11235_v63  ;;  %v11307_v50 = vld [vmem:[%s12082_s30 + $0x90c] ss:$16 sps:$4 sm:$0xff]   ;;  %v11305_v54 = vld [vmem:[%s12082_s30 + $0x908] ss:$16 sps:$4 sm:$0xff]  }
 0x611   : > { %9030 = vmatprep.subr.bf16.mxu1 %v11238_v7  ;;  %v11308_v63 = vld [vmem:[%s12082_s30 + $0xb08] ss:$16 sps:$4 sm:$0xff]   ;;  %v11313_v7 = vld [vmem:[%s12082_s30 + $0xcec] ss:$16 sps:$4 sm:$0xff]  }
 0x613   : > { %8990 = vmatpush1.bf16.msra.mxu0 %v11233_v10  ;;  %v11316_v10 = vld [vmem:[%s12082_s30 + $0xeec] ss:$16 sps:$4 sm:$0xff]  }
 0x614   : > { %9031 = vmatpush1.bf16.msra.mxu1 %v11236_v38  ;;  %8991 = vmatprep.subr.bf16.mxu0 %v11241_v39  ;;  %v8690_v38 = vadd.f32 %v12916_v36, %v12849_v37  ;;  %v8692_v39 = vadd.f32 %v12924_v21, %v12854_v12  ;;  %v11317_v36 = vld [vmem:[%s12082_s30 + $0xcc8] ss:$16 sps:$4 sm:$0xff]  }
 0x615   : > { %9032 = vmatprep.subr.bf16.mxu1 %v11244_v58  ;;  %v11311_v58 = vld [vmem:[%s12082_s30 + $0xce8] ss:$16 sps:$4 sm:$0xff]  }
 0x616   : > { %v8733_v37 = vadd.f32 %v12926_v9, %v8692_v39  ;;  %v11320_v21 = vld [vmem:[%s12082_s30 + $0xec8] ss:$16 sps:$4 sm:$0xff]  }
 0x617   : > { %8992 = vmatpush1.bf16.msra.mxu0 %v11239_v11  ;;  %v11314_v11 = vld [vmem:[%s12082_s30 + $0xee8] ss:$16 sps:$4 sm:$0xff]  }
 0x618   : > { %9033 = vmatpush1.bf16.msra.mxu1 %v11242_v55  ;;  %8993 = vmatprep.subr.bf16.mxu0 %v11247_v0  ;;  %v11319_v55 = vld [vmem:[%s12082_s30 + $0xccc] ss:$16 sps:$4 sm:$0xff]   ;;  %v11377_v39 = vld [vmem:[%s12082_s30 + $0xd88] ss:$16 sps:$4 sm:$0xff]  }
 0x619   : > { %9034 = vmatprep.subr.bf16.mxu1 %v11250_v40  ;;  %v11322_v0 = vld [vmem:[%s12082_s30 + $0xecc] ss:$16 sps:$4 sm:$0xff]   ;;  %v8731_v40 = vadd.f32 %v12918_v46, %v8690_v38 }
 0x61a   : > { %v11325_v46 = vld [vmem:[%s12082_s30 + $0xcac] ss:$16 sps:$4 sm:$0xff]  }
 0x61b   : > { %8994 = vmatpush1.bf16.msra.mxu0 %v11245_v52  ;;  %v11382_v38 = vld [vmem:[%s12082_s30 + $0xf8c] ss:$16 sps:$4 sm:$0xff]  }
 0x61c   : > { %9035 = vmatpush1.bf16.msra.mxu1 %v11248_v5  ;;  %8995 = vmatprep.subr.bf16.mxu0 %v11253_v14 }
 0x61d   : > { %9036 = vmatprep.subr.bf16.mxu1 %v11256_v33 }
 0x61f   : > { %8996 = vmatpush1.bf16.msra.mxu0 %v11251_v56  ;;  %v11328_v56 = vld [vmem:[%s12082_s30 + $0xeac] ss:$16 sps:$4 sm:$0xff]  }
 0x620   : > { %9037 = vmatpush1.bf16.msra.mxu1 %v11254_v61  ;;  %8997 = vmatprep.subr.bf16.mxu0 %v11259_v25 }
 0x621   : > { %9038 = vmatprep.subr.bf16.mxu1 %v11262_v62  ;;  %v11323_v62 = vld [vmem:[%s12082_s30 + $0xca8] ss:$16 sps:$4 sm:$0xff]  }
 0x623   : > { %8998 = vmatpush1.bf16.msra.mxu0 %v11257_v26  ;;  %v11326_v26 = vld [vmem:[%s12082_s30 + $0xea8] ss:$16 sps:$4 sm:$0xff]  }
 0x624   : > { %9039 = vmatpush1.bf16.msra.mxu1 %v11260_v29  ;;  %8999 = vmatprep.subr.bf16.mxu0 %v11265_v15 }
 0x625   : > { %9040 = vmatprep.subr.bf16.mxu1 %v11268_v31  ;;  %v11329_v31 = vld [vmem:[%s12082_s30 + $0xc88] ss:$16 sps:$4 sm:$0xff]  }
 0x627   : > { %9000 = vmatpush2.bf16.msra.mxu0 %v11263_v22  ;;  %v11332_v22 = vld [vmem:[%s12082_s30 + $0xe88] ss:$16 sps:$4 sm:$0xff]  }
 0x628   : > { %9041 = vmatpush2.bf16.msra.mxu1 %v11266_v34  ;;  %9001 = vmatprep.subr.bf16.mxu0 %v11271_v3  ;;  %v11337_v34 = vld [vmem:[%s12082_s30 + $0xc6c] ss:$16 sps:$4 sm:$0xff]  }
 0x629   : > { %9042 = vmatprep.subr.bf16.mxu1 %v11274_v18  ;;  %v11340_v3 = vld [vmem:[%s12082_s30 + $0xe6c] ss:$16 sps:$4 sm:$0xff]   ;;  %v11335_v18 = vld [vmem:[%s12082_s30 + $0xc68] ss:$16 sps:$4 sm:$0xff]  }
 0x62b   : > { %9002 = vmatpush2.bf16.msra.mxu0 %v11269_v4  ;;  %v11338_v4 = vld [vmem:[%s12082_s30 + $0xe68] ss:$16 sps:$4 sm:$0xff]  }
 0x62c   : > { %9043 = vmatpush2.bf16.msra.mxu1 %v11272_v57  ;;  %9003 = vmatprep.subr.bf16.mxu0 %v11277_v1  ;;  %v11343_v57 = vld [vmem:[%s12082_s30 + $0xc4c] ss:$16 sps:$4 sm:$0xff]  }
 0x62d   : > { %9044 = vmatprep.subr.bf16.mxu1 %v11280_v6  ;;  %v11346_v1 = vld [vmem:[%s12082_s30 + $0xe4c] ss:$16 sps:$4 sm:$0xff]   ;;  %v11341_v6 = vld [vmem:[%s12082_s30 + $0xc48] ss:$16 sps:$4 sm:$0xff]  }
 0x62f   : > { %9004 = vmatpush2.bf16.msra.mxu0 %v11275_v20  ;;  %v11344_v20 = vld [vmem:[%s12082_s30 + $0xe48] ss:$16 sps:$4 sm:$0xff]  }
 0x630   : > { %9045 = vmatpush2.bf16.msra.mxu1 %v11278_v16  ;;  %9005 = vmatprep.subr.bf16.mxu0 %v11283_v19  ;;  %v11349_v19 = vld [vmem:[%s12082_s30 + $0xc2c] ss:$16 sps:$4 sm:$0xff]  }
 0x631   : > { %9046 = vmatprep.subr.bf16.mxu1 %v11286_v30  ;;  %v11352_v30 = vld [vmem:[%s12082_s30 + $0xe2c] ss:$16 sps:$4 sm:$0xff]  }
 0x633   : > { %9006 = vmatpush2.bf16.msra.mxu0 %v11281_v17 }
 0x634   : > { %9047 = vmatpush2.bf16.msra.mxu1 %v11284_v23  ;;  %9007 = vmatprep.subr.bf16.mxu0 %v11289_v44  ;;  %v11347_v23 = vld [vmem:[%s12082_s30 + $0xc28] ss:$16 sps:$4 sm:$0xff]  }
 0x635   : > { %9048 = vmatprep.subr.bf16.mxu1 %v11292_v41  ;;  %v11350_v44 = vld [vmem:[%s12082_s30 + $0xe28] ss:$16 sps:$4 sm:$0xff]   ;;  %v11355_v41 = vld [vmem:[%s12082_s30 + $0xc0c] ss:$16 sps:$4 sm:$0xff]  }
 0x637   : > { %9008 = vmatpush2.bf16.msra.mxu0 %v11287_v42  ;;  %v11358_v42 = vld [vmem:[%s12082_s30 + $0xe0c] ss:$16 sps:$4 sm:$0xff]  }
 0x638   : > { %9049 = vmatpush2.bf16.msra.mxu1 %v11290_v47  ;;  %9009 = vmatprep.subr.bf16.mxu0 %v11295_v45  ;;  %v11353_v47 = vld [vmem:[%s12082_s30 + $0xc08] ss:$16 sps:$4 sm:$0xff]  }
 0x639   : > { %9050 = vmatprep.subr.bf16.mxu1 %v11298_v48  ;;  %v11356_v45 = vld [vmem:[%s12082_s30 + $0xe08] ss:$16 sps:$4 sm:$0xff]   ;;  %v11361_v48 = vld [vmem:[%s12082_s30 + $0xdec] ss:$16 sps:$4 sm:$0xff]  }
 0x63b   : > { %9010 = vmatpush2.bf16.msra.mxu0 %v11293_v28  ;;  %v11364_v28 = vld [vmem:[%s12082_s30 + $0xfec] ss:$16 sps:$4 sm:$0xff]  }
 0x63c   : > { %9051 = vmatpush2.bf16.msra.mxu1 %v11296_v43  ;;  %9011 = vmatprep.subr.bf16.mxu0 %v11301_v35  ;;  %v11359_v43 = vld [vmem:[%s12082_s30 + $0xde8] ss:$16 sps:$4 sm:$0xff]  }
 0x63d   : > { %9052 = vmatprep.subr.bf16.mxu1 %v11304_v59  ;;  %v11362_v35 = vld [vmem:[%s12082_s30 + $0xfe8] ss:$16 sps:$4 sm:$0xff]   ;;  %v11367_v59 = vld [vmem:[%s12082_s30 + $0xdcc] ss:$16 sps:$4 sm:$0xff]  }
 0x63f   : > { %9012 = vmatpush2.bf16.msra.mxu0 %v11299_v60  ;;  %v11370_v60 = vld [vmem:[%s12082_s30 + $0xfcc] ss:$16 sps:$4 sm:$0xff]  }
 0x640   : > { %9053 = vmatpush2.bf16.msra.mxu1 %v11302_v49  ;;  %9013 = vmatprep.subr.bf16.mxu0 %v11307_v50  ;;  %v11365_v49 = vld [vmem:[%s12082_s30 + $0xdc8] ss:$16 sps:$4 sm:$0xff]  }
 0x641   : > { %9054 = vmatprep.subr.bf16.mxu1 %v11310_v51  ;;  %v11368_v50 = vld [vmem:[%s12082_s30 + $0xfc8] ss:$16 sps:$4 sm:$0xff]   ;;  %v11373_v51 = vld [vmem:[%s12082_s30 + $0xdac] ss:$16 sps:$4 sm:$0xff]  }
 0x643   : > { %9014 = vmatpush2.bf16.msra.mxu0 %v11305_v54  ;;  %v11376_v54 = vld [vmem:[%s12082_s30 + $0xfac] ss:$16 sps:$4 sm:$0xff]  }
 0x644   : > { %9055 = vmatpush2.bf16.msra.mxu1 %v11308_v63  ;;  %9065 = vmatprep.subr.bf16.mxu0 %v11313_v7  ;;  %v11371_v63 = vld [vmem:[%s12082_s30 + $0xda8] ss:$16 sps:$4 sm:$0xff]  }
 0x645   : > { %9106 = vmatprep.subr.bf16.mxu1 %v11316_v10  ;;  %v11374_v7 = vld [vmem:[%s12082_s30 + $0xfa8] ss:$16 sps:$4 sm:$0xff]   ;;  %v11379_v10 = vld [vmem:[%s12082_s30 + $0xd8c] ss:$16 sps:$4 sm:$0xff]  }
 0x646   : > { %v8771_v52 = vpop.f32.mrf.mxu0  ;;  %9016 = vmatmul.mubr.bf16.vlgmr.msra.gmra.mxu0 %v12669_v27 }
 0x647   : > { %v8812_v5 = vpop.f32.mrf.mxu1  ;;  %9057 = vmatmul.mubr.bf16.vlgmr.msra.gmra.mxu1 %v12673_v32  ;;  %v8772_v12 = vadd.f32 %v8771_v52, %v8731_v40  ;;  %9066 = vmatpush1.bf16.msra.mxu0 %v11311_v58  ;;  %v11380_v58 = vld [vmem:[%s12082_s30 + $0xf88] ss:$16 sps:$4 sm:$0xff]   ;;  %v11391_v52 = vld [vmem:[%s12082_s30 + $0xd4c] ss:$16 sps:$4 sm:$0xff]  }
 0x648   : > { %9107 = vmatpush1.bf16.msra.mxu1 %v11314_v11  ;;  %v8773_v14 = vpop.f32.mrf.mxu0  ;;  %9067 = vmatprep.subr.bf16.mxu0 %v11319_v55  ;;  %v11385_v11 = vld [vmem:[%s12082_s30 + $0xd6c] ss:$16 sps:$4 sm:$0xff]   ;;  %v11386_v40 = vld [vmem:[%s12082_s30 + $0xf68] ss:$16 sps:$4 sm:$0xff]  }
 0x649   : > { %v8814_v33 = vpop.f32.mrf.mxu1  ;;  %9108 = vmatprep.subr.bf16.mxu1 %v11322_v0  ;;  %v8813_v61 = vadd.f32 %v8812_v5, %v8772_v12  ;;  %v8774_v27 = vadd.f32 %v8773_v14, %v8733_v37  ;;  %9097 = vmatprep.mubr.bf16.mxu0 %v12682_v53  ;;  %v11331_v53 = vld [vmem:[%s12082_s30 + $0xc8c] ss:$16 sps:$4 sm:$0xff]   ;;  %v11383_v0 = vld [vmem:[%s12082_s30 + $0xd68] ss:$16 sps:$4 sm:$0xff]  }
 0x64a   : > { %9138 = vmatprep.mubr.bf16.mxu1 %v12686_v2  ;;  %v8775_v32 = vpop.f32.mrf.mxu0  ;;  %v11334_v2 = vld [vmem:[%s12082_s30 + $0xe8c] ss:$16 sps:$4 sm:$0xff]   ;;  %v11389_v37 = vld [vmem:[%s12082_s30 + $0xd48] ss:$16 sps:$4 sm:$0xff]  }
 0x64b   : > { %v8816_v9 = vpop.f32.mrf.mxu1  ;;  %11407 = vtanh.f32 %v8813_v61  ;;  %v8815_v25 = vadd.f32 %v8814_v33, %v8774_v27  ;;  %9068 = vmatpush1.bf16.msra.mxu0 %v11317_v36  ;;  %v11388_v55 = vld [vmem:[%s12082_s30 + $0xf6c] ss:$16 sps:$4 sm:$0xff]   ;;  %v11392_v12 = vld [vmem:[%s12082_s30 + $0xf48] ss:$16 sps:$4 sm:$0xff]   ;;  %v5865_v32 = vsub.s32 2, %v12746_v13 }
 0x64c   : > { %9109 = vmatpush1.bf16.msra.mxu1 %v11320_v21  ;;  %v8776_v29 = vpop.f32.mrf.mxu0  ;;  %9069 = vmatprep.subr.bf16.mxu0 %v11325_v46  ;;  %v11394_v5 = vld [vmem:[%s12082_s30 + $0xf4c] ss:$16 sps:$4 sm:$0xff]   ;;  %v11395_v14 = vld [vmem:[%s12082_s30 + $0xd28] ss:$16 sps:$4 sm:$0xff]   ;;  %v5869_v9 = vsub.s32 3, %v12746_v13 }
 0x64d   : > { %v8817_v15 = vpop.f32.mrf.mxu1  ;;  %9110 = vmatprep.subr.bf16.mxu1 %v11328_v56  ;;  %11409 = vtanh.f32 %v8815_v25  ;;  %v11397_v36 = vld [vmem:[%s12082_s30 + $0xd2c] ss:$16 sps:$4 sm:$0xff]   ;;  %v11398_v33 = vld [vmem:[%s12082_s30 + $0xf28] ss:$16 sps:$4 sm:$0xff]   ;;  %v11415_v25 = vld [vmem:[%s512_s16] sm:$0xf] }
 0x64e   : > { %v11400_v21 = vld [vmem:[%s12082_s30 + $0xf2c] ss:$16 sps:$4 sm:$0xff]   ;;  %v11401_v61 = vld [vmem:[%s12082_s30 + $0xd08] ss:$16 sps:$4 sm:$0xff]  }
 0x64f   : > { %9070 = vmatpush1.bf16.msra.mxu0 %v11323_v62  ;;  %v11403_v46 = vld [vmem:[%s12082_s30 + $0xd0c] ss:$16 sps:$4 sm:$0xff]   ;;  %v11404_v27 = vld [vmem:[%s12082_s30 + $0xf08] ss:$16 sps:$4 sm:$0xff]   ;;  %v5866_v62 = vrot.slane %v11415_v25, %v5865_v32 }
 0x650   : > { %9111 = vmatpush1.bf16.msra.mxu1 %v11326_v26  ;;  %9071 = vmatprep.subr.bf16.mxu0 %v11331_v53  ;;  %v11406_v56 = vld [vmem:[%s12082_s30 + $0xf0c] ss:$16 sps:$4 sm:$0xff]   ;;  %v5870_v26 = vrot.slane %v11415_v25, %v5869_v9 }
 0x651   : > { %9112 = vmatprep.subr.bf16.mxu1 %v11334_v2 }
 0x653   : > { %9072 = vmatpush1.bf16.msra.mxu0 %v11329_v31 }
 0x654   : > { %9113 = vmatpush1.bf16.msra.mxu1 %v11332_v22  ;;  %9073 = vmatprep.subr.bf16.mxu0 %v11337_v34 }
 0x655   : > { %9114 = vmatprep.subr.bf16.mxu1 %v11340_v3 }
 0x657   : > { %9074 = vmatpush1.bf16.msra.mxu0 %v11335_v18 }
 0x658   : > { %9115 = vmatpush1.bf16.msra.mxu1 %v11338_v4  ;;  %v11408_v16 = vpop.eup %11407  ;;  %9075 = vmatprep.subr.bf16.mxu0 %v11343_v57 }
 0x659   : > { %9116 = vmatprep.subr.bf16.mxu1 %v11346_v1  ;;  %9151 = vst [vmem:[%s12094_s22] sm:$0xff] %v11408_v16 }
 0x65a   : > { %v11410_v17 = vpop.eup %11409 }
 0x65b   : > { %9152 = vst [vmem:[%s12094_s22 + $0x8] sm:$0xff] %v11410_v17  ;;  %9076 = vmatpush1.bf16.msra.mxu0 %v11341_v6 }
 0x65c   : > { %9117 = vmatpush1.bf16.msra.mxu1 %v11344_v20  ;;  %9077 = vmatprep.subr.bf16.mxu0 %v11349_v19 }
 0x65d   : > { %9118 = vmatprep.subr.bf16.mxu1 %v11352_v30 }
 0x65f   : > { %9078 = vmatpush1.bf16.msra.mxu0 %v11347_v23 }
 0x660   : > { %9119 = vmatpush1.bf16.msra.mxu1 %v11350_v44  ;;  %9079 = vmatprep.subr.bf16.mxu0 %v11355_v41 }
 0x661   : > { %9120 = vmatprep.subr.bf16.mxu1 %v11358_v42 }
 0x663   : > { %9080 = vmatpush1.bf16.msra.mxu0 %v11353_v47 }
 0x664   : > { %9121 = vmatpush1.bf16.msra.mxu1 %v11356_v45  ;;  %9081 = vmatprep.subr.bf16.mxu0 %v11361_v48 }
 0x665   : > { %9122 = vmatprep.subr.bf16.mxu1 %v11364_v28 }
 0x667   : > { %9082 = vmatpush2.bf16.msra.mxu0 %v11359_v43 }
 0x668   : > { %9123 = vmatpush2.bf16.msra.mxu1 %v11362_v35  ;;  %9083 = vmatprep.subr.bf16.mxu0 %v11367_v59 }
 0x669   : > { %9124 = vmatprep.subr.bf16.mxu1 %v11370_v60 }
 0x66b   : > { %9084 = vmatpush2.bf16.msra.mxu0 %v11365_v49 }
 0x66c   : > { %9125 = vmatpush2.bf16.msra.mxu1 %v11368_v50  ;;  %9085 = vmatprep.subr.bf16.mxu0 %v11373_v51 }
 0x66d   : > { %9126 = vmatprep.subr.bf16.mxu1 %v11376_v54 }
 0x66f   : > { %9086 = vmatpush2.bf16.msra.mxu0 %v11371_v63 }
 0x670   : > { %9127 = vmatpush2.bf16.msra.mxu1 %v11374_v7  ;;  %9087 = vmatprep.subr.bf16.mxu0 %v11379_v10 }
 0x671   : > { %9128 = vmatprep.subr.bf16.mxu1 %v11382_v38 }
 0x673   : > { %9088 = vmatpush2.bf16.msra.mxu0 %v11377_v39 }
 0x674   : > { %9129 = vmatpush2.bf16.msra.mxu1 %v11380_v58  ;;  %9089 = vmatprep.subr.bf16.mxu0 %v11385_v11 }
 0x675   : > { %9130 = vmatprep.subr.bf16.mxu1 %v11388_v55 }
 0x677   : > { %9090 = vmatpush2.bf16.msra.mxu0 %v11383_v0 }
 0x678   : > { %9131 = vmatpush2.bf16.msra.mxu1 %v11386_v40  ;;  %9091 = vmatprep.subr.bf16.mxu0 %v11391_v52 }
 0x679   : > { %9132 = vmatprep.subr.bf16.mxu1 %v11394_v5 }
 0x67b   : > { %9092 = vmatpush2.bf16.msra.mxu0 %v11389_v37 }
 0x67c   : > { %9133 = vmatpush2.bf16.msra.mxu1 %v11392_v12  ;;  %9093 = vmatprep.subr.bf16.mxu0 %v11397_v36 }
 0x67d   : > { %9134 = vmatprep.subr.bf16.mxu1 %v11400_v21 }
 0x67f   : > { %9094 = vmatpush2.bf16.msra.mxu0 %v11395_v14 }
 0x680   : > { %9135 = vmatpush2.bf16.msra.mxu1 %v11398_v33  ;;  %9095 = vmatprep.subr.bf16.mxu0 %v11403_v46 }
 0x681   : > { %9136 = vmatprep.subr.bf16.mxu1 %v11406_v56 }
 0x683   : > { %9096 = vmatpush2.bf16.msra.mxu0 %v11401_v61 }
 0x684   : > { %9137 = vmatpush2.bf16.msra.mxu1 %v11404_v27 }
 0x686   : > { %v8853_v29 = vpop.f32.mrf.mxu0  ;;  %9098 = vmatmul.mubr.bf16.vlgmr.msra.gmra.mxu0 %v12760_v24 }
 0x687   : > { %v8894_v15 = vpop.f32.mrf.mxu1  ;;  %9139 = vmatmul.mubr.bf16.vlgmr.msra.gmra.mxu1 %v12764_v8  ;;  %v8854_v53 = vadd.f32 %v8853_v29, %v5866_v62 }
 0x688   : > { %v8855_v2 = vpop.f32.mrf.mxu0 }
 0x689   : > { %v8896_v31 = vpop.f32.mrf.mxu1  ;;  %v8895_v22 = vadd.f32 %v8894_v15, %v8854_v53  ;;  %v8856_v34 = vadd.f32 %v8855_v2, %v5870_v26 }
 0x68a   : > { %v8857_v3 = vpop.f32.mrf.mxu0 }
 0x68b   : > { %v8898_v18 = vpop.f32.mrf.mxu1  ;;  %v8897_v13 = vadd.f32 %v8896_v31, %v8856_v34 }
 0x68c   : > { %v8858_v4 = vpop.f32.mrf.mxu0 }
 0x68d   : > { %v8899_v57 = vpop.f32.mrf.mxu1 }
 0x6c6   : > { %v8935_v1 = vpop.f32.mrf.mxu0 }
 0x6c7   : > { %v8976_v6 = vpop.f32.mrf.mxu1  ;;  %v8936_v20 = vadd.f32 %v8935_v1, %v8895_v22 }
 0x6c8   : > { %v8937_v16 = vpop.f32.mrf.mxu0 }
 0x6c9   : > { %v8978_v19 = vpop.f32.mrf.mxu1  ;;  %v8977_v30 = vadd.f32 %v8976_v6, %v8936_v20  ;;  %v8938_v17 = vadd.f32 %v8937_v16, %v8897_v13 }
 0x6ca   : > { %v8939_v24 = vpop.f32.mrf.mxu0 }
 0x6cb   : > { %v8980_v23 = vpop.f32.mrf.mxu1  ;;  %v8979_v8 = vadd.f32 %v8978_v19, %v8938_v17 }
 0x6cc   : > { %v8940_v44 = vpop.f32.mrf.mxu0 }
 0x6cd   : > { %v8981_v41 = vpop.f32.mrf.mxu1 }
 0x706   : > { %v9017_v42 = vpop.f32.mrf.mxu0 }
 0x707   : > { %v9058_v47 = vpop.f32.mrf.mxu1  ;;  %v9018_v60 = vadd.f32 %v9017_v42, %v8977_v30 }
 0x708   : > { %v9019_v45 = vpop.f32.mrf.mxu0 }
 0x709   : > { %v9060_v48 = vpop.f32.mrf.mxu1  ;;  %v9020_v49 = vadd.f32 %v9019_v45, %v8979_v8  ;;  %v9059_v50 = vadd.f32 %v9058_v47, %v9018_v60 }
 0x70a   : > { %v9021_v28 = vpop.f32.mrf.mxu0 }
 0x70b   : > { %v9062_v43 = vpop.f32.mrf.mxu1  ;;  %v9061_v63 = vadd.f32 %v9060_v48, %v9020_v49 }
 0x70c   : > { %v9022_v35 = vpop.f32.mrf.mxu0 }
 0x70d   : > { %v9063_v59 = vpop.f32.mrf.mxu1 }
 0x746   : > { %v9099_v51 = vpop.f32.mrf.mxu0 }
 0x747   : > { %v9140_v54 = vpop.f32.mrf.mxu1  ;;  %v9100_v7 = vadd.f32 %v9099_v51, %v9059_v50 }
 0x748   : > { %v9101_v10 = vpop.f32.mrf.mxu0 }
 0x749   : > { %v9142_v38 = vpop.f32.mrf.mxu1  ;;  %v9141_v39 = vadd.f32 %v9140_v54, %v9100_v7  ;;  %v9102_v58 = vadd.f32 %v9101_v10, %v9061_v63 }
 0x74a   : > { %v9103_v11 = vpop.f32.mrf.mxu0 }
 0x74b   : > { %v9144_v55 = vpop.f32.mrf.mxu1  ;;  %11411 = vtanh.f32 %v9141_v39  ;;  %v9143_v0 = vadd.f32 %v9142_v38, %v9102_v58 }
 0x74c   : > { %v9104_v40 = vpop.f32.mrf.mxu0 }
 0x74d   : > { %v9145_v52 = vpop.f32.mrf.mxu1  ;;  %11413 = vtanh.f32 %v9143_v0 }
 0x758   : > { %v11412_v5 = vpop.eup %11411 }
 0x759   : > { %9153 = vst [vmem:[%s12094_s22 + $0x10] sm:$0xff] %v11412_v5 }
 0x75a   : > { %v11414_v37 = vpop.eup %11413 }
 0x75b   : > { %9154 = vst [vmem:[%s12094_s22 + $0x18] sm:$0xff] %v11414_v37 }
 0x75c PF: > { %p26_p13 = scmp.ge.s32.totalorder %s11931_s29, 4   ;;  %s13135_s17 = smov %s11752_s18 }
 0x75d   : > { %s13136_s18 = smov %s11756_s19  ;;  %s13137_s19 = smov %s11943_s13 }
 0x75e   : > { %s13138_s20 = smov %s11931_s29  ;;  %28 = sbr.rel (!%p26_p13) target bundleno = 13 (0xd), region = 156 }
 0x763   :  { %9177 = vsyncpa [#allocation4], 1 }
 0x764   :  { %9179 = vsyncpa [#allocation4 + $0x1], 1 }
 0x765   :  { %9180 = vsyncpa [#allocation6], 1 }
 0x766   :  { %9181 = vsyncpa [#allocation9], 1 }
 0x767   :  { %9182 = vsyncpa [#allocation12], 1 }
 0x768   :  { %9183 = vsyncpa [#allocation15], 1 }
 0x769   :  { %9184 = vsyncpa [#allocation18], 1 }
 0x76a   :  { %9186 = vsyncpa [#allocation18 + $0x1], 1 }

</bundles_post_ra>
